<compile_context>
chip_gen: v6e
topology: v6e:2x2x1
jax: 0.10.0
libtpu: 0.0.40
codegen_flags: <defaults>
</compile_context>

<pallas_src>
import functools

import jax
import jax.numpy as jnp
from jax.experimental import pallas as pl
from jax.experimental.pallas import tpu as pltpu


def _round_up(x, m):
    return ((x + m - 1) // m) * m


# ---------------------------------------------------------------------------
# Pallas kernel: one (TM, K) x (K, Np) tile -> (TM, Np), bias + optional ReLU.
# ---------------------------------------------------------------------------
def _mm_bias_kernel(x_ref, w_ref, b_ref, o_ref, *, relu):
    acc = jnp.dot(x_ref[...], w_ref[...], preferred_element_type=jnp.float32)
    acc = acc + b_ref[...]                     # (1, Np) broadcast over rows
    if relu:
        acc = jnp.maximum(acc, 0.0)
    o_ref[...] = acc.astype(o_ref.dtype)


def matmul_bias(x, w, b, *, relu, out_dtype=jnp.bfloat16, block_m=512):
    """act(x @ w + b) with an M-tiled Pallas call.

    x: (M, K) bf16 (unpadded), w: (K, Np) bf16, b: (1, Np) f32, Np % 128 == 0.
    Returns (M, Np) in `out_dtype`; the caller slices back the valid N columns.
    """
    M, K = x.shape
    Kw, Np = w.shape
    assert K == Kw and Np % 128 == 0 and b.shape == (1, Np)

    # 16-row alignment covers both bf16 (16,128) and f32 (8,128) native tiles.
    tm = min(block_m, _round_up(M, 16))
    grid_m = pl.cdiv(M, tm)

    return pl.pallas_call(
        functools.partial(_mm_bias_kernel, relu=relu),
        out_shape=jax.ShapeDtypeStruct((M, Np), out_dtype),
        grid=(grid_m,),
        in_specs=[
            pl.BlockSpec((tm, K), lambda i: (i, 0)),    # streamed over M
            pl.BlockSpec((K, Np), lambda i: (0, 0)),    # VMEM-resident weight
            pl.BlockSpec((1, Np), lambda i: (0, 0)),    # VMEM-resident bias
        ],
        out_specs=pl.BlockSpec((tm, Np), lambda i: (i, 0)),
        compiler_params=pltpu.CompilerParams(
            dimension_semantics=("parallel",)),
    )(x, w, b)


# ---------------------------------------------------------------------------
# Glue: im2col patch extraction (slicing / reshape only, no FLOPs).
# ---------------------------------------------------------------------------
def _im2col(x_nhwc, k, s):
    """(B, H, W, C) -> (B, Ho*Wo, k*k*C); patch order is (kh, kw, c)."""
    B, H, W, C = x_nhwc.shape
    Ho = (H - k) // s + 1
    Wo = (W - k) // s + 1
    cols = []
    for i in range(k):
        for j in range(k):
            cols.append(x_nhwc[:, i:i + s * Ho:s, j:j + s * Wo:s, :])
    p = jnp.stack(cols, axis=3)                 # (B, Ho, Wo, k*k, C)
    return p.reshape(B, Ho * Wo, k * k * C), Ho, Wo


def _conv_layer(x_nhwc, w2, b, *, k, stride, n_out):
    """Conv via im2col + Pallas matmul; returns (B, Ho, Wo, n_out) bf16."""
    B, _, _, C = x_nhwc.shape
    patches, Ho, Wo = _im2col(x_nhwc, k, stride)
    y = matmul_bias(patches.reshape(B * Ho * Wo, k * k * C), w2, b,
                    relu=True, out_dtype=jnp.bfloat16)
    return y[:, :n_out].reshape(B, Ho, Wo, n_out)


# ---------------------------------------------------------------------------
# Parameters: PyTorch-style layout + one-time Pallas-friendly transform.
# ---------------------------------------------------------------------------
def init_params(key, n_outputs):
    ks = jax.random.split(key, 10)

    def w(k, shape, fan_in):
        return jax.random.normal(k, shape, jnp.float32) / jnp.sqrt(fan_in)

    return {
        "conv1_w": w(ks[0], (32, 4, 8, 8), 4 * 8 * 8),
        "conv1_b": 0.01 * jax.random.normal(ks[1], (32,), jnp.float32),
        "conv2_w": w(ks[2], (64, 32, 4, 4), 32 * 4 * 4),
        "conv2_b": 0.01 * jax.random.normal(ks[3], (64,), jnp.float32),
        "conv3_w": w(ks[4], (32, 64, 3, 3), 64 * 3 * 3),
        "conv3_b": 0.01 * jax.random.normal(ks[5], (32,), jnp.float32),
        "linear1_w": w(ks[6], (512, 32 * 7 * 7), 32 * 7 * 7),   # (out, in)
        "linear1_b": 0.01 * jax.random.normal(ks[7], (512,), jnp.float32),
        "out_w": w(ks[8], (n_outputs, 512), 512),               # (out, in)
        "out_b": 0.01 * jax.random.normal(ks[9], (n_outputs,), jnp.float32),
    }


def prepare_params(params):
    """One-time transform: im2col weight layout, linear transposes, lane-dense
    N padding, 1/255 folded into conv1, bf16 weight cast, f32 (1, Np) biases."""
    def pad_n(w2):                                   # (K, N) -> (K, Np) bf16
        K, N = w2.shape
        Np = _round_up(N, 128)
        if Np != N:
            w2 = jnp.pad(w2, ((0, 0), (0, Np - N)))
        return w2.astype(jnp.bfloat16)

    def pad_b(b):                                    # (N,) -> (1, Np) f32
        N = b.shape[0]
        Np = _round_up(N, 128)
        return jnp.pad(b.astype(jnp.float32), (0, Np - N)).reshape(1, Np)

    def conv_w(w_oihw, scale=1.0):
        Cout, Cin, k, _ = w_oihw.shape
        # Match patch order (kh, kw, cin): OIHW -> (kh, kw, cin, cout) -> 2D.
        w2 = jnp.transpose(w_oihw, (2, 3, 1, 0)).reshape(k * k * Cin, Cout)
        return pad_n(w2 * scale)

    return {
        "conv1_w": conv_w(params["conv1_w"], 1.0 / 255.0),   # fold /255 here
        "conv1_b": pad_b(params["conv1_b"]),
        "conv2_w": conv_w(params["conv2_w"]),
        "conv2_b": pad_b(params["conv2_b"]),
        "conv3_w": conv_w(params["conv3_w"]),
        "conv3_b": pad_b(params["conv3_b"]),
        "lin1_w": pad_n(params["linear1_w"].T),
        "lin1_b": pad_b(params["linear1_b"]),
        "out_w": pad_n(params["out_w"].T),
        "out_b": pad_b(params["out_b"]),
    }


# ---------------------------------------------------------------------------
# CNN forward (matches the PyTorch module for 4x84x84 inputs).
# ---------------------------------------------------------------------------
def cnn_forward(prepped, x_nchw, *, n_outputs):
    # NCHW f32 -> NHWC bf16 (the /255 is already folded into conv1 weights).
    x = jnp.transpose(x_nchw.astype(jnp.bfloat16), (0, 2, 3, 1))
    x = _conv_layer(x, prepped["conv1_w"], prepped["conv1_b"],
                    k=8, stride=4, n_out=32)                    # (B,20,20,32)
    x = _conv_layer(x, prepped["conv2_w"], prepped["conv2_b"],
                    k=4, stride=2, n_out=64)                    # (B, 9, 9,64)
    x = _conv_layer(x, prepped["conv3_w"], prepped["conv3_b"],
                    k=3, stride=1, n_out=32)                    # (B, 7, 7,32)
    # PyTorch x.view(-1, 32*7*7) flattens NCHW => (C, H, W) order.
    B = x.shape[0]
    x = jnp.transpose(x, (0, 3, 1, 2)).reshape(B, 32 * 7 * 7)
    x = matmul_bias(x, prepped["lin1_w"], prepped["lin1_b"],
                    relu=True, out_dtype=jnp.bfloat16)          # (B, 512)
    x = matmul_bias(x, prepped["out_w"], prepped["out_b"],
                    relu=False, out_dtype=jnp.float32)          # (B, Np)
    return x[:, :n_outputs]


if __name__ == "__main__":
    key = jax.random.PRNGKey(0)
    k_in, k_par = jax.random.split(key)

    n_outputs = 4
    batch = 2
    # Spatial size must be 84: the flatten to 32*7*7 hard-codes the Atari
    # 4x84x84 input that this DQN CNN expects.
    x = jax.random.uniform(k_in, (batch, 4, 84, 84), jnp.float32,
                           minval=0.0, maxval=255.0)

    params = init_params(k_par, n_outputs)
    prepped = prepare_params(params)          # one-time weight transform

    fwd = jax.jit(functools.partial(cnn_forward, n_outputs=n_outputs))
    out = fwd(prepped, x)
    out = jax.block_until_ready(out)

    assert out.shape == (batch, n_outputs), out.shape
    assert out.dtype == jnp.float32
    print("KERNEL_OK")
</pallas_src>

<mosaic_0001>
module attributes {stable_mosaic.version = 11 : i64} {
  func.func @_mm_bias_kernel(%arg0: i32, %arg1: memref<512x256xbf16, #tpu.memory_space<vmem>>, %arg2: memref<256x128xbf16, #tpu.memory_space<vmem>>, %arg3: memref<1x128xf32, #tpu.memory_space<vmem>>, %arg4: memref<512x128xbf16, #tpu.memory_space<vmem>>) attributes {dimension_semantics = [#tpu.dimension_semantics<parallel>], iteration_bounds = array<i64: 2>, scalar_prefetch = 0 : i64, scratch_operands = 0 : i64, tpu.core_type = #tpu.core_type<tc>, window_params = [{transform_indices = @transform_0, window_bounds = array<i64: 512, 256>}, {pipeline_mode = #tpu.pipeline_mode<synchronous>, transform_indices = @transform_1, window_bounds = array<i64: 256, 128>}, {pipeline_mode = #tpu.pipeline_mode<synchronous>, transform_indices = @transform_2, window_bounds = array<i64: 1, 128>}, {transform_indices = @transform_3, window_bounds = array<i64: 512, 128>}]} {
    %c0 = arith.constant 0 : index
    %c0_0 = arith.constant 0 : index
    %0 = vector.load %arg1[%c0, %c0_0] : memref<512x256xbf16, #tpu.memory_space<vmem>>, vector<512x256xbf16>
    %c0_1 = arith.constant 0 : index
    %c0_2 = arith.constant 0 : index
    %1 = vector.load %arg2[%c0_1, %c0_2] : memref<256x128xbf16, #tpu.memory_space<vmem>>, vector<256x128xbf16>
    %cst = arith.constant dense<0.000000e+00> : vector<512x128xf32>
    %2 = tpu.matmul %0, %1, %cst {dimension_numbers = #tpu.dot_dimension_numbers<[1], [0], [0], [1], [0, 0, 1, 1], [], []>} : vector<512x256xbf16>, vector<256x128xbf16>, vector<512x128xf32> -> vector<512x128xf32>
    %c0_3 = arith.constant 0 : index
    %c0_4 = arith.constant 0 : index
    %3 = vector.load %arg3[%c0_3, %c0_4] : memref<1x128xf32, #tpu.memory_space<vmem>>, vector<1x128xf32>
    %4 = vector.broadcast %3 : vector<1x128xf32> to vector<512x128xf32>
    %5 = arith.addf %2, %4 : vector<512x128xf32>
    %cst_5 = arith.constant 0.000000e+00 : f32
    %6 = vector.broadcast %cst_5 : f32 to vector<512x128xf32>
    %7 = arith.maximumf %5, %6 : vector<512x128xf32>
    %8 = arith.truncf %7 : vector<512x128xf32> to vector<512x128xbf16>
    %c0_6 = arith.constant 0 : index
    %c0_7 = arith.constant 0 : index
    %9 = vector.load %arg4[%c0_6, %c0_7] : memref<512x128xbf16, #tpu.memory_space<vmem>>, vector<512x128xbf16>
    tpu.vector_store %arg4[%c0_6, %c0_7], %8 {strides = array<i32>} : memref<512x128xbf16, #tpu.memory_space<vmem>>, vector<512x128xbf16>,
    return
  }
  func.func @transform_0(%arg0: i32) -> (i32, i32) {
    %c0_i32 = arith.constant 0 : i32
    %c0_i32_0 = arith.constant 0 : i32
    return %arg0, %c0_i32 : i32, i32
  }
  func.func @transform_1(%arg0: i32) -> (i32, i32) {
    %c0_i32 = arith.constant 0 : i32
    %c0_i32_0 = arith.constant 0 : i32
    %c0_i32_1 = arith.constant 0 : i32
    return %c0_i32, %c0_i32_0 : i32, i32
  }
  func.func @transform_2(%arg0: i32) -> (i32, i32) {
    %c0_i32 = arith.constant 0 : i32
    %c0_i32_0 = arith.constant 0 : i32
    %c0_i32_1 = arith.constant 0 : i32
    return %c0_i32, %c0_i32_0 : i32, i32
  }
  func.func @transform_3(%arg0: i32) -> (i32, i32) {
    %c0_i32 = arith.constant 0 : i32
    %c0_i32_0 = arith.constant 0 : i32
    return %arg0, %c0_i32 : i32, i32
  }
}

module attributes {stable_mosaic.version = 11 : i64} {
  func.func @_mm_bias_kernel(%arg0: i32, %arg1: memref<176x512xbf16, #tpu.memory_space<vmem>>, %arg2: memref<512x128xbf16, #tpu.memory_space<vmem>>, %arg3: memref<1x128xf32, #tpu.memory_space<vmem>>, %arg4: memref<176x128xbf16, #tpu.memory_space<vmem>>) attributes {dimension_semantics = [#tpu.dimension_semantics<parallel>], iteration_bounds = array<i64: 1>, scalar_prefetch = 0 : i64, scratch_operands = 0 : i64, tpu.core_type = #tpu.core_type<tc>, window_params = [{transform_indices = @transform_0, window_bounds = array<i64: 176, 512>}, {pipeline_mode = #tpu.pipeline_mode<synchronous>, transform_indices = @transform_1, window_bounds = array<i64: 512, 128>}, {pipeline_mode = #tpu.pipeline_mode<synchronous>, transform_indices = @transform_2, window_bounds = array<i64: 1, 128>}, {transform_indices = @transform_3, window_bounds = array<i64: 176, 128>}]} {
    %c0 = arith.constant 0 : index
    %c0_0 = arith.constant 0 : index
    %0 = vector.load %arg1[%c0, %c0_0] : memref<176x512xbf16, #tpu.memory_space<vmem>>, vector<176x512xbf16>
    %c0_1 = arith.constant 0 : index
    %c0_2 = arith.constant 0 : index
    %1 = vector.load %arg2[%c0_1, %c0_2] : memref<512x128xbf16, #tpu.memory_space<vmem>>, vector<512x128xbf16>
    %cst = arith.constant dense<0.000000e+00> : vector<176x128xf32>
    %2 = tpu.matmul %0, %1, %cst {dimension_numbers = #tpu.dot_dimension_numbers<[1], [0], [0], [1], [0, 0, 1, 1], [], []>} : vector<176x512xbf16>, vector<512x128xbf16>, vector<176x128xf32> -> vector<176x128xf32>
    %c0_3 = arith.constant 0 : index
    %c0_4 = arith.constant 0 : index
    %3 = vector.load %arg3[%c0_3, %c0_4] : memref<1x128xf32, #tpu.memory_space<vmem>>, vector<1x128xf32>
    %4 = vector.broadcast %3 : vector<1x128xf32> to vector<176x128xf32>
    %5 = arith.addf %2, %4 : vector<176x128xf32>
    %cst_5 = arith.constant 0.000000e+00 : f32
    %6 = vector.broadcast %cst_5 : f32 to vector<176x128xf32>
    %7 = arith.maximumf %5, %6 : vector<176x128xf32>
    %8 = arith.truncf %7 : vector<176x128xf32> to vector<176x128xbf16>
    %c0_6 = arith.constant 0 : index
    %c0_7 = arith.constant 0 : index
    %9 = vector.load %arg4[%c0_6, %c0_7] : memref<176x128xbf16, #tpu.memory_space<vmem>>, vector<176x128xbf16>
    tpu.vector_store %arg4[%c0_6, %c0_7], %8 {strides = array<i32>} : memref<176x128xbf16, #tpu.memory_space<vmem>>, vector<176x128xbf16>,
    return
  }
  func.func @transform_0(%arg0: i32) -> (i32, i32) {
    %c0_i32 = arith.constant 0 : i32
    %c0_i32_0 = arith.constant 0 : i32
    return %arg0, %c0_i32 : i32, i32
  }
  func.func @transform_1(%arg0: i32) -> (i32, i32) {
    %c0_i32 = arith.constant 0 : i32
    %c0_i32_0 = arith.constant 0 : i32
    %c0_i32_1 = arith.constant 0 : i32
    return %c0_i32, %c0_i32_0 : i32, i32
  }
  func.func @transform_2(%arg0: i32) -> (i32, i32) {
    %c0_i32 = arith.constant 0 : i32
    %c0_i32_0 = arith.constant 0 : i32
    %c0_i32_1 = arith.constant 0 : i32
    return %c0_i32, %c0_i32_0 : i32, i32
  }
  func.func @transform_3(%arg0: i32) -> (i32, i32) {
    %c0_i32 = arith.constant 0 : i32
    %c0_i32_0 = arith.constant 0 : i32
    return %arg0, %c0_i32 : i32, i32
  }
}

module attributes {stable_mosaic.version = 11 : i64} {
  func.func @_mm_bias_kernel(%arg0: i32, %arg1: memref<112x576xbf16, #tpu.memory_space<vmem>>, %arg2: memref<576x128xbf16, #tpu.memory_space<vmem>>, %arg3: memref<1x128xf32, #tpu.memory_space<vmem>>, %arg4: memref<112x128xbf16, #tpu.memory_space<vmem>>) attributes {dimension_semantics = [#tpu.dimension_semantics<parallel>], iteration_bounds = array<i64: 1>, scalar_prefetch = 0 : i64, scratch_operands = 0 : i64, tpu.core_type = #tpu.core_type<tc>, window_params = [{transform_indices = @transform_0, window_bounds = array<i64: 112, 576>}, {pipeline_mode = #tpu.pipeline_mode<synchronous>, transform_indices = @transform_1, window_bounds = array<i64: 576, 128>}, {pipeline_mode = #tpu.pipeline_mode<synchronous>, transform_indices = @transform_2, window_bounds = array<i64: 1, 128>}, {transform_indices = @transform_3, window_bounds = array<i64: 112, 128>}]} {
    %c0 = arith.constant 0 : index
    %c0_0 = arith.constant 0 : index
    %0 = vector.load %arg1[%c0, %c0_0] : memref<112x576xbf16, #tpu.memory_space<vmem>>, vector<112x576xbf16>
    %c0_1 = arith.constant 0 : index
    %c0_2 = arith.constant 0 : index
    %1 = vector.load %arg2[%c0_1, %c0_2] : memref<576x128xbf16, #tpu.memory_space<vmem>>, vector<576x128xbf16>
    %cst = arith.constant dense<0.000000e+00> : vector<112x128xf32>
    %2 = tpu.matmul %0, %1, %cst {dimension_numbers = #tpu.dot_dimension_numbers<[1], [0], [0], [1], [0, 0, 1, 1], [], []>} : vector<112x576xbf16>, vector<576x128xbf16>, vector<112x128xf32> -> vector<112x128xf32>
    %c0_3 = arith.constant 0 : index
    %c0_4 = arith.constant 0 : index
    %3 = vector.load %arg3[%c0_3, %c0_4] : memref<1x128xf32, #tpu.memory_space<vmem>>, vector<1x128xf32>
    %4 = vector.broadcast %3 : vector<1x128xf32> to vector<112x128xf32>
    %5 = arith.addf %2, %4 : vector<112x128xf32>
    %cst_5 = arith.constant 0.000000e+00 : f32
    %6 = vector.broadcast %cst_5 : f32 to vector<112x128xf32>
    %7 = arith.maximumf %5, %6 : vector<112x128xf32>
    %8 = arith.truncf %7 : vector<112x128xf32> to vector<112x128xbf16>
    %c0_6 = arith.constant 0 : index
    %c0_7 = arith.constant 0 : index
    %9 = vector.load %arg4[%c0_6, %c0_7] : memref<112x128xbf16, #tpu.memory_space<vmem>>, vector<112x128xbf16>
    tpu.vector_store %arg4[%c0_6, %c0_7], %8 {strides = array<i32>} : memref<112x128xbf16, #tpu.memory_space<vmem>>, vector<112x128xbf16>,
    return
  }
  func.func @transform_0(%arg0: i32) -> (i32, i32) {
    %c0_i32 = arith.constant 0 : i32
    %c0_i32_0 = arith.constant 0 : i32
    return %arg0, %c0_i32 : i32, i32
  }
  func.func @transform_1(%arg0: i32) -> (i32, i32) {
    %c0_i32 = arith.constant 0 : i32
    %c0_i32_0 = arith.constant 0 : i32
    %c0_i32_1 = arith.constant 0 : i32
    return %c0_i32, %c0_i32_0 : i32, i32
  }
  func.func @transform_2(%arg0: i32) -> (i32, i32) {
    %c0_i32 = arith.constant 0 : i32
    %c0_i32_0 = arith.constant 0 : i32
    %c0_i32_1 = arith.constant 0 : i32
    return %c0_i32, %c0_i32_0 : i32, i32
  }
  func.func @transform_3(%arg0: i32) -> (i32, i32) {
    %c0_i32 = arith.constant 0 : i32
    %c0_i32_0 = arith.constant 0 : i32
    return %arg0, %c0_i32 : i32, i32
  }
}

module attributes {stable_mosaic.version = 11 : i64} {
  func.func @_mm_bias_kernel(%arg0: i32, %arg1: memref<16x1568xbf16, #tpu.memory_space<vmem>>, %arg2: memref<1568x512xbf16, #tpu.memory_space<vmem>>, %arg3: memref<1x512xf32, #tpu.memory_space<vmem>>, %arg4: memref<16x512xbf16, #tpu.memory_space<vmem>>) attributes {dimension_semantics = [#tpu.dimension_semantics<parallel>], iteration_bounds = array<i64: 1>, scalar_prefetch = 0 : i64, scratch_operands = 0 : i64, tpu.core_type = #tpu.core_type<tc>, window_params = [{transform_indices = @transform_0, window_bounds = array<i64: 16, 1568>}, {pipeline_mode = #tpu.pipeline_mode<synchronous>, transform_indices = @transform_1, window_bounds = array<i64: 1568, 512>}, {pipeline_mode = #tpu.pipeline_mode<synchronous>, transform_indices = @transform_2, window_bounds = array<i64: 1, 512>}, {transform_indices = @transform_3, window_bounds = array<i64: 16, 512>}]} {
    %c0 = arith.constant 0 : index
    %c0_0 = arith.constant 0 : index
    %0 = vector.load %arg1[%c0, %c0_0] : memref<16x1568xbf16, #tpu.memory_space<vmem>>, vector<16x1568xbf16>
    %c0_1 = arith.constant 0 : index
    %c0_2 = arith.constant 0 : index
    %1 = vector.load %arg2[%c0_1, %c0_2] : memref<1568x512xbf16, #tpu.memory_space<vmem>>, vector<1568x512xbf16>
    %cst = arith.constant dense<0.000000e+00> : vector<16x512xf32>
    %2 = tpu.matmul %0, %1, %cst {dimension_numbers = #tpu.dot_dimension_numbers<[1], [0], [0], [1], [0, 0, 1, 1], [], []>} : vector<16x1568xbf16>, vector<1568x512xbf16>, vector<16x512xf32> -> vector<16x512xf32>
    %c0_3 = arith.constant 0 : index
    %c0_4 = arith.constant 0 : index
    %3 = vector.load %arg3[%c0_3, %c0_4] : memref<1x512xf32, #tpu.memory_space<vmem>>, vector<1x512xf32>
    %4 = vector.broadcast %3 : vector<1x512xf32> to vector<16x512xf32>
    %5 = arith.addf %2, %4 : vector<16x512xf32>
    %cst_5 = arith.constant 0.000000e+00 : f32
    %6 = vector.broadcast %cst_5 : f32 to vector<16x512xf32>
    %7 = arith.maximumf %5, %6 : vector<16x512xf32>
    %8 = arith.truncf %7 : vector<16x512xf32> to vector<16x512xbf16>
    %c0_6 = arith.constant 0 : index
    %c0_7 = arith.constant 0 : index
    %9 = vector.load %arg4[%c0_6, %c0_7] : memref<16x512xbf16, #tpu.memory_space<vmem>>, vector<16x512xbf16>
    tpu.vector_store %arg4[%c0_6, %c0_7], %8 {strides = array<i32>} : memref<16x512xbf16, #tpu.memory_space<vmem>>, vector<16x512xbf16>,
    return
  }
  func.func @transform_0(%arg0: i32) -> (i32, i32) {
    %c0_i32 = arith.constant 0 : i32
    %c0_i32_0 = arith.constant 0 : i32
    return %arg0, %c0_i32 : i32, i32
  }
  func.func @transform_1(%arg0: i32) -> (i32, i32) {
    %c0_i32 = arith.constant 0 : i32
    %c0_i32_0 = arith.constant 0 : i32
    %c0_i32_1 = arith.constant 0 : i32
    return %c0_i32, %c0_i32_0 : i32, i32
  }
  func.func @transform_2(%arg0: i32) -> (i32, i32) {
    %c0_i32 = arith.constant 0 : i32
    %c0_i32_0 = arith.constant 0 : i32
    %c0_i32_1 = arith.constant 0 : i32
    return %c0_i32, %c0_i32_0 : i32, i32
  }
  func.func @transform_3(%arg0: i32) -> (i32, i32) {
    %c0_i32 = arith.constant 0 : i32
    %c0_i32_0 = arith.constant 0 : i32
    return %arg0, %c0_i32 : i32, i32
  }
}

module attributes {stable_mosaic.version = 11 : i64} {
  func.func @_mm_bias_kernel(%arg0: i32, %arg1: memref<16x512xbf16, #tpu.memory_space<vmem>>, %arg2: memref<512x128xbf16, #tpu.memory_space<vmem>>, %arg3: memref<1x128xf32, #tpu.memory_space<vmem>>, %arg4: memref<16x128xf32, #tpu.memory_space<vmem>>) attributes {dimension_semantics = [#tpu.dimension_semantics<parallel>], iteration_bounds = array<i64: 1>, scalar_prefetch = 0 : i64, scratch_operands = 0 : i64, tpu.core_type = #tpu.core_type<tc>, window_params = [{transform_indices = @transform_0, window_bounds = array<i64: 16, 512>}, {pipeline_mode = #tpu.pipeline_mode<synchronous>, transform_indices = @transform_1, window_bounds = array<i64: 512, 128>}, {pipeline_mode = #tpu.pipeline_mode<synchronous>, transform_indices = @transform_2, window_bounds = array<i64: 1, 128>}, {transform_indices = @transform_3, window_bounds = array<i64: 16, 128>}]} {
    %c0 = arith.constant 0 : index
    %c0_0 = arith.constant 0 : index
    %0 = vector.load %arg1[%c0, %c0_0] : memref<16x512xbf16, #tpu.memory_space<vmem>>, vector<16x512xbf16>
    %c0_1 = arith.constant 0 : index
    %c0_2 = arith.constant 0 : index
    %1 = vector.load %arg2[%c0_1, %c0_2] : memref<512x128xbf16, #tpu.memory_space<vmem>>, vector<512x128xbf16>
    %cst = arith.constant dense<0.000000e+00> : vector<16x128xf32>
    %2 = tpu.matmul %0, %1, %cst {dimension_numbers = #tpu.dot_dimension_numbers<[1], [0], [0], [1], [0, 0, 1, 1], [], []>} : vector<16x512xbf16>, vector<512x128xbf16>, vector<16x128xf32> -> vector<16x128xf32>
    %c0_3 = arith.constant 0 : index
    %c0_4 = arith.constant 0 : index
    %3 = vector.load %arg3[%c0_3, %c0_4] : memref<1x128xf32, #tpu.memory_space<vmem>>, vector<1x128xf32>
    %4 = vector.broadcast %3 : vector<1x128xf32> to vector<16x128xf32>
    %5 = arith.addf %2, %4 : vector<16x128xf32>
    %c0_5 = arith.constant 0 : index
    %c0_6 = arith.constant 0 : index
    %6 = vector.load %arg4[%c0_5, %c0_6] : memref<16x128xf32, #tpu.memory_space<vmem>>, vector<16x128xf32>
    tpu.vector_store %arg4[%c0_5, %c0_6], %5 {strides = array<i32>} : memref<16x128xf32, #tpu.memory_space<vmem>>, vector<16x128xf32>,
    return
  }
  func.func @transform_0(%arg0: i32) -> (i32, i32) {
    %c0_i32 = arith.constant 0 : i32
    %c0_i32_0 = arith.constant 0 : i32
    return %arg0, %c0_i32 : i32, i32
  }
  func.func @transform_1(%arg0: i32) -> (i32, i32) {
    %c0_i32 = arith.constant 0 : i32
    %c0_i32_0 = arith.constant 0 : i32
    %c0_i32_1 = arith.constant 0 : i32
    return %c0_i32, %c0_i32_0 : i32, i32
  }
  func.func @transform_2(%arg0: i32) -> (i32, i32) {
    %c0_i32 = arith.constant 0 : i32
    %c0_i32_0 = arith.constant 0 : i32
    %c0_i32_1 = arith.constant 0 : i32
    return %c0_i32, %c0_i32_0 : i32, i32
  }
  func.func @transform_3(%arg0: i32) -> (i32, i32) {
    %c0_i32 = arith.constant 0 : i32
    %c0_i32_0 = arith.constant 0 : i32
    return %arg0, %c0_i32 : i32, i32
  }
}

</mosaic_0001>

<bundles_post_ra>
// kernel: cnn_forward.5
= control target key start
LH: loop header
LB: loop body
LE: loop exit
PB: predicated region body
PF: predicated region fallthrough
CT: control target
= control target key end

     0   :  { %s2632_s12 = smov 0   ;;  %s2634_s13 = smov 0   ;;  %s3118_s0 = inlined_call_operand.vmem [shape: bf16[800,256], index: 0, kind: input, shape index: {}]   ;;  %s3119_s1 = inlined_call_operand.vmem [shape: bf16[256,128], index: 1, kind: input, shape index: {}]   ;;  %s3120_s2 = inlined_call_operand.vmem [shape: f32[1,128], index: 2, kind: input, shape index: {}]   ;;  %s3121_s3 = inlined_call_operand.vmem [shape: bf16[800,128], index: 3, kind: output, shape index: {}]  }
   0x1   :  { %s2636_s14 = smov 0  }
   0x2 LB: > { %s2645_s15 = sadd.s32 4294967295, %s2577_s14   ;;  %s2647_s16 = sadd.s32 1, %s2577_s14   ;;  %s2577_s14 = sphi %s2636_s14, %s3128_s14   ;;  %s2573_s13 = sphi %s2634_s13, %s3127_s13   ;;  %s2569_s12 = sphi %s2632_s12, %s3126_s12  }
   0x3   : > { %s85_s17 = ssub.s32 %s2577_s14, %s2647_s16  ;;  %s88_s18 = sadd.s32 1, %s2573_s13 }
   0x4   : > { %p86_p0 = scmp.eq.s32.totalorder %s85_s17, 0  ;;  %p98_p1 = scmp.ne.s32.totalorder %s2573_s13, %s2569_s12 }
   0x5   : > { %p99_p2 = scmp.eq.s32.totalorder %s2645_s15, 1  ;;  %p1864_p3 = scmp.ge.s32.totalorder %s2577_s14, 1 }
   0x6   : > { %s2655_s19 = scalar_select %p86_p0, %s2573_s13, %s88_s18  }
   0x7   : > { %p2657_p4 = por %p99_p2, %p98_p1  ;;  %p149_p5 = scmp.lt.s32.totalorder %s2577_s14, 3 }
   0x9   : > { %p150_p6 = pnand %p1864_p3, %p149_p5 }
   0xa   : > { %s2667_s23 = sshll.u32 (!%p150_p6), %s2645_s15, 6  ;;  %s175_s21 = sand.u32 (!%p150_p6), 1, %s2569_s12  }
   0xb   : > { %153 = sbr.rel (%p150_p6) target bundleno = 486 (0x1e6), region = 32  ;;  %p184_p7 = scmp.lt.s32.totalorder (!%p150_p6), %s2667_s23, 99 }
   0xc   : > { %s1865_s22 = sshll.u32 (!%p150_p6), %s175_s21, 8 }
   0xd   : > { %s2825_s12 = scalar_lea.vmem (!%p150_p6), [#allocation2], %s1865_s22  }
  0x10   : > { %v2411_v0 = vld [vmem:[%s3119_s1 + $0x38] sm:$0xff]   ;;  %v2611_v1 = vmov 0   ;;  %v2412_v2 = vld [vmem:[%s3119_s1 + $0x30] sm:$0xff]   ;;  %v2413_v3 = vld [vmem:[%s3119_s1 + $0x28] sm:$0xff]   ;;  %s185_s28 = scalar_select %p184_p7, %s2667_s23, 99 }
  0x11   : > { %720 = vmatprep.subr.bf16.mxu0 %v2611_v1  ;;  %2290 = vmatprep.subr.bf16.mxu1 %v2611_v1  ;;  %v2414_v4 = vld [vmem:[%s3119_s1 + $0x20] sm:$0xff]   ;;  %v2415_v5 = vld [vmem:[%s3119_s1 + $0x18] sm:$0xff]   ;;  %v2416_v7 = vld [vmem:[%s3119_s1 + $0x10] sm:$0xff]   ;;  %s2096_s24 = sshll.u32 (%p2657_p4), %s2645_s15, 8 }
  0x12   : > { %721 = vmatpush1.bf16.msra.mxu0 %v2411_v0  ;;  %2306 = vmatpush1.bf16.msra.mxu1 %v2411_v0  ;;  %s2031_s4 = sshll.u32 %s185_s28, 3  ;;  %v2417_v9 = vld [vmem:[%s3119_s1 + $0x8] sm:$0xff]   ;;  %v2418_v10 = vld [vmem:[%s3119_s1] sm:$0xff]   ;;  %v2419_v11 = vld [vmem:[%s3119_s1 + $0x78] sm:$0xff]   ;;  %s2926_s27 = scalar_lea.vmem (%p2657_p4), %s3121_s3, %s2096_s24  }
  0x13   : > { %722 = vmatprep.subr.bf16.mxu0 %v2611_v1  ;;  %2291 = vmatprep.subr.bf16.mxu1 %v2611_v1  ;;  %s2692_s9 = scalar_lea.vmem %s3118_s0, %s2031_s4  ;;  %v2420_v12 = vld [vmem:[%s3119_s1 + $0x70] sm:$0xff]   ;;  %v2421_v13 = vld [vmem:[%s3119_s1 + $0x68] sm:$0xff]   ;;  %v2422_v14 = vld [vmem:[%s3119_s1 + $0x60] sm:$0xff]  }
  0x14   : > { %v2429_v6 = vld [vmem:[%s2692_s9 + $0x4] ss:$8 sps:$4 sm:$0xff]   ;;  %v2423_v15 = vld [vmem:[%s3119_s1 + $0x58] sm:$0xff]   ;;  %v2424_v16 = vld [vmem:[%s3119_s1 + $0x50] sm:$0xff]  }
  0x15   : > { %v2432_v8 = vld [vmem:[%s2692_s9 + $0x104] ss:$8 sps:$4 sm:$0xff]   ;;  %752 = vmatprep.mubr.bf16.mxu0 %v2429_v6  ;;  %v2427_v19 = vld [vmem:[%s2692_s9] ss:$8 sps:$4 sm:$0xff]   ;;  %v2433_v21 = vld [vmem:[%s2692_s9 + $0x14] ss:$8 sps:$4 sm:$0xff]  }
  0x16   : > { %723 = vmatpush1.bf16.msra.mxu0 %v2412_v2  ;;  %2307 = vmatpush1.bf16.msra.mxu1 %v2412_v2  ;;  %v2425_v17 = vld [vmem:[%s3119_s1 + $0x48] sm:$0xff]   ;;  %v2426_v18 = vld [vmem:[%s3119_s1 + $0x40] sm:$0xff]   ;;  %v2435_v22 = vld [vmem:[%s2692_s9 + $0x114] ss:$8 sps:$4 sm:$0xff]  }
  0x17   : > { %724 = vmatprep.subr.bf16.mxu0 %v2611_v1  ;;  %2292 = vmatprep.subr.bf16.mxu1 %v2611_v1  ;;  %v2430_v20 = vld [vmem:[%s2692_s9 + $0x100] ss:$8 sps:$4 sm:$0xff]   ;;  %v2437_v23 = vld [vmem:[%s2692_s9 + $0x10] ss:$8 sps:$4 sm:$0xff]   ;;  %v2439_v25 = vld [vmem:[%s2692_s9 + $0x24] ss:$8 sps:$4 sm:$0xff]  }
  0x18   : > { %880 = vmatprep.mubr.bf16.mxu1 %v2432_v8  ;;  %v2438_v24 = vld [vmem:[%s2692_s9 + $0x110] ss:$8 sps:$4 sm:$0xff]   ;;  %v2441_v26 = vld [vmem:[%s2692_s9 + $0x124] ss:$8 sps:$4 sm:$0xff]   ;;  %v2443_v27 = vld [vmem:[%s2692_s9 + $0x20] ss:$8 sps:$4 sm:$0xff]  }
  0x19   : > { %v2444_v28 = vld [vmem:[%s2692_s9 + $0x120] ss:$8 sps:$4 sm:$0xff]   ;;  %v2445_v29 = vld [vmem:[%s2692_s9 + $0x34] ss:$8 sps:$4 sm:$0xff]   ;;  %v2449_v31 = vld [vmem:[%s2692_s9 + $0x30] ss:$8 sps:$4 sm:$0xff]  }
  0x1a   : > { %725 = vmatpush1.bf16.msra.mxu0 %v2413_v3  ;;  %2308 = vmatpush1.bf16.msra.mxu1 %v2413_v3  ;;  %v2447_v30 = vld [vmem:[%s2692_s9 + $0x134] ss:$8 sps:$4 sm:$0xff]   ;;  %v2450_v32 = vld [vmem:[%s2692_s9 + $0x130] ss:$8 sps:$4 sm:$0xff]   ;;  %v2451_v33 = vld [vmem:[%s2692_s9 + $0x44] ss:$8 sps:$4 sm:$0xff]  }
  0x1b   : > { %726 = vmatprep.subr.bf16.mxu0 %v2611_v1  ;;  %2293 = vmatprep.subr.bf16.mxu1 %v2611_v1  ;;  %v2453_v34 = vld [vmem:[%s2692_s9 + $0x144] ss:$8 sps:$4 sm:$0xff]   ;;  %v2455_v35 = vld [vmem:[%s2692_s9 + $0x40] ss:$8 sps:$4 sm:$0xff]   ;;  %v2457_v37 = vld [vmem:[%s2692_s9 + $0x54] ss:$8 sps:$4 sm:$0xff]  }
  0x1c   : > { %v2456_v36 = vld [vmem:[%s2692_s9 + $0x140] ss:$8 sps:$4 sm:$0xff]   ;;  %v2459_v38 = vld [vmem:[%s2692_s9 + $0x154] ss:$8 sps:$4 sm:$0xff]   ;;  %v2461_v39 = vld [vmem:[%s2692_s9 + $0x50] ss:$8 sps:$4 sm:$0xff]  }
  0x1d   : > { %v2462_v40 = vld [vmem:[%s2692_s9 + $0x150] ss:$8 sps:$4 sm:$0xff]   ;;  %v2463_v41 = vld [vmem:[%s2692_s9 + $0x64] ss:$8 sps:$4 sm:$0xff]   ;;  %v2467_v43 = vld [vmem:[%s2692_s9 + $0x60] ss:$8 sps:$4 sm:$0xff]  }
  0x1e   : > { %727 = vmatpush1.bf16.msra.mxu0 %v2414_v4  ;;  %2309 = vmatpush1.bf16.msra.mxu1 %v2414_v4  ;;  %v2465_v42 = vld [vmem:[%s2692_s9 + $0x164] ss:$8 sps:$4 sm:$0xff]   ;;  %v2468_v44 = vld [vmem:[%s2692_s9 + $0x160] ss:$8 sps:$4 sm:$0xff]   ;;  %v2469_v45 = vld [vmem:[%s2692_s9 + $0x74] ss:$8 sps:$4 sm:$0xff]  }
  0x1f   : > { %728 = vmatprep.subr.bf16.mxu0 %v2611_v1  ;;  %2294 = vmatprep.subr.bf16.mxu1 %v2611_v1  ;;  %v2471_v46 = vld [vmem:[%s2692_s9 + $0x174] ss:$8 sps:$4 sm:$0xff]   ;;  %v2473_v47 = vld [vmem:[%s2692_s9 + $0x70] ss:$8 sps:$4 sm:$0xff]   ;;  %v2475_v49 = vld [vmem:[%s2692_s9 + $0x84] ss:$8 sps:$4 sm:$0xff]  }
  0x20   : > { %v2474_v48 = vld [vmem:[%s2692_s9 + $0x170] ss:$8 sps:$4 sm:$0xff]   ;;  %v2477_v50 = vld [vmem:[%s2692_s9 + $0x184] ss:$8 sps:$4 sm:$0xff]   ;;  %v2479_v51 = vld [vmem:[%s2692_s9 + $0x80] ss:$8 sps:$4 sm:$0xff]  }
  0x21   : > { %v2480_v52 = vld [vmem:[%s2692_s9 + $0x180] ss:$8 sps:$4 sm:$0xff]   ;;  %v2481_v53 = vld [vmem:[%s2692_s9 + $0x94] ss:$8 sps:$4 sm:$0xff]   ;;  %v2485_v55 = vld [vmem:[%s2692_s9 + $0x90] ss:$8 sps:$4 sm:$0xff]  }
  0x22   : > { %729 = vmatpush1.bf16.msra.mxu0 %v2415_v5  ;;  %2310 = vmatpush1.bf16.msra.mxu1 %v2415_v5  ;;  %v2483_v54 = vld [vmem:[%s2692_s9 + $0x194] ss:$8 sps:$4 sm:$0xff]   ;;  %v2486_v56 = vld [vmem:[%s2692_s9 + $0x190] ss:$8 sps:$4 sm:$0xff]   ;;  %v2487_v57 = vld [vmem:[%s2692_s9 + $0xa4] ss:$8 sps:$4 sm:$0xff]  }
  0x23   : > { %730 = vmatprep.subr.bf16.mxu0 %v2611_v1  ;;  %2295 = vmatprep.subr.bf16.mxu1 %v2611_v1  ;;  %v2489_v58 = vld [vmem:[%s2692_s9 + $0x1a4] ss:$8 sps:$4 sm:$0xff]   ;;  %v2491_v59 = vld [vmem:[%s2692_s9 + $0xa0] ss:$8 sps:$4 sm:$0xff]   ;;  %v2493_v61 = vld [vmem:[%s2692_s9 + $0xb4] ss:$8 sps:$4 sm:$0xff]  }
  0x24   : > { %v2492_v60 = vld [vmem:[%s2692_s9 + $0x1a0] ss:$8 sps:$4 sm:$0xff]   ;;  %v2495_v62 = vld [vmem:[%s2692_s9 + $0x1b4] ss:$8 sps:$4 sm:$0xff]   ;;  %v2497_v63 = vld [vmem:[%s2692_s9 + $0xb0] ss:$8 sps:$4 sm:$0xff]  }
  0x25   : > { %v2498_v0 = vld [vmem:[%s2692_s9 + $0x1b0] ss:$8 sps:$4 sm:$0xff]   ;;  %v2501_v2 = vld [vmem:[%s2692_s9 + $0x1c4] ss:$8 sps:$4 sm:$0xff]   ;;  %v2503_v3 = vld [vmem:[%s2692_s9 + $0xc0] ss:$8 sps:$4 sm:$0xff]  }
  0x26   : > { %731 = vmatpush1.bf16.msra.mxu0 %v2416_v7  ;;  %2311 = vmatpush1.bf16.msra.mxu1 %v2416_v7  ;;  %v2504_v4 = vld [vmem:[%s2692_s9 + $0x1c0] ss:$8 sps:$4 sm:$0xff]   ;;  %v2505_v5 = vld [vmem:[%s2692_s9 + $0xd4] ss:$8 sps:$4 sm:$0xff]   ;;  %v2509_v7 = vld [vmem:[%s2692_s9 + $0xd0] ss:$8 sps:$4 sm:$0xff]  }
  0x27   : > { %732 = vmatprep.subr.bf16.mxu0 %v2611_v1  ;;  %2296 = vmatprep.subr.bf16.mxu1 %v2611_v1  ;;  %v2507_v6 = vld [vmem:[%s2692_s9 + $0x1d4] ss:$8 sps:$4 sm:$0xff]   ;;  %v2510_v8 = vld [vmem:[%s2692_s9 + $0x1d0] ss:$8 sps:$4 sm:$0xff]  }
  0x2a   : > { %733 = vmatpush1.bf16.msra.mxu0 %v2417_v9  ;;  %2312 = vmatpush1.bf16.msra.mxu1 %v2417_v9  ;;  %v2511_v9 = vld [vmem:[%s2692_s9 + $0xe4] ss:$8 sps:$4 sm:$0xff]  }
  0x2b   : > { %734 = vmatprep.subr.bf16.mxu0 %v2611_v1  ;;  %2297 = vmatprep.subr.bf16.mxu1 %v2611_v1 }
  0x2e   : > { %735 = vmatpush1.bf16.msra.mxu0 %v2418_v10  ;;  %2313 = vmatpush1.bf16.msra.mxu1 %v2418_v10  ;;  %v2513_v10 = vld [vmem:[%s2692_s9 + $0x1e4] ss:$8 sps:$4 sm:$0xff]  }
  0x2f   : > { %736 = vmatprep.subr.bf16.mxu0 %v2611_v1  ;;  %2298 = vmatprep.subr.bf16.mxu1 %v2611_v1 }
  0x32   : > { %737 = vmatpush2.bf16.msra.mxu0 %v2419_v11  ;;  %2314 = vmatpush2.bf16.msra.mxu1 %v2419_v11  ;;  %v2515_v11 = vld [vmem:[%s2692_s9 + $0xe0] ss:$8 sps:$4 sm:$0xff]  }
  0x33   : > { %738 = vmatprep.subr.bf16.mxu0 %v2611_v1  ;;  %2299 = vmatprep.subr.bf16.mxu1 %v2611_v1 }
  0x36   : > { %739 = vmatpush2.bf16.msra.mxu0 %v2420_v12  ;;  %2315 = vmatpush2.bf16.msra.mxu1 %v2420_v12  ;;  %v2516_v12 = vld [vmem:[%s2692_s9 + $0x1e0] ss:$8 sps:$4 sm:$0xff]  }
  0x37   : > { %740 = vmatprep.subr.bf16.mxu0 %v2611_v1  ;;  %2300 = vmatprep.subr.bf16.mxu1 %v2611_v1 }
  0x3a   : > { %741 = vmatpush2.bf16.msra.mxu0 %v2421_v13  ;;  %2316 = vmatpush2.bf16.msra.mxu1 %v2421_v13  ;;  %v2517_v13 = vld [vmem:[%s2692_s9 + $0xf4] ss:$8 sps:$4 sm:$0xff]  }
  0x3b   : > { %742 = vmatprep.subr.bf16.mxu0 %v2611_v1  ;;  %2301 = vmatprep.subr.bf16.mxu1 %v2611_v1 }
  0x3e   : > { %743 = vmatpush2.bf16.msra.mxu0 %v2422_v14  ;;  %2317 = vmatpush2.bf16.msra.mxu1 %v2422_v14  ;;  %v2519_v14 = vld [vmem:[%s2692_s9 + $0x1f4] ss:$8 sps:$4 sm:$0xff]  }
  0x3f   : > { %744 = vmatprep.subr.bf16.mxu0 %v2611_v1  ;;  %2302 = vmatprep.subr.bf16.mxu1 %v2611_v1 }
  0x42   : > { %745 = vmatpush2.bf16.msra.mxu0 %v2423_v15  ;;  %2318 = vmatpush2.bf16.msra.mxu1 %v2423_v15  ;;  %v2521_v15 = vld [vmem:[%s2692_s9 + $0xf0] ss:$8 sps:$4 sm:$0xff]  }
  0x43   : > { %746 = vmatprep.subr.bf16.mxu0 %v2611_v1  ;;  %2303 = vmatprep.subr.bf16.mxu1 %v2611_v1 }
  0x46   : > { %747 = vmatpush2.bf16.msra.mxu0 %v2424_v16  ;;  %2319 = vmatpush2.bf16.msra.mxu1 %v2424_v16  ;;  %v2522_v16 = vld [vmem:[%s2692_s9 + $0x1f0] ss:$8 sps:$4 sm:$0xff]  }
  0x47   : > { %748 = vmatprep.subr.bf16.mxu0 %v2611_v1  ;;  %2304 = vmatprep.subr.bf16.mxu1 %v2611_v1 }
  0x4a   : > { %749 = vmatpush2.bf16.msra.mxu0 %v2425_v17  ;;  %2320 = vmatpush2.bf16.msra.mxu1 %v2425_v17  ;;  %v2818_v17 = vld [vmem:[%s3120_s2] ss:$0 sm:$0xff] }
  0x4b   : > { %750 = vmatprep.subr.bf16.mxu0 %v2611_v1  ;;  %2305 = vmatprep.subr.bf16.mxu1 %v2611_v1  ;;  %v2499_v1 = vld [vmem:[%s2692_s9 + $0xc4] ss:$8 sps:$4 sm:$0xff]   ;;  %s1401_s9 = ssub.s32 (%p2657_p4), 100, %s2667_s23 }
  0x4c   : > { %p1402_p8 = scmp.lt.s32.totalorder (%p2657_p4), %s1401_s9, 64 }
  0x4e   : > { %751 = vmatpush2.bf16.msra.mxu0 %v2426_v18  ;;  %2321 = vmatpush2.bf16.msra.mxu1 %v2426_v18 }
  0x51   : > { %753 = vmatmul.mubr.bf16.vlgmr.msra.gmra.mxu0 %v2427_v19  ;;  %881 = vmatmul.mubr.bf16.vlgmr.msra.gmra.mxu1 %v2430_v20 }
  0x52   : > { %760 = vmatprep.mubr.bf16.mxu0 %v2433_v21  ;;  %888 = vmatprep.mubr.bf16.mxu1 %v2435_v22 }
  0x59   : > { %761 = vmatmul.mubr.bf16.gmra.mxu0 %v2437_v23  ;;  %889 = vmatmul.mubr.bf16.gmra.mxu1 %v2438_v24 }
  0x5a   : > { %768 = vmatprep.mubr.bf16.mxu0 %v2439_v25  ;;  %896 = vmatprep.mubr.bf16.mxu1 %v2441_v26 }
  0x61   : > { %769 = vmatmul.mubr.bf16.gmra.mxu0 %v2443_v27  ;;  %897 = vmatmul.mubr.bf16.gmra.mxu1 %v2444_v28 }
  0x62   : > { %776 = vmatprep.mubr.bf16.mxu0 %v2445_v29  ;;  %904 = vmatprep.mubr.bf16.mxu1 %v2447_v30 }
  0x69   : > { %777 = vmatmul.mubr.bf16.gmra.mxu0 %v2449_v31  ;;  %905 = vmatmul.mubr.bf16.gmra.mxu1 %v2450_v32 }
  0x6a   : > { %784 = vmatprep.mubr.bf16.mxu0 %v2451_v33  ;;  %912 = vmatprep.mubr.bf16.mxu1 %v2453_v34 }
  0x71   : > { %785 = vmatmul.mubr.bf16.gmra.mxu0 %v2455_v35  ;;  %913 = vmatmul.mubr.bf16.gmra.mxu1 %v2456_v36 }
  0x72   : > { %792 = vmatprep.mubr.bf16.mxu0 %v2457_v37  ;;  %920 = vmatprep.mubr.bf16.mxu1 %v2459_v38 }
  0x79   : > { %793 = vmatmul.mubr.bf16.gmra.mxu0 %v2461_v39  ;;  %921 = vmatmul.mubr.bf16.gmra.mxu1 %v2462_v40 }
  0x7a   : > { %800 = vmatprep.mubr.bf16.mxu0 %v2463_v41  ;;  %928 = vmatprep.mubr.bf16.mxu1 %v2465_v42 }
  0x81   : > { %801 = vmatmul.mubr.bf16.gmra.mxu0 %v2467_v43  ;;  %929 = vmatmul.mubr.bf16.gmra.mxu1 %v2468_v44 }
  0x82   : > { %808 = vmatprep.mubr.bf16.mxu0 %v2469_v45  ;;  %936 = vmatprep.mubr.bf16.mxu1 %v2471_v46 }
  0x89   : > { %809 = vmatmul.mubr.bf16.gmra.mxu0 %v2473_v47  ;;  %937 = vmatmul.mubr.bf16.gmra.mxu1 %v2474_v48 }
  0x8a   : > { %816 = vmatprep.mubr.bf16.mxu0 %v2475_v49  ;;  %944 = vmatprep.mubr.bf16.mxu1 %v2477_v50 }
  0x91   : > { %817 = vmatmul.mubr.bf16.gmra.mxu0 %v2479_v51  ;;  %945 = vmatmul.mubr.bf16.gmra.mxu1 %v2480_v52 }
  0x92   : > { %824 = vmatprep.mubr.bf16.mxu0 %v2481_v53  ;;  %952 = vmatprep.mubr.bf16.mxu1 %v2483_v54 }
  0x99   : > { %825 = vmatmul.mubr.bf16.gmra.mxu0 %v2485_v55  ;;  %953 = vmatmul.mubr.bf16.gmra.mxu1 %v2486_v56 }
  0x9a   : > { %832 = vmatprep.mubr.bf16.mxu0 %v2487_v57  ;;  %960 = vmatprep.mubr.bf16.mxu1 %v2489_v58 }
  0xa1   : > { %833 = vmatmul.mubr.bf16.gmra.mxu0 %v2491_v59  ;;  %961 = vmatmul.mubr.bf16.gmra.mxu1 %v2492_v60 }
  0xa2   : > { %840 = vmatprep.mubr.bf16.mxu0 %v2493_v61  ;;  %968 = vmatprep.mubr.bf16.mxu1 %v2495_v62 }
  0xa9   : > { %841 = vmatmul.mubr.bf16.gmra.mxu0 %v2497_v63  ;;  %969 = vmatmul.mubr.bf16.gmra.mxu1 %v2498_v0 }
  0xaa   : > { %848 = vmatprep.mubr.bf16.mxu0 %v2499_v1  ;;  %976 = vmatprep.mubr.bf16.mxu1 %v2501_v2 }
  0xb1   : > { %849 = vmatmul.mubr.bf16.gmra.mxu0 %v2503_v3  ;;  %977 = vmatmul.mubr.bf16.gmra.mxu1 %v2504_v4 }
  0xb2   : > { %856 = vmatprep.mubr.bf16.mxu0 %v2505_v5  ;;  %984 = vmatprep.mubr.bf16.mxu1 %v2507_v6 }
  0xb9   : > { %857 = vmatmul.mubr.bf16.gmra.mxu0 %v2509_v7  ;;  %985 = vmatmul.mubr.bf16.gmra.mxu1 %v2510_v8 }
  0xba   : > { %864 = vmatprep.mubr.bf16.mxu0 %v2511_v9  ;;  %992 = vmatprep.mubr.bf16.mxu1 %v2513_v10 }
  0xc1   : > { %865 = vmatmul.mubr.bf16.gmra.mxu0 %v2515_v11  ;;  %993 = vmatmul.mubr.bf16.gmra.mxu1 %v2516_v12 }
  0xc2   : > { %872 = vmatprep.mubr.bf16.mxu0 %v2517_v13  ;;  %1000 = vmatprep.mubr.bf16.mxu1 %v2519_v14 }
  0xc9   : > { %873 = vmatmul.mubr.bf16.gmra.mxu0 %v2521_v15  ;;  %1001 = vmatmul.mubr.bf16.gmra.mxu1 %v2522_v16 }
 0x111   : > { %v754_v18 = vpop.f32.mrf.mxu0  ;;  %v882_v19 = vpop.f32.mrf.mxu1 }
 0x112   : > { %v755_v22 = vadd.f32 %v2818_v17, %v754_v18  ;;  %v883_v23 = vadd.f32 %v2818_v17, %v882_v19 }
 0x113   : > { %v756_v20 = vpop.f32.mrf.mxu0  ;;  %v884_v21 = vpop.f32.mrf.mxu1 }
 0x114   : > { %v1009_v30 = vmax.f32 %v755_v22, 0.0  ;;  %v1041_v31 = vmax.f32 %v883_v23, 0.0 }
 0x115   : > { %v757_v24 = vpop.f32.mrf.mxu0  ;;  %v885_v25 = vpop.f32.mrf.mxu1 }
 0x116   : > { %v758_v26 = vadd.f32 %v2818_v17, %v757_v24  ;;  %v886_v27 = vadd.f32 %v2818_v17, %v885_v25 }
 0x117   : > { %v759_v28 = vpop.f32.mrf.mxu0  ;;  %v887_v29 = vpop.f32.mrf.mxu1 }
 0x118   : > { %v1010_v32 = vmax.f32 %v758_v26, 0.0  ;;  %v1042_v33 = vmax.f32 %v886_v27, 0.0 }
 0x119   : > { %v762_v34 = vpop.f32.mrf.mxu0  ;;  %v890_v35 = vpop.f32.mrf.mxu1 }
 0x11a   : > { %v2102_v36 = vpack.c.bf16 %v1010_v32, %v1009_v30  ;;  %v2182_v37 = vpack.c.bf16 %v1042_v33, %v1041_v31  ;;  %v763_v40 = vadd.f32 %v2818_v17, %v762_v34  ;;  %v891_v41 = vadd.f32 %v2818_v17, %v890_v35 }
 0x11b   : > { %v764_v38 = vpop.f32.mrf.mxu0  ;;  %v892_v39 = vpop.f32.mrf.mxu1 }
 0x11c   : > { %2103 = vst [vmem:[%s2825_s12] sm:$0xff] %v2102_v36   ;;  %2274 = vst [vmem:[%s2825_s12 + $0x80] sm:$0xff] %v2182_v37   ;;  %v1011_v48 = vmax.f32 %v763_v40, 0.0  ;;  %v1043_v49 = vmax.f32 %v891_v41, 0.0 }
 0x11d   : > { %v765_v42 = vpop.f32.mrf.mxu0  ;;  %v893_v43 = vpop.f32.mrf.mxu1 }
 0x11e   : > { %v766_v44 = vadd.f32 %v2818_v17, %v765_v42  ;;  %v894_v45 = vadd.f32 %v2818_v17, %v893_v43 }
 0x11f   : > { %v767_v46 = vpop.f32.mrf.mxu0  ;;  %v895_v47 = vpop.f32.mrf.mxu1 }
 0x120   : > { %v1012_v50 = vmax.f32 %v766_v44, 0.0  ;;  %v1044_v51 = vmax.f32 %v894_v45, 0.0 }
 0x121   : > { %v770_v52 = vpop.f32.mrf.mxu0  ;;  %v898_v53 = vpop.f32.mrf.mxu1 }
 0x122   : > { %v2107_v54 = vpack.c.bf16 %v1012_v50, %v1011_v48  ;;  %v2187_v55 = vpack.c.bf16 %v1044_v51, %v1043_v49  ;;  %v771_v58 = vadd.f32 %v2818_v17, %v770_v52  ;;  %v899_v59 = vadd.f32 %v2818_v17, %v898_v53 }
 0x123   : > { %v772_v56 = vpop.f32.mrf.mxu0  ;;  %v900_v57 = vpop.f32.mrf.mxu1 }
 0x124   : > { %2259 = vst [vmem:[%s2825_s12 + $0x8] sm:$0xff] %v2107_v54   ;;  %2275 = vst [vmem:[%s2825_s12 + $0x88] sm:$0xff] %v2187_v55   ;;  %v1013_v2 = vmax.f32 %v771_v58, 0.0  ;;  %v1045_v3 = vmax.f32 %v899_v59, 0.0 }
 0x125   : > { %v773_v60 = vpop.f32.mrf.mxu0  ;;  %v901_v61 = vpop.f32.mrf.mxu1 }
 0x126   : > { %v774_v62 = vadd.f32 %v2818_v17, %v773_v60  ;;  %v902_v63 = vadd.f32 %v2818_v17, %v901_v61 }
 0x127   : > { %v775_v0 = vpop.f32.mrf.mxu0  ;;  %v903_v1 = vpop.f32.mrf.mxu1 }
 0x128   : > { %v1014_v4 = vmax.f32 %v774_v62, 0.0  ;;  %v1046_v5 = vmax.f32 %v902_v63, 0.0 }
 0x129   : > { %v778_v6 = vpop.f32.mrf.mxu0  ;;  %v906_v7 = vpop.f32.mrf.mxu1 }
 0x12a   : > { %v2112_v8 = vpack.c.bf16 %v1014_v4, %v1013_v2  ;;  %v2192_v9 = vpack.c.bf16 %v1046_v5, %v1045_v3  ;;  %v779_v12 = vadd.f32 %v2818_v17, %v778_v6  ;;  %v907_v13 = vadd.f32 %v2818_v17, %v906_v7 }
 0x12b   : > { %v780_v10 = vpop.f32.mrf.mxu0  ;;  %v908_v11 = vpop.f32.mrf.mxu1 }
 0x12c   : > { %2260 = vst [vmem:[%s2825_s12 + $0x10] sm:$0xff] %v2112_v8   ;;  %2276 = vst [vmem:[%s2825_s12 + $0x90] sm:$0xff] %v2192_v9   ;;  %v1015_v21 = vmax.f32 %v779_v12, 0.0  ;;  %v1047_v22 = vmax.f32 %v907_v13, 0.0 }
 0x12d   : > { %v781_v14 = vpop.f32.mrf.mxu0  ;;  %v909_v15 = vpop.f32.mrf.mxu1 }
 0x12e   : > { %v782_v16 = vadd.f32 %v2818_v17, %v781_v14  ;;  %v910_v18 = vadd.f32 %v2818_v17, %v909_v15 }
 0x12f   : > { %v783_v19 = vpop.f32.mrf.mxu0  ;;  %v911_v20 = vpop.f32.mrf.mxu1 }
 0x130   : > { %v1016_v23 = vmax.f32 %v782_v16, 0.0  ;;  %v1048_v24 = vmax.f32 %v910_v18, 0.0 }
 0x131   : > { %v786_v25 = vpop.f32.mrf.mxu0  ;;  %v914_v26 = vpop.f32.mrf.mxu1 }
 0x132   : > { %v2117_v27 = vpack.c.bf16 %v1016_v23, %v1015_v21  ;;  %v2197_v28 = vpack.c.bf16 %v1048_v24, %v1047_v22  ;;  %v787_v31 = vadd.f32 %v2818_v17, %v786_v25  ;;  %v915_v32 = vadd.f32 %v2818_v17, %v914_v26 }
 0x133   : > { %v788_v29 = vpop.f32.mrf.mxu0  ;;  %v916_v30 = vpop.f32.mrf.mxu1 }
 0x134   : > { %2261 = vst [vmem:[%s2825_s12 + $0x18] sm:$0xff] %v2117_v27   ;;  %2277 = vst [vmem:[%s2825_s12 + $0x98] sm:$0xff] %v2197_v28   ;;  %v1017_v39 = vmax.f32 %v787_v31, 0.0  ;;  %v1049_v40 = vmax.f32 %v915_v32, 0.0 }
 0x135   : > { %v789_v33 = vpop.f32.mrf.mxu0  ;;  %v917_v34 = vpop.f32.mrf.mxu1 }
 0x136   : > { %v790_v35 = vadd.f32 %v2818_v17, %v789_v33  ;;  %v918_v36 = vadd.f32 %v2818_v17, %v917_v34 }
 0x137   : > { %v791_v37 = vpop.f32.mrf.mxu0  ;;  %v919_v38 = vpop.f32.mrf.mxu1 }
 0x138   : > { %v1018_v41 = vmax.f32 %v790_v35, 0.0  ;;  %v1050_v42 = vmax.f32 %v918_v36, 0.0 }
 0x139   : > { %v794_v43 = vpop.f32.mrf.mxu0  ;;  %v922_v44 = vpop.f32.mrf.mxu1 }
 0x13a   : > { %v2122_v45 = vpack.c.bf16 %v1018_v41, %v1017_v39  ;;  %v2202_v46 = vpack.c.bf16 %v1050_v42, %v1049_v40  ;;  %v795_v49 = vadd.f32 %v2818_v17, %v794_v43  ;;  %v923_v50 = vadd.f32 %v2818_v17, %v922_v44 }
 0x13b   : > { %v796_v47 = vpop.f32.mrf.mxu0  ;;  %v924_v48 = vpop.f32.mrf.mxu1 }
 0x13c   : > { %2262 = vst [vmem:[%s2825_s12 + $0x20] sm:$0xff] %v2122_v45   ;;  %2278 = vst [vmem:[%s2825_s12 + $0xa0] sm:$0xff] %v2202_v46   ;;  %v1019_v57 = vmax.f32 %v795_v49, 0.0  ;;  %v1051_v58 = vmax.f32 %v923_v50, 0.0 }
 0x13d   : > { %v797_v51 = vpop.f32.mrf.mxu0  ;;  %v925_v52 = vpop.f32.mrf.mxu1 }
 0x13e   : > { %v798_v53 = vadd.f32 %v2818_v17, %v797_v51  ;;  %v926_v54 = vadd.f32 %v2818_v17, %v925_v52 }
 0x13f   : > { %v799_v55 = vpop.f32.mrf.mxu0  ;;  %v927_v56 = vpop.f32.mrf.mxu1 }
 0x140   : > { %v1020_v59 = vmax.f32 %v798_v53, 0.0  ;;  %v1052_v60 = vmax.f32 %v926_v54, 0.0 }
 0x141   : > { %v802_v61 = vpop.f32.mrf.mxu0  ;;  %v930_v62 = vpop.f32.mrf.mxu1 }
 0x142   : > { %v2127_v63 = vpack.c.bf16 %v1020_v59, %v1019_v57  ;;  %v2207_v0 = vpack.c.bf16 %v1052_v60, %v1051_v58  ;;  %v803_v3 = vadd.f32 %v2818_v17, %v802_v61  ;;  %v931_v4 = vadd.f32 %v2818_v17, %v930_v62 }
 0x143   : > { %v804_v1 = vpop.f32.mrf.mxu0  ;;  %v932_v2 = vpop.f32.mrf.mxu1 }
 0x144   : > { %2263 = vst [vmem:[%s2825_s12 + $0x28] sm:$0xff] %v2127_v63   ;;  %2279 = vst [vmem:[%s2825_s12 + $0xa8] sm:$0xff] %v2207_v0   ;;  %v1021_v11 = vmax.f32 %v803_v3, 0.0  ;;  %v1053_v12 = vmax.f32 %v931_v4, 0.0 }
 0x145   : > { %v805_v5 = vpop.f32.mrf.mxu0  ;;  %v933_v6 = vpop.f32.mrf.mxu1 }
 0x146   : > { %v806_v7 = vadd.f32 %v2818_v17, %v805_v5  ;;  %v934_v8 = vadd.f32 %v2818_v17, %v933_v6 }
 0x147   : > { %v807_v9 = vpop.f32.mrf.mxu0  ;;  %v935_v10 = vpop.f32.mrf.mxu1 }
 0x148   : > { %v1022_v13 = vmax.f32 %v806_v7, 0.0  ;;  %v1054_v14 = vmax.f32 %v934_v8, 0.0 }
 0x149   : > { %v810_v15 = vpop.f32.mrf.mxu0  ;;  %v938_v16 = vpop.f32.mrf.mxu1 }
 0x14a   : > { %v2132_v18 = vpack.c.bf16 %v1022_v13, %v1021_v11  ;;  %v2212_v19 = vpack.c.bf16 %v1054_v14, %v1053_v12  ;;  %v811_v22 = vadd.f32 %v2818_v17, %v810_v15  ;;  %v939_v23 = vadd.f32 %v2818_v17, %v938_v16 }
 0x14b   : > { %v812_v20 = vpop.f32.mrf.mxu0  ;;  %v940_v21 = vpop.f32.mrf.mxu1 }
 0x14c   : > { %2264 = vst [vmem:[%s2825_s12 + $0x30] sm:$0xff] %v2132_v18   ;;  %2280 = vst [vmem:[%s2825_s12 + $0xb0] sm:$0xff] %v2212_v19   ;;  %v1023_v30 = vmax.f32 %v811_v22, 0.0  ;;  %v1055_v31 = vmax.f32 %v939_v23, 0.0 }
 0x14d   : > { %v813_v24 = vpop.f32.mrf.mxu0  ;;  %v941_v25 = vpop.f32.mrf.mxu1 }
 0x14e   : > { %v814_v26 = vadd.f32 %v2818_v17, %v813_v24  ;;  %v942_v27 = vadd.f32 %v2818_v17, %v941_v25 }
 0x14f   : > { %v815_v28 = vpop.f32.mrf.mxu0  ;;  %v943_v29 = vpop.f32.mrf.mxu1 }
 0x150   : > { %v1024_v32 = vmax.f32 %v814_v26, 0.0  ;;  %v1056_v33 = vmax.f32 %v942_v27, 0.0 }
 0x151   : > { %v818_v34 = vpop.f32.mrf.mxu0  ;;  %v946_v35 = vpop.f32.mrf.mxu1 }
 0x152   : > { %v2137_v36 = vpack.c.bf16 %v1024_v32, %v1023_v30  ;;  %v2217_v37 = vpack.c.bf16 %v1056_v33, %v1055_v31  ;;  %v819_v40 = vadd.f32 %v2818_v17, %v818_v34  ;;  %v947_v41 = vadd.f32 %v2818_v17, %v946_v35 }
 0x153   : > { %v820_v38 = vpop.f32.mrf.mxu0  ;;  %v948_v39 = vpop.f32.mrf.mxu1 }
 0x154   : > { %2265 = vst [vmem:[%s2825_s12 + $0x38] sm:$0xff] %v2137_v36   ;;  %2281 = vst [vmem:[%s2825_s12 + $0xb8] sm:$0xff] %v2217_v37   ;;  %v1025_v48 = vmax.f32 %v819_v40, 0.0  ;;  %v1057_v49 = vmax.f32 %v947_v41, 0.0 }
 0x155   : > { %v821_v42 = vpop.f32.mrf.mxu0  ;;  %v949_v43 = vpop.f32.mrf.mxu1 }
 0x156   : > { %v822_v44 = vadd.f32 %v2818_v17, %v821_v42  ;;  %v950_v45 = vadd.f32 %v2818_v17, %v949_v43 }
 0x157   : > { %v823_v46 = vpop.f32.mrf.mxu0  ;;  %v951_v47 = vpop.f32.mrf.mxu1 }
 0x158   : > { %v1026_v50 = vmax.f32 %v822_v44, 0.0  ;;  %v1058_v51 = vmax.f32 %v950_v45, 0.0 }
 0x159   : > { %v826_v52 = vpop.f32.mrf.mxu0  ;;  %v954_v53 = vpop.f32.mrf.mxu1 }
 0x15a   : > { %v2142_v54 = vpack.c.bf16 %v1026_v50, %v1025_v48  ;;  %v2222_v55 = vpack.c.bf16 %v1058_v51, %v1057_v49  ;;  %v827_v58 = vadd.f32 %v2818_v17, %v826_v52  ;;  %v955_v59 = vadd.f32 %v2818_v17, %v954_v53 }
 0x15b   : > { %v828_v56 = vpop.f32.mrf.mxu0  ;;  %v956_v57 = vpop.f32.mrf.mxu1 }
 0x15c   : > { %2266 = vst [vmem:[%s2825_s12 + $0x40] sm:$0xff] %v2142_v54   ;;  %2282 = vst [vmem:[%s2825_s12 + $0xc0] sm:$0xff] %v2222_v55   ;;  %v1027_v2 = vmax.f32 %v827_v58, 0.0  ;;  %v1059_v3 = vmax.f32 %v955_v59, 0.0 }
 0x15d   : > { %v829_v60 = vpop.f32.mrf.mxu0  ;;  %v957_v61 = vpop.f32.mrf.mxu1 }
 0x15e   : > { %v830_v62 = vadd.f32 %v2818_v17, %v829_v60  ;;  %v958_v63 = vadd.f32 %v2818_v17, %v957_v61 }
 0x15f   : > { %v831_v0 = vpop.f32.mrf.mxu0  ;;  %v959_v1 = vpop.f32.mrf.mxu1 }
 0x160   : > { %v1028_v4 = vmax.f32 %v830_v62, 0.0  ;;  %v1060_v5 = vmax.f32 %v958_v63, 0.0 }
 0x161   : > { %v834_v6 = vpop.f32.mrf.mxu0  ;;  %v962_v7 = vpop.f32.mrf.mxu1 }
 0x162   : > { %v2147_v8 = vpack.c.bf16 %v1028_v4, %v1027_v2  ;;  %v2227_v9 = vpack.c.bf16 %v1060_v5, %v1059_v3  ;;  %v835_v12 = vadd.f32 %v2818_v17, %v834_v6  ;;  %v963_v13 = vadd.f32 %v2818_v17, %v962_v7 }
 0x163   : > { %v836_v10 = vpop.f32.mrf.mxu0  ;;  %v964_v11 = vpop.f32.mrf.mxu1 }
 0x164   : > { %2267 = vst [vmem:[%s2825_s12 + $0x48] sm:$0xff] %v2147_v8   ;;  %2283 = vst [vmem:[%s2825_s12 + $0xc8] sm:$0xff] %v2227_v9   ;;  %v1029_v21 = vmax.f32 %v835_v12, 0.0  ;;  %v1061_v22 = vmax.f32 %v963_v13, 0.0 }
 0x165   : > { %v837_v14 = vpop.f32.mrf.mxu0  ;;  %v965_v15 = vpop.f32.mrf.mxu1 }
 0x166   : > { %v838_v16 = vadd.f32 %v2818_v17, %v837_v14  ;;  %v966_v18 = vadd.f32 %v2818_v17, %v965_v15 }
 0x167   : > { %v839_v19 = vpop.f32.mrf.mxu0  ;;  %v967_v20 = vpop.f32.mrf.mxu1 }
 0x168   : > { %v1030_v23 = vmax.f32 %v838_v16, 0.0  ;;  %v1062_v24 = vmax.f32 %v966_v18, 0.0 }
 0x169   : > { %v842_v25 = vpop.f32.mrf.mxu0  ;;  %v970_v26 = vpop.f32.mrf.mxu1 }
 0x16a   : > { %v2152_v27 = vpack.c.bf16 %v1030_v23, %v1029_v21  ;;  %v2232_v28 = vpack.c.bf16 %v1062_v24, %v1061_v22  ;;  %v843_v31 = vadd.f32 %v2818_v17, %v842_v25  ;;  %v971_v32 = vadd.f32 %v2818_v17, %v970_v26 }
 0x16b   : > { %v844_v29 = vpop.f32.mrf.mxu0  ;;  %v972_v30 = vpop.f32.mrf.mxu1 }
 0x16c   : > { %2268 = vst [vmem:[%s2825_s12 + $0x50] sm:$0xff] %v2152_v27   ;;  %2284 = vst [vmem:[%s2825_s12 + $0xd0] sm:$0xff] %v2232_v28   ;;  %v1031_v39 = vmax.f32 %v843_v31, 0.0  ;;  %v1063_v40 = vmax.f32 %v971_v32, 0.0 }
 0x16d   : > { %v845_v33 = vpop.f32.mrf.mxu0  ;;  %v973_v34 = vpop.f32.mrf.mxu1 }
 0x16e   : > { %v846_v35 = vadd.f32 %v2818_v17, %v845_v33  ;;  %v974_v36 = vadd.f32 %v2818_v17, %v973_v34 }
 0x16f   : > { %v847_v37 = vpop.f32.mrf.mxu0  ;;  %v975_v38 = vpop.f32.mrf.mxu1 }
 0x170   : > { %v1032_v41 = vmax.f32 %v846_v35, 0.0  ;;  %v1064_v42 = vmax.f32 %v974_v36, 0.0 }
 0x171   : > { %v850_v43 = vpop.f32.mrf.mxu0  ;;  %v978_v44 = vpop.f32.mrf.mxu1 }
 0x172   : > { %v2157_v45 = vpack.c.bf16 %v1032_v41, %v1031_v39  ;;  %v2237_v46 = vpack.c.bf16 %v1064_v42, %v1063_v40  ;;  %v851_v49 = vadd.f32 %v2818_v17, %v850_v43  ;;  %v979_v50 = vadd.f32 %v2818_v17, %v978_v44 }
 0x173   : > { %v852_v47 = vpop.f32.mrf.mxu0  ;;  %v980_v48 = vpop.f32.mrf.mxu1 }
 0x174   : > { %2269 = vst [vmem:[%s2825_s12 + $0x58] sm:$0xff] %v2157_v45   ;;  %2285 = vst [vmem:[%s2825_s12 + $0xd8] sm:$0xff] %v2237_v46   ;;  %v1033_v57 = vmax.f32 %v851_v49, 0.0  ;;  %v1065_v58 = vmax.f32 %v979_v50, 0.0 }
 0x175   : > { %v853_v51 = vpop.f32.mrf.mxu0  ;;  %v981_v52 = vpop.f32.mrf.mxu1 }
 0x176   : > { %v854_v53 = vadd.f32 %v2818_v17, %v853_v51  ;;  %v982_v54 = vadd.f32 %v2818_v17, %v981_v52 }
 0x177   : > { %v855_v55 = vpop.f32.mrf.mxu0  ;;  %v983_v56 = vpop.f32.mrf.mxu1 }
 0x178   : > { %v1034_v59 = vmax.f32 %v854_v53, 0.0  ;;  %v1066_v60 = vmax.f32 %v982_v54, 0.0 }
 0x179   : > { %v858_v61 = vpop.f32.mrf.mxu0  ;;  %v986_v62 = vpop.f32.mrf.mxu1 }
 0x17a   : > { %v2162_v63 = vpack.c.bf16 %v1034_v59, %v1033_v57  ;;  %v2242_v0 = vpack.c.bf16 %v1066_v60, %v1065_v58  ;;  %v859_v3 = vadd.f32 %v2818_v17, %v858_v61  ;;  %v987_v4 = vadd.f32 %v2818_v17, %v986_v62 }
 0x17b   : > { %v860_v1 = vpop.f32.mrf.mxu0  ;;  %v988_v2 = vpop.f32.mrf.mxu1 }
 0x17c   : > { %2270 = vst [vmem:[%s2825_s12 + $0x60] sm:$0xff] %v2162_v63   ;;  %2286 = vst [vmem:[%s2825_s12 + $0xe0] sm:$0xff] %v2242_v0   ;;  %v1035_v11 = vmax.f32 %v859_v3, 0.0  ;;  %v1067_v12 = vmax.f32 %v987_v4, 0.0 }
 0x17d   : > { %v861_v5 = vpop.f32.mrf.mxu0  ;;  %v989_v6 = vpop.f32.mrf.mxu1 }
 0x17e   : > { %v862_v7 = vadd.f32 %v2818_v17, %v861_v5  ;;  %v990_v8 = vadd.f32 %v2818_v17, %v989_v6 }
 0x17f   : > { %v863_v9 = vpop.f32.mrf.mxu0  ;;  %v991_v10 = vpop.f32.mrf.mxu1 }
 0x180   : > { %v1036_v13 = vmax.f32 %v862_v7, 0.0  ;;  %v1068_v14 = vmax.f32 %v990_v8, 0.0 }
 0x181   : > { %v866_v15 = vpop.f32.mrf.mxu0  ;;  %v994_v16 = vpop.f32.mrf.mxu1 }
 0x182   : > { %v2167_v18 = vpack.c.bf16 %v1036_v13, %v1035_v11  ;;  %v2247_v19 = vpack.c.bf16 %v1068_v14, %v1067_v12  ;;  %v867_v22 = vadd.f32 %v2818_v17, %v866_v15  ;;  %v995_v23 = vadd.f32 %v2818_v17, %v994_v16 }
 0x183   : > { %v868_v20 = vpop.f32.mrf.mxu0  ;;  %v996_v21 = vpop.f32.mrf.mxu1 }
 0x184   : > { %2271 = vst [vmem:[%s2825_s12 + $0x68] sm:$0xff] %v2167_v18   ;;  %2287 = vst [vmem:[%s2825_s12 + $0xe8] sm:$0xff] %v2247_v19   ;;  %v1037_v30 = vmax.f32 %v867_v22, 0.0  ;;  %v1069_v31 = vmax.f32 %v995_v23, 0.0 }
 0x185   : > { %v869_v24 = vpop.f32.mrf.mxu0  ;;  %v997_v25 = vpop.f32.mrf.mxu1 }
 0x186   : > { %v870_v26 = vadd.f32 %v2818_v17, %v869_v24  ;;  %v998_v27 = vadd.f32 %v2818_v17, %v997_v25 }
 0x187   : > { %v871_v28 = vpop.f32.mrf.mxu0  ;;  %v999_v29 = vpop.f32.mrf.mxu1 }
 0x188   : > { %v1038_v32 = vmax.f32 %v870_v26, 0.0  ;;  %v1070_v33 = vmax.f32 %v998_v27, 0.0 }
 0x189   : > { %v874_v34 = vpop.f32.mrf.mxu0  ;;  %v1002_v35 = vpop.f32.mrf.mxu1 }
 0x18a   : > { %v2172_v36 = vpack.c.bf16 %v1038_v32, %v1037_v30  ;;  %v2252_v37 = vpack.c.bf16 %v1070_v33, %v1069_v31  ;;  %v875_v40 = vadd.f32 %v2818_v17, %v874_v34  ;;  %v1003_v41 = vadd.f32 %v2818_v17, %v1002_v35 }
 0x18b   : > { %v876_v38 = vpop.f32.mrf.mxu0  ;;  %v1004_v39 = vpop.f32.mrf.mxu1 }
 0x18c   : > { %2272 = vst [vmem:[%s2825_s12 + $0x70] sm:$0xff] %v2172_v36   ;;  %2288 = vst [vmem:[%s2825_s12 + $0xf0] sm:$0xff] %v2252_v37   ;;  %v1039_v48 = vmax.f32 %v875_v40, 0.0  ;;  %v1071_v49 = vmax.f32 %v1003_v41, 0.0 }
 0x18d   : > { %v877_v42 = vpop.f32.mrf.mxu0  ;;  %v1005_v43 = vpop.f32.mrf.mxu1 }
 0x18e   : > { %v878_v44 = vadd.f32 %v2818_v17, %v877_v42  ;;  %v1006_v45 = vadd.f32 %v2818_v17, %v1005_v43 }
 0x18f   : > { %v879_v46 = vpop.f32.mrf.mxu0  ;;  %v1007_v47 = vpop.f32.mrf.mxu1 }
 0x190   : > { %v1040_v50 = vmax.f32 %v878_v44, 0.0  ;;  %v1072_v51 = vmax.f32 %v1006_v45, 0.0  ;;  %1399 = sbr.rel (!%p2657_p4) target bundleno = 486 (0x1e6), region = 36 }
 0x192   : > { %v2177_v52 = vpack.c.bf16 %v1040_v50, %v1039_v48  ;;  %v2257_v53 = vpack.c.bf16 %v1072_v51, %v1071_v49 }
 0x194   : > { %2273 = vst [vmem:[%s2825_s12 + $0x78] sm:$0xff] %v2177_v52   ;;  %2289 = vst [vmem:[%s2825_s12 + $0xf8] sm:$0xff] %v2257_v53  }
 0x195   : > { %s3130_s9 = smov (!%p1402_p8, %s1401_s9), 64 }
 0x196   : > { %s2016_s28 = sshll.u32 %s3130_s9, 6 }
 0x197   : > { %p2019_p9 = scmp.eq.s32.totalorder %s2016_s28, 0 }
 0x198   : > { %s2932_s29 = sshrl.u32 (!%p2019_p9), %s3130_s9, 6 }
 0x199   : > { %1410 = sbr.rel (%p2019_p9) target bundleno = 486 (0x1e6), region = 40  ;;  %p2020_p10 = scmp.le.s32.totalorder (!%p2019_p9), %s2932_s29, 0 }
 0x19e   : > { %1817 = sbr.rel (%p2020_p10) target bundleno = 469 (0x1d5), region = 112  ;;  %s3123_s15 = smov (!%p2020_p10), %s2926_s27 }
 0x19f   : > { %s3124_s20 = smov (!%p2020_p10), %s2825_s12  ;;  %s2941_s23 = smov (!%p2020_p10), 0  }
 0x1a0   : > { %s2943_s30 = smov (!%p2020_p10), 0  }
 0x1a3 LB: >> { %v1427_v17 = vld [vmem:[%s2585_s20] sm:$0xf]  ;;  %v1429_v54 = vld [vmem:[%s2585_s20 + $0x4] sm:$0xf]  ;;  %v1431_v55 = vld [vmem:[%s2585_s20 + $0x8] sm:$0xf]  ;;  %s2593_s30 = sphi %s2943_s30, %s1421_s30   ;;  %s2589_s23 = sphi %s2941_s23, %s3125_s23   ;;  %s2585_s20 = sphi %s3124_s20, %s1560_s20   ;;  %s2581_s15 = sphi %s3123_s15, %s1561_s15  }
 0x1a4   : >> { %1428 = vst [vmem:[%s2581_s15] sm:$0xf] %v1427_v17  ;;  %1430 = vst [vmem:[%s2581_s15 + $0x4] sm:$0xf] %v1429_v54  ;;  %v1433_v56 = vld [vmem:[%s2585_s20 + $0xc] sm:$0xf]  ;;  %s1555_s4 = sadd.s32 1, %s2589_s23 }
 0x1a5   : >> { %1432 = vst [vmem:[%s2581_s15 + $0x8] sm:$0xf] %v1431_v55  ;;  %v1435_v57 = vld [vmem:[%s2585_s20 + $0x10] sm:$0xf]  ;;  %v1437_v58 = vld [vmem:[%s2585_s20 + $0x14] sm:$0xf]  ;;  %p1556_p11 = scmp.ge.s32.totalorder %s1555_s4, %s2932_s29 }
 0x1a6   : >> { %1434 = vst [vmem:[%s2581_s15 + $0xc] sm:$0xf] %v1433_v56  ;;  %1436 = vst [vmem:[%s2581_s15 + $0x10] sm:$0xf] %v1435_v57  ;;  %v1439_v59 = vld [vmem:[%s2585_s20 + $0x18] sm:$0xf] }
 0x1a7   : >> { %1438 = vst [vmem:[%s2581_s15 + $0x14] sm:$0xf] %v1437_v58  ;;  %v1441_v60 = vld [vmem:[%s2585_s20 + $0x1c] sm:$0xf]  ;;  %v1443_v61 = vld [vmem:[%s2585_s20 + $0x20] sm:$0xf] }
 0x1a8   : >> { %1440 = vst [vmem:[%s2581_s15 + $0x18] sm:$0xf] %v1439_v59  ;;  %1442 = vst [vmem:[%s2581_s15 + $0x1c] sm:$0xf] %v1441_v60  ;;  %v1445_v62 = vld [vmem:[%s2585_s20 + $0x24] sm:$0xf] }
 0x1a9   : >> { %1444 = vst [vmem:[%s2581_s15 + $0x20] sm:$0xf] %v1443_v61  ;;  %v1447_v63 = vld [vmem:[%s2585_s20 + $0x28] sm:$0xf]  ;;  %v1449_v0 = vld [vmem:[%s2585_s20 + $0x2c] sm:$0xf] }
 0x1aa   : >> { %1446 = vst [vmem:[%s2581_s15 + $0x24] sm:$0xf] %v1445_v62  ;;  %1448 = vst [vmem:[%s2581_s15 + $0x28] sm:$0xf] %v1447_v63  ;;  %v1451_v1 = vld [vmem:[%s2585_s20 + $0x30] sm:$0xf] }
 0x1ab   : >> { %1450 = vst [vmem:[%s2581_s15 + $0x2c] sm:$0xf] %v1449_v0  ;;  %v1453_v2 = vld [vmem:[%s2585_s20 + $0x34] sm:$0xf]  ;;  %v1455_v3 = vld [vmem:[%s2585_s20 + $0x38] sm:$0xf] }
 0x1ac   : >> { %1452 = vst [vmem:[%s2581_s15 + $0x30] sm:$0xf] %v1451_v1  ;;  %1454 = vst [vmem:[%s2581_s15 + $0x34] sm:$0xf] %v1453_v2  ;;  %v1457_v4 = vld [vmem:[%s2585_s20 + $0x3c] sm:$0xf] }
 0x1ad   : >> { %1456 = vst [vmem:[%s2581_s15 + $0x38] sm:$0xf] %v1455_v3  ;;  %v1459_v5 = vld [vmem:[%s2585_s20 + $0x40] sm:$0xf]  ;;  %v1461_v6 = vld [vmem:[%s2585_s20 + $0x44] sm:$0xf] }
 0x1ae   : >> { %1458 = vst [vmem:[%s2581_s15 + $0x3c] sm:$0xf] %v1457_v4  ;;  %1460 = vst [vmem:[%s2581_s15 + $0x40] sm:$0xf] %v1459_v5  ;;  %v1463_v7 = vld [vmem:[%s2585_s20 + $0x48] sm:$0xf] }
 0x1af   : >> { %1462 = vst [vmem:[%s2581_s15 + $0x44] sm:$0xf] %v1461_v6  ;;  %v1465_v8 = vld [vmem:[%s2585_s20 + $0x4c] sm:$0xf]  ;;  %v1467_v9 = vld [vmem:[%s2585_s20 + $0x50] sm:$0xf] }
 0x1b0   : >> { %1464 = vst [vmem:[%s2581_s15 + $0x48] sm:$0xf] %v1463_v7  ;;  %1466 = vst [vmem:[%s2581_s15 + $0x4c] sm:$0xf] %v1465_v8  ;;  %v1469_v10 = vld [vmem:[%s2585_s20 + $0x54] sm:$0xf] }
 0x1b1   : >> { %1468 = vst [vmem:[%s2581_s15 + $0x50] sm:$0xf] %v1467_v9  ;;  %v1471_v11 = vld [vmem:[%s2585_s20 + $0x58] sm:$0xf]  ;;  %v1473_v12 = vld [vmem:[%s2585_s20 + $0x5c] sm:$0xf] }
 0x1b2   : >> { %1470 = vst [vmem:[%s2581_s15 + $0x54] sm:$0xf] %v1469_v10  ;;  %1472 = vst [vmem:[%s2581_s15 + $0x58] sm:$0xf] %v1471_v11  ;;  %v1475_v13 = vld [vmem:[%s2585_s20 + $0x60] sm:$0xf] }
 0x1b3   : >> { %1474 = vst [vmem:[%s2581_s15 + $0x5c] sm:$0xf] %v1473_v12  ;;  %v1477_v14 = vld [vmem:[%s2585_s20 + $0x64] sm:$0xf]  ;;  %v1479_v15 = vld [vmem:[%s2585_s20 + $0x68] sm:$0xf] }
 0x1b4   : >> { %1476 = vst [vmem:[%s2581_s15 + $0x60] sm:$0xf] %v1475_v13  ;;  %1478 = vst [vmem:[%s2581_s15 + $0x64] sm:$0xf] %v1477_v14  ;;  %v1481_v16 = vld [vmem:[%s2585_s20 + $0x6c] sm:$0xf] }
 0x1b5   : >> { %1480 = vst [vmem:[%s2581_s15 + $0x68] sm:$0xf] %v1479_v15  ;;  %v1483_v18 = vld [vmem:[%s2585_s20 + $0x70] sm:$0xf]  ;;  %v1485_v19 = vld [vmem:[%s2585_s20 + $0x74] sm:$0xf] }
 0x1b6   : >> { %1482 = vst [vmem:[%s2581_s15 + $0x6c] sm:$0xf] %v1481_v16  ;;  %1484 = vst [vmem:[%s2581_s15 + $0x70] sm:$0xf] %v1483_v18  ;;  %v1487_v20 = vld [vmem:[%s2585_s20 + $0x78] sm:$0xf] }
 0x1b7   : >> { %1486 = vst [vmem:[%s2581_s15 + $0x74] sm:$0xf] %v1485_v19  ;;  %v1489_v21 = vld [vmem:[%s2585_s20 + $0x7c] sm:$0xf]  ;;  %v1491_v22 = vld [vmem:[%s2585_s20 + $0x80] sm:$0xf] }
 0x1b8   : >> { %1488 = vst [vmem:[%s2581_s15 + $0x78] sm:$0xf] %v1487_v20  ;;  %1490 = vst [vmem:[%s2581_s15 + $0x7c] sm:$0xf] %v1489_v21  ;;  %v1493_v23 = vld [vmem:[%s2585_s20 + $0x84] sm:$0xf] }
 0x1b9   : >> { %1492 = vst [vmem:[%s2581_s15 + $0x80] sm:$0xf] %v1491_v22  ;;  %v1495_v24 = vld [vmem:[%s2585_s20 + $0x88] sm:$0xf]  ;;  %v1497_v25 = vld [vmem:[%s2585_s20 + $0x8c] sm:$0xf] }
 0x1ba   : >> { %1494 = vst [vmem:[%s2581_s15 + $0x84] sm:$0xf] %v1493_v23  ;;  %1496 = vst [vmem:[%s2581_s15 + $0x88] sm:$0xf] %v1495_v24  ;;  %v1499_v26 = vld [vmem:[%s2585_s20 + $0x90] sm:$0xf] }
 0x1bb   : >> { %1498 = vst [vmem:[%s2581_s15 + $0x8c] sm:$0xf] %v1497_v25  ;;  %v1501_v27 = vld [vmem:[%s2585_s20 + $0x94] sm:$0xf]  ;;  %v1503_v28 = vld [vmem:[%s2585_s20 + $0x98] sm:$0xf] }
 0x1bc   : >> { %1500 = vst [vmem:[%s2581_s15 + $0x90] sm:$0xf] %v1499_v26  ;;  %1502 = vst [vmem:[%s2581_s15 + $0x94] sm:$0xf] %v1501_v27  ;;  %v1505_v29 = vld [vmem:[%s2585_s20 + $0x9c] sm:$0xf] }
 0x1bd   : >> { %1504 = vst [vmem:[%s2581_s15 + $0x98] sm:$0xf] %v1503_v28  ;;  %v1507_v30 = vld [vmem:[%s2585_s20 + $0xa0] sm:$0xf]  ;;  %v1509_v31 = vld [vmem:[%s2585_s20 + $0xa4] sm:$0xf] }
 0x1be   : >> { %1506 = vst [vmem:[%s2581_s15 + $0x9c] sm:$0xf] %v1505_v29  ;;  %1508 = vst [vmem:[%s2581_s15 + $0xa0] sm:$0xf] %v1507_v30  ;;  %v1511_v32 = vld [vmem:[%s2585_s20 + $0xa8] sm:$0xf] }
 0x1bf   : >> { %1510 = vst [vmem:[%s2581_s15 + $0xa4] sm:$0xf] %v1509_v31  ;;  %v1513_v33 = vld [vmem:[%s2585_s20 + $0xac] sm:$0xf]  ;;  %v1515_v34 = vld [vmem:[%s2585_s20 + $0xb0] sm:$0xf] }
 0x1c0   : >> { %1512 = vst [vmem:[%s2581_s15 + $0xa8] sm:$0xf] %v1511_v32  ;;  %1514 = vst [vmem:[%s2581_s15 + $0xac] sm:$0xf] %v1513_v33  ;;  %v1517_v35 = vld [vmem:[%s2585_s20 + $0xb4] sm:$0xf] }
 0x1c1   : >> { %1516 = vst [vmem:[%s2581_s15 + $0xb0] sm:$0xf] %v1515_v34  ;;  %v1519_v36 = vld [vmem:[%s2585_s20 + $0xb8] sm:$0xf]  ;;  %v1521_v37 = vld [vmem:[%s2585_s20 + $0xbc] sm:$0xf] }
 0x1c2   : >> { %1518 = vst [vmem:[%s2581_s15 + $0xb4] sm:$0xf] %v1517_v35  ;;  %1520 = vst [vmem:[%s2581_s15 + $0xb8] sm:$0xf] %v1519_v36  ;;  %v1523_v38 = vld [vmem:[%s2585_s20 + $0xc0] sm:$0xf] }
 0x1c3   : >> { %1522 = vst [vmem:[%s2581_s15 + $0xbc] sm:$0xf] %v1521_v37  ;;  %v1525_v39 = vld [vmem:[%s2585_s20 + $0xc4] sm:$0xf]  ;;  %v1527_v40 = vld [vmem:[%s2585_s20 + $0xc8] sm:$0xf] }
 0x1c4   : >> { %1524 = vst [vmem:[%s2581_s15 + $0xc0] sm:$0xf] %v1523_v38  ;;  %1526 = vst [vmem:[%s2581_s15 + $0xc4] sm:$0xf] %v1525_v39  ;;  %v1529_v41 = vld [vmem:[%s2585_s20 + $0xcc] sm:$0xf] }
 0x1c5   : >> { %1528 = vst [vmem:[%s2581_s15 + $0xc8] sm:$0xf] %v1527_v40  ;;  %v1531_v42 = vld [vmem:[%s2585_s20 + $0xd0] sm:$0xf]  ;;  %v1533_v43 = vld [vmem:[%s2585_s20 + $0xd4] sm:$0xf] }
 0x1c6   : >> { %1530 = vst [vmem:[%s2581_s15 + $0xcc] sm:$0xf] %v1529_v41  ;;  %1532 = vst [vmem:[%s2581_s15 + $0xd0] sm:$0xf] %v1531_v42  ;;  %v1535_v44 = vld [vmem:[%s2585_s20 + $0xd8] sm:$0xf] }
 0x1c7   : >> { %1534 = vst [vmem:[%s2581_s15 + $0xd4] sm:$0xf] %v1533_v43  ;;  %v1537_v45 = vld [vmem:[%s2585_s20 + $0xdc] sm:$0xf]  ;;  %v1539_v46 = vld [vmem:[%s2585_s20 + $0xe0] sm:$0xf] }
 0x1c8   : >> { %1536 = vst [vmem:[%s2581_s15 + $0xd8] sm:$0xf] %v1535_v44  ;;  %1538 = vst [vmem:[%s2581_s15 + $0xdc] sm:$0xf] %v1537_v45  ;;  %v1541_v47 = vld [vmem:[%s2585_s20 + $0xe4] sm:$0xf] }
 0x1c9   : >> { %1540 = vst [vmem:[%s2581_s15 + $0xe0] sm:$0xf] %v1539_v46  ;;  %v1543_v48 = vld [vmem:[%s2585_s20 + $0xe8] sm:$0xf]  ;;  %v1545_v49 = vld [vmem:[%s2585_s20 + $0xec] sm:$0xf] }
 0x1ca   : >> { %1542 = vst [vmem:[%s2581_s15 + $0xe4] sm:$0xf] %v1541_v47  ;;  %1544 = vst [vmem:[%s2581_s15 + $0xe8] sm:$0xf] %v1543_v48  ;;  %v1547_v50 = vld [vmem:[%s2585_s20 + $0xf0] sm:$0xf] }
 0x1cb   : >> { %1546 = vst [vmem:[%s2581_s15 + $0xec] sm:$0xf] %v1545_v49  ;;  %v1549_v51 = vld [vmem:[%s2585_s20 + $0xf4] sm:$0xf]  ;;  %v1551_v52 = vld [vmem:[%s2585_s20 + $0xf8] sm:$0xf] }
 0x1cc   : >> { %1548 = vst [vmem:[%s2581_s15 + $0xf0] sm:$0xf] %v1547_v50  ;;  %1550 = vst [vmem:[%s2581_s15 + $0xf4] sm:$0xf] %v1549_v51  ;;  %v1553_v53 = vld [vmem:[%s2585_s20 + $0xfc] sm:$0xf] }
 0x1cd   : >> { %1552 = vst [vmem:[%s2581_s15 + $0xf8] sm:$0xf] %v1551_v52  ;;  %1554 = vst [vmem:[%s2581_s15 + $0xfc] sm:$0xf] %v1553_v53  ;;  %s3132_s4 = smov (%p1556_p11, %s1555_s4), 0  ;;  %s1421_s30 = sadd.s32 1, %s2593_s30  }
 0x1ce   : >> { %s2021_s5 = sshll.u32 %s3132_s4, 8  ;;  %p1420_p12 = scmp.ge.s32.totalorder %s1421_s30, %s2932_s29 }
 0x1cf   : >> { %s1560_s20 = scalar_lea.vmem %s2825_s12, %s2021_s5 [#allocation2]   ;;  %s1561_s15 = scalar_lea.vmem %s2926_s27, %s2021_s5  }
 0x1d0   : >> { %s3125_s23 = smov %s3132_s4  ;;  %1423 = sbr.rel (!%p1420_p12) target bundleno = 419 (0x1a3), region = 118 }
 0x1d5 PF: > { %s3100_s6 = sand.u32 63, %s3130_s9   ;;  %s2097_s7 = sshll.u32 %s2932_s29, 8 }
 0x1d6   : > { %s1566_s8 = scalar_lea.vmem %s2825_s12, %s2097_s7 [#allocation2]   ;;  %s1568_s10 = scalar_lea.vmem %s2926_s27, %s2097_s7  }
 0x1d7   : > { %p2026_p13 = scmp.le.s32.totalorder %s3100_s6, 0 }
 0x1d8   : > { %s2595_s11 = smov (!%p2026_p13), %s1568_s10   ;;  %s2599_s14 = smov (!%p2026_p13), %s1566_s8  }
 0x1d9   : > { %1831 = sbr.rel (%p2026_p13) target bundleno = 486 (0x1e6), region = 123  ;;  %s2603_s17 = smov (!%p2026_p13), 0  }
 0x1da   : > { %s2607_s18 = smov (!%p2026_p13), 0  }
 0x1de LB: >> { %v1578_v17 = vld [vmem:[%s2601_s14] sm:$0xf]  ;;  %s1580_s21 = sadd.s32 1, %s2605_s17  ;;  %s1572_s18 = sadd.s32 1, %s2609_s18   ;;  %s2609_s18 = sphi %s2607_s18, %s1572_s18   ;;  %s2605_s17 = sphi %s2603_s17, %s2604_s17   ;;  %s2601_s14 = sphi %s2599_s14, %s1585_s14   ;;  %s2597_s11 = sphi %s2595_s11, %s1586_s11  }
 0x1df   : >> { %1579 = vst [vmem:[%s2597_s11] sm:$0xf] %v1578_v17  ;;  %p1581_p0 = scmp.ge.s32.totalorder %s1580_s21, %s3100_s6  ;;  %p1571_p1 = scmp.ge.s32.totalorder %s1572_s18, %s3100_s6 }
 0x1e1   : >> { %s3134_s21 = smov (%p1581_p0, %s1580_s21), 0  ;;  %1574 = sbr.rel (!%p1571_p1) target bundleno = 478 (0x1de), region = 129 }
 0x1e2   : >> { %s2027_s22 = sshll.u32 %s3134_s21, 2  ;;  %s2604_s17 = smov %s3134_s21  }
 0x1e3   : >> { %s1585_s14 = scalar_lea.vmem %s1566_s8, %s2027_s22 [#allocation2]   ;;  %s1586_s11 = scalar_lea.vmem %s1568_s10, %s2027_s22  }
 0x1e6 PF: > { %p10_p2 = scmp.ge.s32.totalorder %s2647_s16, 4   ;;  %s3126_s12 = smov %s2573_s13 }
 0x1e7   : > { %s3127_s13 = smov %s2655_s19  ;;  %s3128_s14 = smov %s2647_s16 }
 0x1e8   :  { %12 = sbr.rel (!%p10_p2) target bundleno = 2 (0x2), region = 140 }

// kernel: cnn_forward.6
= control target key start
LH: loop header
LB: loop body
LE: loop exit
PB: predicated region body
PF: predicated region fallthrough
CT: control target
= control target key end

     0   :  { %s1801_s0 = inlined_call_operand.vmem [shape: bf16[162,512], index: 0, kind: input, shape index: {}]   ;;  %s1802_s1 = inlined_call_operand.vmem [shape: bf16[512,128], index: 1, kind: input, shape index: {}]   ;;  %s1803_s2 = inlined_call_operand.vmem [shape: f32[1,128], index: 2, kind: input, shape index: {}]   ;;  %s1804_s3 = inlined_call_operand.vmem [shape: bf16[162,128], index: 3, kind: output, shape index: {}]  }
   0x1   :  { %v1395_v0 = vld [vmem:[%s1802_s1 + $0x78] sm:$0xff]   ;;  %v1399_v4 = vld [vmem:[%s1802_s1 + $0x70] sm:$0xff]   ;;  %v1403_v8 = vld [vmem:[%s1802_s1 + $0x68] sm:$0xff]  }
   0x2   :  { %v1396_v1 = vld [vmem:[%s1802_s1 + $0xf8] sm:$0xff]   ;;  %1231 = vmatprep.subr.bf16.mxu0 %v1395_v0  ;;  %v1400_v5 = vld [vmem:[%s1802_s1 + $0xf0] sm:$0xff]   ;;  %v1404_v9 = vld [vmem:[%s1802_s1 + $0xe8] sm:$0xff]  }
   0x3   :  { %v1397_v2 = vld [vmem:[%s1802_s1 + $0x38] sm:$0xff]   ;;  %1313 = vmatprep.subr.bf16.mxu1 %v1396_v1  ;;  %v1401_v6 = vld [vmem:[%s1802_s1 + $0x30] sm:$0xff]   ;;  %v1405_v10 = vld [vmem:[%s1802_s1 + $0x28] sm:$0xff]  }
   0x4   :  { %v1398_v3 = vld [vmem:[%s1802_s1 + $0xb8] sm:$0xff]   ;;  %1232 = vmatpush3.bf16.msra.mxu0 %v1397_v2  ;;  %v1402_v7 = vld [vmem:[%s1802_s1 + $0xb0] sm:$0xff]   ;;  %v1406_v11 = vld [vmem:[%s1802_s1 + $0xa8] sm:$0xff]  }
   0x5   :  { %1314 = vmatpush3.bf16.msra.mxu1 %v1398_v3  ;;  %1233 = vmatprep.subr.bf16.mxu0 %v1399_v4  ;;  %v1407_v12 = vld [vmem:[%s1802_s1 + $0x60] sm:$0xff]   ;;  %v1411_v16 = vld [vmem:[%s1802_s1 + $0x58] sm:$0xff]   ;;  %v1415_v20 = vld [vmem:[%s1802_s1 + $0x50] sm:$0xff]  }
   0x6   :  { %1315 = vmatprep.subr.bf16.mxu1 %v1400_v5  ;;  %v1408_v13 = vld [vmem:[%s1802_s1 + $0xe0] sm:$0xff]   ;;  %v1412_v17 = vld [vmem:[%s1802_s1 + $0xd8] sm:$0xff]   ;;  %v1416_v21 = vld [vmem:[%s1802_s1 + $0xd0] sm:$0xff]  }
   0x7   :  { %v1409_v14 = vld [vmem:[%s1802_s1 + $0x20] sm:$0xff]   ;;  %v1413_v18 = vld [vmem:[%s1802_s1 + $0x18] sm:$0xff]   ;;  %v1417_v22 = vld [vmem:[%s1802_s1 + $0x10] sm:$0xff]  }
   0x8   :  { %1234 = vmatpush3.bf16.msra.mxu0 %v1401_v6  ;;  %v1410_v15 = vld [vmem:[%s1802_s1 + $0xa0] sm:$0xff]   ;;  %v1414_v19 = vld [vmem:[%s1802_s1 + $0x98] sm:$0xff]   ;;  %v1418_v23 = vld [vmem:[%s1802_s1 + $0x90] sm:$0xff]  }
   0x9   :  { %1316 = vmatpush3.bf16.msra.mxu1 %v1402_v7  ;;  %1235 = vmatprep.subr.bf16.mxu0 %v1403_v8  ;;  %v1419_v24 = vld [vmem:[%s1802_s1 + $0x48] sm:$0xff]   ;;  %v1423_v28 = vld [vmem:[%s1802_s1 + $0x40] sm:$0xff]  }
   0xa   :  { %1317 = vmatprep.subr.bf16.mxu1 %v1404_v9  ;;  %v1420_v25 = vld [vmem:[%s1802_s1 + $0xc8] sm:$0xff]   ;;  %v1424_v29 = vld [vmem:[%s1802_s1 + $0xc0] sm:$0xff]  }
   0xb   :  { %v1421_v26 = vld [vmem:[%s1802_s1 + $0x8] sm:$0xff]   ;;  %v1425_v30 = vld [vmem:[%s1802_s1] sm:$0xff]  }
   0xc   :  { %1236 = vmatpush3.bf16.msra.mxu0 %v1405_v10  ;;  %v1422_v27 = vld [vmem:[%s1802_s1 + $0x88] sm:$0xff]   ;;  %v1426_v31 = vld [vmem:[%s1802_s1 + $0x80] sm:$0xff]  }
   0xd   :  { %1318 = vmatpush3.bf16.msra.mxu1 %v1406_v11  ;;  %1237 = vmatprep.subr.bf16.mxu0 %v1407_v12  ;;  %v1427_v32 = vld [vmem:[%s1801_s0] ss:$16 sps:$4 sm:$0xff]   ;;  %v1429_v33 = vld [vmem:[%s1801_s0 + $0x4] ss:$16 sps:$4 sm:$0xff]   ;;  %v1430_v34 = vld [vmem:[%s1801_s0 + $0x8] ss:$16 sps:$4 sm:$0xff]  }
   0xe   :  { %1319 = vmatprep.subr.bf16.mxu1 %v1408_v13  ;;  %v1432_v35 = vld [vmem:[%s1801_s0 + $0xc] ss:$16 sps:$4 sm:$0xff]   ;;  %574 = vmatprep.mubr.bf16.mxu0 %v1429_v33  ;;  %v1433_v36 = vld [vmem:[%s1801_s0 + $0x24] ss:$16 sps:$4 sm:$0xff]   ;;  %v1437_v38 = vld [vmem:[%s1801_s0 + $0x20] ss:$16 sps:$4 sm:$0xff]  }
   0xf   :  { %695 = vmatprep.mubr.bf16.mxu1 %v1432_v35  ;;  %v1435_v37 = vld [vmem:[%s1801_s0 + $0x2c] ss:$16 sps:$4 sm:$0xff]   ;;  %v1438_v39 = vld [vmem:[%s1801_s0 + $0x28] ss:$16 sps:$4 sm:$0xff]   ;;  %v1439_v40 = vld [vmem:[%s1801_s0 + $0x44] ss:$16 sps:$4 sm:$0xff]  }
  0x10   :  { %1238 = vmatpush3.bf16.msra.mxu0 %v1409_v14  ;;  %v1441_v41 = vld [vmem:[%s1801_s0 + $0x4c] ss:$16 sps:$4 sm:$0xff]   ;;  %v1443_v42 = vld [vmem:[%s1801_s0 + $0x40] ss:$16 sps:$4 sm:$0xff]   ;;  %v1444_v43 = vld [vmem:[%s1801_s0 + $0x48] ss:$16 sps:$4 sm:$0xff]  }
  0x11   :  { %1320 = vmatpush3.bf16.msra.mxu1 %v1410_v15  ;;  %1239 = vmatprep.subr.bf16.mxu0 %v1411_v16  ;;  %v1445_v44 = vld [vmem:[%s1801_s0 + $0x64] ss:$16 sps:$4 sm:$0xff]   ;;  %v1447_v45 = vld [vmem:[%s1801_s0 + $0x6c] ss:$16 sps:$4 sm:$0xff]   ;;  %v1449_v46 = vld [vmem:[%s1801_s0 + $0x60] ss:$16 sps:$4 sm:$0xff]  }
  0x12   :  { %1321 = vmatprep.subr.bf16.mxu1 %v1412_v17  ;;  %v1450_v47 = vld [vmem:[%s1801_s0 + $0x68] ss:$16 sps:$4 sm:$0xff]   ;;  %v1451_v48 = vld [vmem:[%s1801_s0 + $0x84] ss:$16 sps:$4 sm:$0xff]   ;;  %v1453_v49 = vld [vmem:[%s1801_s0 + $0x8c] ss:$16 sps:$4 sm:$0xff]  }
  0x13   :  { %v1455_v50 = vld [vmem:[%s1801_s0 + $0x80] ss:$16 sps:$4 sm:$0xff]   ;;  %v1456_v51 = vld [vmem:[%s1801_s0 + $0x88] ss:$16 sps:$4 sm:$0xff]   ;;  %v1457_v52 = vld [vmem:[%s1801_s0 + $0xa4] ss:$16 sps:$4 sm:$0xff]  }
  0x14   :  { %1240 = vmatpush3.bf16.msra.mxu0 %v1413_v18  ;;  %v1459_v53 = vld [vmem:[%s1801_s0 + $0xac] ss:$16 sps:$4 sm:$0xff]   ;;  %v1461_v54 = vld [vmem:[%s1801_s0 + $0xa0] ss:$16 sps:$4 sm:$0xff]   ;;  %v1462_v55 = vld [vmem:[%s1801_s0 + $0xa8] ss:$16 sps:$4 sm:$0xff]  }
  0x15   :  { %1322 = vmatpush3.bf16.msra.mxu1 %v1414_v19  ;;  %1241 = vmatprep.subr.bf16.mxu0 %v1415_v20  ;;  %v1463_v56 = vld [vmem:[%s1801_s0 + $0xc4] ss:$16 sps:$4 sm:$0xff]   ;;  %v1465_v57 = vld [vmem:[%s1801_s0 + $0xcc] ss:$16 sps:$4 sm:$0xff]   ;;  %v1467_v58 = vld [vmem:[%s1801_s0 + $0xc0] ss:$16 sps:$4 sm:$0xff]  }
  0x16   :  { %1323 = vmatprep.subr.bf16.mxu1 %v1416_v21  ;;  %v1468_v59 = vld [vmem:[%s1801_s0 + $0xc8] ss:$16 sps:$4 sm:$0xff]   ;;  %v1469_v60 = vld [vmem:[%s1801_s0 + $0xe4] ss:$16 sps:$4 sm:$0xff]   ;;  %v1471_v61 = vld [vmem:[%s1801_s0 + $0xec] ss:$16 sps:$4 sm:$0xff]  }
  0x17   :  { %v1473_v62 = vld [vmem:[%s1801_s0 + $0xe0] ss:$16 sps:$4 sm:$0xff]   ;;  %v1474_v63 = vld [vmem:[%s1801_s0 + $0xe8] ss:$16 sps:$4 sm:$0xff]   ;;  %v1475_v0 = vld [vmem:[%s1801_s0 + $0x104] ss:$16 sps:$4 sm:$0xff]  }
  0x18   :  { %1242 = vmatpush3.bf16.msra.mxu0 %v1417_v22  ;;  %v1477_v1 = vld [vmem:[%s1801_s0 + $0x10c] ss:$16 sps:$4 sm:$0xff]   ;;  %v1479_v2 = vld [vmem:[%s1801_s0 + $0x100] ss:$16 sps:$4 sm:$0xff]   ;;  %v1480_v3 = vld [vmem:[%s1801_s0 + $0x108] ss:$16 sps:$4 sm:$0xff]  }
  0x19   :  { %1324 = vmatpush3.bf16.msra.mxu1 %v1418_v23  ;;  %1243 = vmatprep.subr.bf16.mxu0 %v1419_v24  ;;  %v1481_v4 = vld [vmem:[%s1801_s0 + $0x124] ss:$16 sps:$4 sm:$0xff]   ;;  %v1483_v5 = vld [vmem:[%s1801_s0 + $0x12c] ss:$16 sps:$4 sm:$0xff]   ;;  %v1485_v6 = vld [vmem:[%s1801_s0 + $0x120] ss:$16 sps:$4 sm:$0xff]  }
  0x1a   :  { %1325 = vmatprep.subr.bf16.mxu1 %v1420_v25  ;;  %v1486_v7 = vld [vmem:[%s1801_s0 + $0x128] ss:$16 sps:$4 sm:$0xff]   ;;  %v1487_v8 = vld [vmem:[%s1801_s0 + $0x144] ss:$16 sps:$4 sm:$0xff]   ;;  %v1489_v9 = vld [vmem:[%s1801_s0 + $0x14c] ss:$16 sps:$4 sm:$0xff]  }
  0x1b   :  { %v1491_v10 = vld [vmem:[%s1801_s0 + $0x140] ss:$16 sps:$4 sm:$0xff]   ;;  %v1492_v11 = vld [vmem:[%s1801_s0 + $0x148] ss:$16 sps:$4 sm:$0xff]  }
  0x1c   :  { %1244 = vmatpush3.bf16.msra.mxu0 %v1421_v26  ;;  %v1744_v14 = vld [vmem:[%s1803_s2] ss:$0 sm:$0xff] }
  0x1d   :  { %1326 = vmatpush3.bf16.msra.mxu1 %v1422_v27  ;;  %1245 = vmatprep.subr.bf16.mxu0 %v1423_v28 }
  0x1e   :  { %1327 = vmatprep.subr.bf16.mxu1 %v1424_v29 }
  0x20   :  { %1246 = vmatpush3.bf16.msra.mxu0 %v1425_v30 }
  0x21   :  { %1328 = vmatpush3.bf16.msra.mxu1 %v1426_v31 }
  0x23   :  { %575 = vmatmul.mubr.bf16.vlgmr.msra.gmra.mxu0 %v1427_v32 }
  0x24   :  { %696 = vmatmul.mubr.bf16.vlgmr.msra.gmra.mxu1 %v1430_v34  ;;  %582 = vmatprep.mubr.bf16.mxu0 %v1433_v36 }
  0x25   :  { %703 = vmatprep.mubr.bf16.mxu1 %v1435_v37 }
  0x2b   :  { %583 = vmatmul.mubr.bf16.gmra.mxu0 %v1437_v38 }
  0x2c   :  { %704 = vmatmul.mubr.bf16.gmra.mxu1 %v1438_v39  ;;  %590 = vmatprep.mubr.bf16.mxu0 %v1439_v40 }
  0x2d   :  { %711 = vmatprep.mubr.bf16.mxu1 %v1441_v41 }
  0x33   :  { %591 = vmatmul.mubr.bf16.gmra.mxu0 %v1443_v42 }
  0x34   :  { %712 = vmatmul.mubr.bf16.gmra.mxu1 %v1444_v43  ;;  %598 = vmatprep.mubr.bf16.mxu0 %v1445_v44 }
  0x35   :  { %719 = vmatprep.mubr.bf16.mxu1 %v1447_v45 }
  0x3b   :  { %599 = vmatmul.mubr.bf16.gmra.mxu0 %v1449_v46 }
  0x3c   :  { %720 = vmatmul.mubr.bf16.gmra.mxu1 %v1450_v47  ;;  %606 = vmatprep.mubr.bf16.mxu0 %v1451_v48 }
  0x3d   :  { %727 = vmatprep.mubr.bf16.mxu1 %v1453_v49 }
  0x43   :  { %607 = vmatmul.mubr.bf16.gmra.mxu0 %v1455_v50 }
  0x44   :  { %728 = vmatmul.mubr.bf16.gmra.mxu1 %v1456_v51  ;;  %614 = vmatprep.mubr.bf16.mxu0 %v1457_v52 }
  0x45   :  { %735 = vmatprep.mubr.bf16.mxu1 %v1459_v53 }
  0x4b   :  { %615 = vmatmul.mubr.bf16.gmra.mxu0 %v1461_v54 }
  0x4c   :  { %736 = vmatmul.mubr.bf16.gmra.mxu1 %v1462_v55  ;;  %622 = vmatprep.mubr.bf16.mxu0 %v1463_v56 }
  0x4d   :  { %743 = vmatprep.mubr.bf16.mxu1 %v1465_v57 }
  0x53   :  { %623 = vmatmul.mubr.bf16.gmra.mxu0 %v1467_v58 }
  0x54   :  { %744 = vmatmul.mubr.bf16.gmra.mxu1 %v1468_v59  ;;  %630 = vmatprep.mubr.bf16.mxu0 %v1469_v60 }
  0x55   :  { %751 = vmatprep.mubr.bf16.mxu1 %v1471_v61 }
  0x5b   :  { %631 = vmatmul.mubr.bf16.gmra.mxu0 %v1473_v62 }
  0x5c   :  { %752 = vmatmul.mubr.bf16.gmra.mxu1 %v1474_v63  ;;  %638 = vmatprep.mubr.bf16.mxu0 %v1475_v0 }
  0x5d   :  { %759 = vmatprep.mubr.bf16.mxu1 %v1477_v1 }
  0x63   :  { %639 = vmatmul.mubr.bf16.gmra.mxu0 %v1479_v2 }
  0x64   :  { %760 = vmatmul.mubr.bf16.gmra.mxu1 %v1480_v3  ;;  %646 = vmatprep.mubr.bf16.mxu0 %v1481_v4 }
  0x65   :  { %767 = vmatprep.mubr.bf16.mxu1 %v1483_v5 }
  0x6b   :  { %647 = vmatmul.mubr.bf16.gmra.mxu0 %v1485_v6 }
  0x6c   :  { %768 = vmatmul.mubr.bf16.gmra.mxu1 %v1486_v7  ;;  %654 = vmatprep.mubr.bf16.mxu0 %v1487_v8 }
  0x6d   :  { %775 = vmatprep.mubr.bf16.mxu1 %v1489_v9 }
  0x73   :  { %655 = vmatmul.mubr.bf16.gmra.mxu0 %v1491_v10 }
  0x74   :  { %776 = vmatmul.mubr.bf16.gmra.mxu1 %v1492_v11 }
  0xe3   :  { %v1247_v12 = vpop.f32.mrf.mxu0 }
  0xe4   :  { %v1329_v13 = vpop.f32.mrf.mxu1 }
  0xe5   :  { %v1248_v15 = vpop.f32.mrf.mxu0 }
  0xe6   :  { %v1249_v16 = vadd.f32 %v1248_v15, %v1247_v12  ;;  %v1330_v17 = vpop.f32.mrf.mxu1 }
  0xe7   :  { %v1250_v18 = vpop.f32.mrf.mxu0  ;;  %v1331_v22 = vadd.f32 %v1330_v17, %v1329_v13 }
  0xe8   :  { %v577_v19 = vadd.f32 %v1249_v16, %v1744_v14  ;;  %v1332_v20 = vpop.f32.mrf.mxu1 }
  0xe9   :  { %v1251_v21 = vpop.f32.mrf.mxu0 }
  0xea   :  { %v1252_v23 = vadd.f32 %v1251_v21, %v1250_v18  ;;  %v1333_v24 = vpop.f32.mrf.mxu1  ;;  %v698_v26 = vadd.f32 %v1331_v22, %v577_v19 }
  0xeb   :  { %v1253_v25 = vpop.f32.mrf.mxu0  ;;  %v1334_v28 = vadd.f32 %v1333_v24, %v1332_v20 }
  0xec   :  { %v580_v27 = vadd.f32 %v1252_v23, %v1744_v14  ;;  %v1335_v29 = vpop.f32.mrf.mxu1  ;;  %v784_v35 = vmax.f32 %v698_v26, 0.0 }
  0xed   :  { %v1254_v30 = vpop.f32.mrf.mxu0 }
  0xee   :  { %v701_v31 = vadd.f32 %v1334_v28, %v580_v27  ;;  %v1255_v32 = vadd.f32 %v1254_v30, %v1253_v25  ;;  %v1336_v33 = vpop.f32.mrf.mxu1 }
  0xef   :  { %v1256_v34 = vpop.f32.mrf.mxu0  ;;  %v1337_v41 = vadd.f32 %v1336_v33, %v1335_v29 }
  0xf0   :  { %v785_v36 = vmax.f32 %v701_v31, 0.0  ;;  %v585_v37 = vadd.f32 %v1255_v32, %v1744_v14  ;;  %v1338_v38 = vpop.f32.mrf.mxu1 }
  0xf1   :  { %v1257_v39 = vpop.f32.mrf.mxu0 }
  0xf2   :  { %v1169_v40 = vpack.c.bf16 %v785_v36, %v784_v35  ;;  %v1258_v42 = vadd.f32 %v1257_v39, %v1256_v34  ;;  %v1339_v43 = vpop.f32.mrf.mxu1  ;;  %v706_v45 = vadd.f32 %v1337_v41, %v585_v37 }
  0xf3   :  { %v1259_v44 = vpop.f32.mrf.mxu0  ;;  %v1340_v47 = vadd.f32 %v1339_v43, %v1338_v38 }
  0xf4   :  { %1170 = vst [vmem:[#allocation2] sm:$0xff] %v1169_v40   ;;  %v588_v46 = vadd.f32 %v1258_v42, %v1744_v14  ;;  %v1341_v48 = vpop.f32.mrf.mxu1  ;;  %v786_v54 = vmax.f32 %v706_v45, 0.0 }
  0xf5   :  { %v1260_v49 = vpop.f32.mrf.mxu0 }
  0xf6   :  { %v709_v50 = vadd.f32 %v1340_v47, %v588_v46  ;;  %v1261_v51 = vadd.f32 %v1260_v49, %v1259_v44  ;;  %v1342_v52 = vpop.f32.mrf.mxu1 }
  0xf7   :  { %v1262_v53 = vpop.f32.mrf.mxu0  ;;  %v1343_v60 = vadd.f32 %v1342_v52, %v1341_v48 }
  0xf8   :  { %v787_v55 = vmax.f32 %v709_v50, 0.0  ;;  %v593_v56 = vadd.f32 %v1261_v51, %v1744_v14  ;;  %v1344_v57 = vpop.f32.mrf.mxu1 }
  0xf9   :  { %v1263_v58 = vpop.f32.mrf.mxu0 }
  0xfa   :  { %v1174_v59 = vpack.c.bf16 %v787_v55, %v786_v54  ;;  %v1264_v61 = vadd.f32 %v1263_v58, %v1262_v53  ;;  %v1345_v62 = vpop.f32.mrf.mxu1  ;;  %v714_v1 = vadd.f32 %v1343_v60, %v593_v56 }
  0xfb   :  { %v934_v63 = vld [vmem:[#allocation2] sm:$0xff]   ;;  %v1265_v0 = vpop.f32.mrf.mxu0  ;;  %v1346_v3 = vadd.f32 %v1345_v62, %v1344_v57 }
  0xfc   :  { %935 = vst [vmem:[%s1804_s3] sm:$0xff] %v934_v63   ;;  %1221 = vst [vmem:[#allocation2 + $0x8] sm:$0xff] %v1174_v59   ;;  %v596_v2 = vadd.f32 %v1264_v61, %v1744_v14  ;;  %v1347_v4 = vpop.f32.mrf.mxu1  ;;  %v788_v10 = vmax.f32 %v714_v1, 0.0 }
  0xfd   :  { %v1266_v5 = vpop.f32.mrf.mxu0 }
  0xfe   :  { %v717_v6 = vadd.f32 %v1346_v3, %v596_v2  ;;  %v1267_v7 = vadd.f32 %v1266_v5, %v1265_v0  ;;  %v1348_v8 = vpop.f32.mrf.mxu1 }
  0xff   :  { %v1268_v9 = vpop.f32.mrf.mxu0  ;;  %v1349_v17 = vadd.f32 %v1348_v8, %v1347_v4 }
 0x100   :  { %v789_v11 = vmax.f32 %v717_v6, 0.0  ;;  %v601_v12 = vadd.f32 %v1267_v7, %v1744_v14  ;;  %v1350_v13 = vpop.f32.mrf.mxu1 }
 0x101   :  { %v1269_v15 = vpop.f32.mrf.mxu0 }
 0x102   :  { %v1179_v16 = vpack.c.bf16 %v789_v11, %v788_v10  ;;  %v1270_v18 = vadd.f32 %v1269_v15, %v1268_v9  ;;  %v1351_v19 = vpop.f32.mrf.mxu1  ;;  %v722_v22 = vadd.f32 %v1349_v17, %v601_v12 }
 0x103   :  { %v938_v20 = vld [vmem:[#allocation2 + $0x8] sm:$0xff]   ;;  %v1271_v21 = vpop.f32.mrf.mxu0  ;;  %v1352_v24 = vadd.f32 %v1351_v19, %v1350_v13 }
 0x104   :  { %939 = vst [vmem:[%s1804_s3 + $0x8] sm:$0xff] %v938_v20   ;;  %1222 = vst [vmem:[#allocation2 + $0x10] sm:$0xff] %v1179_v16   ;;  %v604_v23 = vadd.f32 %v1270_v18, %v1744_v14  ;;  %v1353_v25 = vpop.f32.mrf.mxu1  ;;  %v790_v31 = vmax.f32 %v722_v22, 0.0 }
 0x105   :  { %v1272_v26 = vpop.f32.mrf.mxu0 }
 0x106   :  { %v725_v27 = vadd.f32 %v1352_v24, %v604_v23  ;;  %v1273_v28 = vadd.f32 %v1272_v26, %v1271_v21  ;;  %v1354_v29 = vpop.f32.mrf.mxu1 }
 0x107   :  { %v1274_v30 = vpop.f32.mrf.mxu0  ;;  %v1355_v37 = vadd.f32 %v1354_v29, %v1353_v25 }
 0x108   :  { %v791_v32 = vmax.f32 %v725_v27, 0.0  ;;  %v609_v33 = vadd.f32 %v1273_v28, %v1744_v14  ;;  %v1356_v34 = vpop.f32.mrf.mxu1 }
 0x109   :  { %v1275_v35 = vpop.f32.mrf.mxu0 }
 0x10a   :  { %v1184_v36 = vpack.c.bf16 %v791_v32, %v790_v31  ;;  %v1276_v38 = vadd.f32 %v1275_v35, %v1274_v30  ;;  %v1357_v39 = vpop.f32.mrf.mxu1  ;;  %v730_v42 = vadd.f32 %v1355_v37, %v609_v33 }
 0x10b   :  { %v942_v40 = vld [vmem:[#allocation2 + $0x10] sm:$0xff]   ;;  %v1277_v41 = vpop.f32.mrf.mxu0  ;;  %v1358_v44 = vadd.f32 %v1357_v39, %v1356_v34 }
 0x10c   :  { %943 = vst [vmem:[%s1804_s3 + $0x10] sm:$0xff] %v942_v40   ;;  %1223 = vst [vmem:[#allocation2 + $0x18] sm:$0xff] %v1184_v36   ;;  %v612_v43 = vadd.f32 %v1276_v38, %v1744_v14  ;;  %v1359_v45 = vpop.f32.mrf.mxu1  ;;  %v792_v51 = vmax.f32 %v730_v42, 0.0 }
 0x10d   :  { %v1278_v46 = vpop.f32.mrf.mxu0 }
 0x10e   :  { %v733_v47 = vadd.f32 %v1358_v44, %v612_v43  ;;  %v1279_v48 = vadd.f32 %v1278_v46, %v1277_v41  ;;  %v1360_v49 = vpop.f32.mrf.mxu1 }
 0x10f   :  { %v1280_v50 = vpop.f32.mrf.mxu0  ;;  %v1361_v57 = vadd.f32 %v1360_v49, %v1359_v45 }
 0x110   :  { %v793_v52 = vmax.f32 %v733_v47, 0.0  ;;  %v617_v53 = vadd.f32 %v1279_v48, %v1744_v14  ;;  %v1362_v54 = vpop.f32.mrf.mxu1 }
 0x111   :  { %v1281_v55 = vpop.f32.mrf.mxu0 }
 0x112   :  { %v1189_v56 = vpack.c.bf16 %v793_v52, %v792_v51  ;;  %v1282_v58 = vadd.f32 %v1281_v55, %v1280_v50  ;;  %v1363_v59 = vpop.f32.mrf.mxu1  ;;  %v738_v62 = vadd.f32 %v1361_v57, %v617_v53 }
 0x113   :  { %v946_v60 = vld [vmem:[#allocation2 + $0x18] sm:$0xff]   ;;  %v1283_v61 = vpop.f32.mrf.mxu0  ;;  %v1364_v0 = vadd.f32 %v1363_v59, %v1362_v54 }
 0x114   :  { %947 = vst [vmem:[%s1804_s3 + $0x18] sm:$0xff] %v946_v60   ;;  %1224 = vst [vmem:[#allocation2 + $0x20] sm:$0xff] %v1189_v56   ;;  %v620_v63 = vadd.f32 %v1282_v58, %v1744_v14  ;;  %v1365_v1 = vpop.f32.mrf.mxu1  ;;  %v794_v7 = vmax.f32 %v738_v62, 0.0 }
 0x115   :  { %v1284_v2 = vpop.f32.mrf.mxu0 }
 0x116   :  { %v741_v3 = vadd.f32 %v1364_v0, %v620_v63  ;;  %v1285_v4 = vadd.f32 %v1284_v2, %v1283_v61  ;;  %v1366_v5 = vpop.f32.mrf.mxu1 }
 0x117   :  { %v1286_v6 = vpop.f32.mrf.mxu0  ;;  %v1367_v13 = vadd.f32 %v1366_v5, %v1365_v1 }
 0x118   :  { %v795_v8 = vmax.f32 %v741_v3, 0.0  ;;  %v625_v9 = vadd.f32 %v1285_v4, %v1744_v14  ;;  %v1368_v10 = vpop.f32.mrf.mxu1 }
 0x119   :  { %v1287_v11 = vpop.f32.mrf.mxu0 }
 0x11a   :  { %v1194_v12 = vpack.c.bf16 %v795_v8, %v794_v7  ;;  %v1288_v15 = vadd.f32 %v1287_v11, %v1286_v6  ;;  %v1369_v16 = vpop.f32.mrf.mxu1  ;;  %v746_v19 = vadd.f32 %v1367_v13, %v625_v9 }
 0x11b   :  { %v950_v17 = vld [vmem:[#allocation2 + $0x20] sm:$0xff]   ;;  %v1289_v18 = vpop.f32.mrf.mxu0  ;;  %v1370_v21 = vadd.f32 %v1369_v16, %v1368_v10 }
 0x11c   :  { %951 = vst [vmem:[%s1804_s3 + $0x20] sm:$0xff] %v950_v17   ;;  %1225 = vst [vmem:[#allocation2 + $0x28] sm:$0xff] %v1194_v12   ;;  %v628_v20 = vadd.f32 %v1288_v15, %v1744_v14  ;;  %v1371_v22 = vpop.f32.mrf.mxu1  ;;  %v796_v28 = vmax.f32 %v746_v19, 0.0 }
 0x11d   :  { %v1290_v23 = vpop.f32.mrf.mxu0 }
 0x11e   :  { %v749_v24 = vadd.f32 %v1370_v21, %v628_v20  ;;  %v1291_v25 = vadd.f32 %v1290_v23, %v1289_v18  ;;  %v1372_v26 = vpop.f32.mrf.mxu1 }
 0x11f   :  { %v1292_v27 = vpop.f32.mrf.mxu0  ;;  %v1373_v34 = vadd.f32 %v1372_v26, %v1371_v22 }
 0x120   :  { %v797_v29 = vmax.f32 %v749_v24, 0.0  ;;  %v633_v30 = vadd.f32 %v1291_v25, %v1744_v14  ;;  %v1374_v31 = vpop.f32.mrf.mxu1 }
 0x121   :  { %v1293_v32 = vpop.f32.mrf.mxu0 }
 0x122   :  { %v1199_v33 = vpack.c.bf16 %v797_v29, %v796_v28  ;;  %v1294_v35 = vadd.f32 %v1293_v32, %v1292_v27  ;;  %v1375_v36 = vpop.f32.mrf.mxu1  ;;  %v754_v39 = vadd.f32 %v1373_v34, %v633_v30 }
 0x123   :  { %v954_v37 = vld [vmem:[#allocation2 + $0x28] sm:$0xff]   ;;  %v1295_v38 = vpop.f32.mrf.mxu0  ;;  %v1376_v41 = vadd.f32 %v1375_v36, %v1374_v31 }
 0x124   :  { %955 = vst [vmem:[%s1804_s3 + $0x28] sm:$0xff] %v954_v37   ;;  %1226 = vst [vmem:[#allocation2 + $0x30] sm:$0xff] %v1199_v33   ;;  %v636_v40 = vadd.f32 %v1294_v35, %v1744_v14  ;;  %v1377_v42 = vpop.f32.mrf.mxu1  ;;  %v798_v48 = vmax.f32 %v754_v39, 0.0 }
 0x125   :  { %v1296_v43 = vpop.f32.mrf.mxu0 }
 0x126   :  { %v757_v44 = vadd.f32 %v1376_v41, %v636_v40  ;;  %v1297_v45 = vadd.f32 %v1296_v43, %v1295_v38  ;;  %v1378_v46 = vpop.f32.mrf.mxu1 }
 0x127   :  { %v1298_v47 = vpop.f32.mrf.mxu0  ;;  %v1379_v54 = vadd.f32 %v1378_v46, %v1377_v42 }
 0x128   :  { %v799_v49 = vmax.f32 %v757_v44, 0.0  ;;  %v641_v50 = vadd.f32 %v1297_v45, %v1744_v14  ;;  %v1380_v51 = vpop.f32.mrf.mxu1 }
 0x129   :  { %v1299_v52 = vpop.f32.mrf.mxu0 }
 0x12a   :  { %v1204_v53 = vpack.c.bf16 %v799_v49, %v798_v48  ;;  %v1300_v55 = vadd.f32 %v1299_v52, %v1298_v47  ;;  %v1381_v56 = vpop.f32.mrf.mxu1  ;;  %v762_v59 = vadd.f32 %v1379_v54, %v641_v50 }
 0x12b   :  { %v958_v57 = vld [vmem:[#allocation2 + $0x30] sm:$0xff]   ;;  %v1301_v58 = vpop.f32.mrf.mxu0  ;;  %v1382_v61 = vadd.f32 %v1381_v56, %v1380_v51 }
 0x12c   :  { %959 = vst [vmem:[%s1804_s3 + $0x30] sm:$0xff] %v958_v57   ;;  %1227 = vst [vmem:[#allocation2 + $0x38] sm:$0xff] %v1204_v53   ;;  %v644_v60 = vadd.f32 %v1300_v55, %v1744_v14  ;;  %v1383_v62 = vpop.f32.mrf.mxu1  ;;  %v800_v4 = vmax.f32 %v762_v59, 0.0 }
 0x12d   :  { %v1302_v63 = vpop.f32.mrf.mxu0 }
 0x12e   :  { %v765_v0 = vadd.f32 %v1382_v61, %v644_v60  ;;  %v1303_v1 = vadd.f32 %v1302_v63, %v1301_v58  ;;  %v1384_v2 = vpop.f32.mrf.mxu1 }
 0x12f   :  { %v1304_v3 = vpop.f32.mrf.mxu0  ;;  %v1385_v10 = vadd.f32 %v1384_v2, %v1383_v62 }
 0x130   :  { %v801_v5 = vmax.f32 %v765_v0, 0.0  ;;  %v649_v6 = vadd.f32 %v1303_v1, %v1744_v14  ;;  %v1386_v7 = vpop.f32.mrf.mxu1 }
 0x131   :  { %v1305_v8 = vpop.f32.mrf.mxu0 }
 0x132   :  { %v1209_v9 = vpack.c.bf16 %v801_v5, %v800_v4  ;;  %v1306_v11 = vadd.f32 %v1305_v8, %v1304_v3  ;;  %v1387_v12 = vpop.f32.mrf.mxu1  ;;  %v770_v16 = vadd.f32 %v1385_v10, %v649_v6 }
 0x133   :  { %v962_v13 = vld [vmem:[#allocation2 + $0x38] sm:$0xff]   ;;  %v1307_v15 = vpop.f32.mrf.mxu0  ;;  %v1388_v18 = vadd.f32 %v1387_v12, %v1386_v7 }
 0x134   :  { %963 = vst [vmem:[%s1804_s3 + $0x38] sm:$0xff] %v962_v13   ;;  %1228 = vst [vmem:[#allocation2 + $0x40] sm:$0xff] %v1209_v9   ;;  %v652_v17 = vadd.f32 %v1306_v11, %v1744_v14  ;;  %v1389_v19 = vpop.f32.mrf.mxu1  ;;  %v802_v25 = vmax.f32 %v770_v16, 0.0 }
 0x135   :  { %v1308_v20 = vpop.f32.mrf.mxu0 }
 0x136   :  { %v773_v21 = vadd.f32 %v1388_v18, %v652_v17  ;;  %v1309_v22 = vadd.f32 %v1308_v20, %v1307_v15  ;;  %v1390_v23 = vpop.f32.mrf.mxu1 }
 0x137   :  { %v1310_v24 = vpop.f32.mrf.mxu0  ;;  %v1391_v31 = vadd.f32 %v1390_v23, %v1389_v19 }
 0x138   :  { %v803_v26 = vmax.f32 %v773_v21, 0.0  ;;  %v657_v27 = vadd.f32 %v1309_v22, %v1744_v14  ;;  %v1392_v28 = vpop.f32.mrf.mxu1 }
 0x139   :  { %v1311_v29 = vpop.f32.mrf.mxu0 }
 0x13a   :  { %v1214_v30 = vpack.c.bf16 %v803_v26, %v802_v25  ;;  %v1312_v32 = vadd.f32 %v1311_v29, %v1310_v24  ;;  %v1393_v33 = vpop.f32.mrf.mxu1  ;;  %v778_v35 = vadd.f32 %v1391_v31, %v657_v27 }
 0x13b   :  { %v966_v34 = vld [vmem:[#allocation2 + $0x40] sm:$0xff]   ;;  %v1394_v37 = vadd.f32 %v1393_v33, %v1392_v28 }
 0x13c   :  { %967 = vst [vmem:[%s1804_s3 + $0x40] sm:$0xff] %v966_v34   ;;  %1229 = vst [vmem:[#allocation2 + $0x48] sm:$0xff] %v1214_v30   ;;  %v660_v36 = vadd.f32 %v1312_v32, %v1744_v14  ;;  %v804_v39 = vmax.f32 %v778_v35, 0.0 }
 0x13e   :  { %v781_v38 = vadd.f32 %v1394_v37, %v660_v36 }
 0x140   :  { %v805_v40 = vmax.f32 %v781_v38, 0.0 }
 0x142   :  { %v1219_v41 = vpack.c.bf16 %v805_v40, %v804_v39 }
 0x143   :  { %v970_v42 = vld [vmem:[#allocation2 + $0x48] sm:$0xff]  }
 0x144   :  { %971 = vst [vmem:[%s1804_s3 + $0x48] sm:$0xff] %v970_v42   ;;  %1230 = vst [vmem:[#allocation2 + $0x50] sm:$0xff] %v1219_v41  }
 0x14b   :  { %v974_v43 = vld [vmem:[#allocation2 + $0x50] sm:$0xf] }
 0x14c   :  { %975 = vst [vmem:[%s1804_s3 + $0x50] sm:$0xf] %v974_v43 }

// kernel: cnn_forward.7
= control target key start
LH: loop header
LB: loop body
LE: loop exit
PB: predicated region body
PF: predicated region fallthrough
CT: control target
= control target key end

     0   :  { %v1403_v34 = vmov 0.0   ;;  %vm1404_vm0 = vmmov 0   ;;  %vm527_vm1 = vcmask 523264   ;;  %s1782_s0 = inlined_call_operand.vmem [shape: bf16[98,576], index: 0, kind: input, shape index: {}]   ;;  %s1783_s1 = inlined_call_operand.vmem [shape: bf16[576,128], index: 1, kind: input, shape index: {}]   ;;  %s1784_s2 = inlined_call_operand.vmem [shape: f32[1,128], index: 2, kind: input, shape index: {}]   ;;  %s1785_s3 = inlined_call_operand.vmem [shape: bf16[98,128], index: 3, kind: output, shape index: {}]  }
   0x1   :  { %v1318_v0 = vld [vmem:[%s1783_s1 + $0x78] sm:$0xff]   ;;  %v1322_v4 = vld [vmem:[%s1783_s1 + $0x70] sm:$0xff]   ;;  %v1326_v8 = vld [vmem:[%s1783_s1 + $0x68] sm:$0xff]  }
   0x2   :  { %v1319_v1 = vld [vmem:[%s1783_s1 + $0xf8] sm:$0xff]   ;;  %1145 = vmatprep.subr.bf16.mxu0 %v1318_v0  ;;  %v1323_v5 = vld [vmem:[%s1783_s1 + $0xf0] sm:$0xff]   ;;  %v1327_v9 = vld [vmem:[%s1783_s1 + $0xe8] sm:$0xff]  }
   0x3   :  { %v1320_v2 = vld [vmem:[%s1783_s1 + $0x38] sm:$0xff]   ;;  %1203 = vmatprep.subr.bf16.mxu1 %v1319_v1  ;;  %v1324_v6 = vld [vmem:[%s1783_s1 + $0x30] sm:$0xff]   ;;  %v1328_v10 = vld [vmem:[%s1783_s1 + $0x28] sm:$0xff]  }
   0x4   :  { %v1321_v3 = vld [vmem:[%s1783_s1 + $0xb8] sm:$0xff]   ;;  %1146 = vmatpush3.bf16.msra.mxu0 %v1320_v2  ;;  %v1325_v7 = vld [vmem:[%s1783_s1 + $0xb0] sm:$0xff]   ;;  %v1329_v11 = vld [vmem:[%s1783_s1 + $0xa8] sm:$0xff]  }
   0x5   :  { %1204 = vmatpush3.bf16.msra.mxu1 %v1321_v3  ;;  %1147 = vmatprep.subr.bf16.mxu0 %v1322_v4  ;;  %v1330_v12 = vld [vmem:[%s1783_s1 + $0x60] sm:$0xff]   ;;  %v1334_v16 = vld [vmem:[%s1783_s1 + $0x58] sm:$0xff]   ;;  %v1338_v20 = vld [vmem:[%s1783_s1 + $0x50] sm:$0xff]  }
   0x6   :  { %1205 = vmatprep.subr.bf16.mxu1 %v1323_v5  ;;  %v1331_v13 = vld [vmem:[%s1783_s1 + $0xe0] sm:$0xff]   ;;  %v1335_v17 = vld [vmem:[%s1783_s1 + $0xd8] sm:$0xff]   ;;  %v1339_v21 = vld [vmem:[%s1783_s1 + $0xd0] sm:$0xff]  }
   0x7   :  { %v1332_v14 = vld [vmem:[%s1783_s1 + $0x20] sm:$0xff]   ;;  %v1336_v18 = vld [vmem:[%s1783_s1 + $0x18] sm:$0xff]   ;;  %v1340_v22 = vld [vmem:[%s1783_s1 + $0x10] sm:$0xff]  }
   0x8   :  { %1148 = vmatpush3.bf16.msra.mxu0 %v1324_v6  ;;  %v1333_v15 = vld [vmem:[%s1783_s1 + $0xa0] sm:$0xff]   ;;  %v1337_v19 = vld [vmem:[%s1783_s1 + $0x98] sm:$0xff]   ;;  %v1341_v23 = vld [vmem:[%s1783_s1 + $0x90] sm:$0xff]  }
   0x9   :  { %1206 = vmatpush3.bf16.msra.mxu1 %v1325_v7  ;;  %1149 = vmatprep.subr.bf16.mxu0 %v1326_v8  ;;  %v1342_v24 = vld [vmem:[%s1783_s1 + $0x48] sm:$0xff]   ;;  %v1346_v28 = vld [vmem:[%s1783_s1 + $0x40] sm:$0xff]   ;;  %v1356_v37 = vld [vmem:[%s1783_s1 + $0x118] sm:$0xff]  }
   0xa   :  { %1207 = vmatprep.subr.bf16.mxu1 %v1327_v9  ;;  %v1343_v25 = vld [vmem:[%s1783_s1 + $0xc8] sm:$0xff]   ;;  %v1347_v29 = vld [vmem:[%s1783_s1 + $0xc0] sm:$0xff]   ;;  %v1367_v43 = vld [vmem:[%s1783_s1 + $0x110] sm:$0xff]  }
   0xb   :  { %v1344_v26 = vld [vmem:[%s1783_s1 + $0x8] sm:$0xff]   ;;  %v1348_v30 = vld [vmem:[%s1783_s1] sm:$0xff]   ;;  %v1365_v44 = vld [vmem:[%s1782_s0 + $0x5c] ss:$20 sps:$4 sm:$0xff]  }
   0xc   :  { %1150 = vmatpush3.bf16.msra.mxu0 %v1328_v10  ;;  %v1345_v27 = vld [vmem:[%s1783_s1 + $0x88] sm:$0xff]   ;;  %v1349_v31 = vld [vmem:[%s1783_s1 + $0x80] sm:$0xff]   ;;  %v1370_v48 = vld [vmem:[%s1782_s0 + $0x7c] ss:$20 sps:$4 sm:$0xff]  }
   0xd   :  { %1208 = vmatpush3.bf16.msra.mxu1 %v1329_v11  ;;  %1151 = vmatprep.subr.bf16.mxu0 %v1330_v12  ;;  %v1350_v32 = vld [vmem:[%s1782_s0] ss:$20 sps:$4 sm:$0xff]   ;;  %v1352_v33 = vld [vmem:[%s1782_s0 + $0x4] ss:$20 sps:$4 sm:$0xff]   ;;  %v1353_v35 = vld [vmem:[%s1782_s0 + $0x8] ss:$20 sps:$4 sm:$0xff]  }
   0xe   :  { %1209 = vmatprep.subr.bf16.mxu1 %v1331_v13  ;;  %v1355_v36 = vld [vmem:[%s1782_s0 + $0xc] ss:$20 sps:$4 sm:$0xff]   ;;  %581 = vmatprep.mubr.bf16.mxu0 %v1352_v33  ;;  %v1359_v39 = vld [vmem:[%s1782_s0 + $0x34] ss:$20 sps:$4 sm:$0xff]   ;;  %v1362_v41 = vld [vmem:[%s1782_s0 + $0x30] ss:$20 sps:$4 sm:$0xff]  }
   0xf   :  { %670 = vmatprep.mubr.bf16.mxu1 %v1355_v36  ;;  %v1357_v38 = vld [vmem:[%s1782_s0 + $0x2c] ss:$20 sps:$4 sm:$0xff]   ;;  %v1361_v40 = vld [vmem:[%s1782_s0 + $0x28] ss:$20 sps:$4 sm:$0xff]   ;;  %v1368_v46 = vld [vmem:[%s1782_s0 + $0x50] ss:$20 sps:$4 sm:$0xff]  }
  0x10   :  { %1152 = vmatpush3.bf16.msra.mxu0 %v1332_v14  ;;  %v1363_v42 = vld [vmem:[%s1782_s0 + $0x54] ss:$20 sps:$4 sm:$0xff]   ;;  %v1369_v47 = vld [vmem:[%s1782_s0 + $0x58] ss:$20 sps:$4 sm:$0xff]   ;;  %v1389_v50 = vld [vmem:[%s1783_s1 + $0x100] sm:$0xff]  }
  0x11   :  { %1210 = vmatpush3.bf16.msra.mxu1 %v1333_v15  ;;  %1153 = vmatprep.subr.bf16.mxu0 %v1334_v16  ;;  %v1376_v45 = vld [vmem:[%s1783_s1 + $0x108] sm:$0xff]   ;;  %v1372_v49 = vld [vmem:[%s1782_s0 + $0x84] ss:$20 sps:$4 sm:$0xff]   ;;  %v1375_v52 = vld [vmem:[%s1782_s0 + $0x80] ss:$20 sps:$4 sm:$0xff]  }
  0x12   :  { %1211 = vmatprep.subr.bf16.mxu1 %v1335_v17  ;;  %v1374_v51 = vld [vmem:[%s1782_s0 + $0x78] ss:$20 sps:$4 sm:$0xff]   ;;  %v1381_v55 = vld [vmem:[%s1782_s0 + $0xa0] ss:$20 sps:$4 sm:$0xff]   ;;  %v1382_v56 = vld [vmem:[%s1782_s0 + $0xa8] ss:$20 sps:$4 sm:$0xff]  }
  0x13   :  { %v1377_v53 = vld [vmem:[%s1782_s0 + $0xa4] ss:$20 sps:$4 sm:$0xff]   ;;  %v1379_v54 = vld [vmem:[%s1782_s0 + $0xac] ss:$20 sps:$4 sm:$0xff]   ;;  %v1385_v58 = vld [vmem:[%s1782_s0 + $0xd4] ss:$20 sps:$4 sm:$0xff]  }
  0x14   :  { %1154 = vmatpush3.bf16.msra.mxu0 %v1336_v18  ;;  %v1383_v57 = vld [vmem:[%s1782_s0 + $0xcc] ss:$20 sps:$4 sm:$0xff]   ;;  %v1387_v59 = vld [vmem:[%s1782_s0 + $0xc8] ss:$20 sps:$4 sm:$0xff]   ;;  %v1388_v60 = vld [vmem:[%s1782_s0 + $0xd0] ss:$20 sps:$4 sm:$0xff]  }
  0x15   :  { %1212 = vmatpush3.bf16.msra.mxu1 %v1337_v19  ;;  %1155 = vmatprep.subr.bf16.mxu0 %v1338_v20  ;;  %v1390_v61 = vld [vmem:[%s1782_s0 + $0xf4] ss:$20 sps:$4 sm:$0xff]   ;;  %v1392_v62 = vld [vmem:[%s1782_s0 + $0xfc] ss:$20 sps:$4 sm:$0xff]   ;;  %v1395_v0 = vld [vmem:[%s1782_s0 + $0xf8] ss:$20 sps:$4 sm:$0xff]  }
  0x16   :  { %1213 = vmatprep.subr.bf16.mxu1 %v1339_v21  ;;  %v1394_v63 = vld [vmem:[%s1782_s0 + $0xf0] ss:$20 sps:$4 sm:$0xff]   ;;  %v1398_v3 = vld [vmem:[%s1782_s0 + $0x38] ss:$20 sps:$4 sm:$0xff]   ;;  %v1400_v5 = vld [vmem:[%s1782_s0 + $0x60] ss:$20 sps:$4 sm:$0xff]  }
  0x17   :  { %v1396_v1 = vld [vmem:[%s1782_s0 + $0x10] ss:$20 sps:$4 sm:$0xff]   ;;  %v1399_v4 = vld [vmem:[%s1782_s0 + $0xd8] ss:$20 sps:$4 sm:$0xff]   ;;  %v1401_v6 = vld [vmem:[%s1782_s0 + $0x100] ss:$20 sps:$4 sm:$0xff]  }
  0x18   :  { %1156 = vmatpush3.bf16.msra.mxu0 %v1340_v22  ;;  %v1397_v2 = vld [vmem:[%s1782_s0 + $0xb0] ss:$20 sps:$4 sm:$0xff]   ;;  %v1402_v7 = vld [vmem:[%s1782_s0 + $0x88] ss:$20 sps:$4 sm:$0xff]  }
  0x19   :  { %1214 = vmatpush3.bf16.msra.mxu1 %v1341_v23  ;;  %1157 = vmatprep.subr.bf16.mxu0 %v1342_v24 }
  0x1a   :  { %1215 = vmatprep.subr.bf16.mxu1 %v1343_v25 }
  0x1c   :  { %1158 = vmatpush3.bf16.msra.mxu0 %v1344_v26 }
  0x1d   :  { %1216 = vmatpush3.bf16.msra.mxu1 %v1345_v27  ;;  %1159 = vmatprep.subr.bf16.mxu0 %v1346_v28 }
  0x1e   :  { %1217 = vmatprep.subr.bf16.mxu1 %v1347_v29 }
  0x20   :  { %1160 = vmatpush3.bf16.msra.mxu0 %v1348_v30 }
  0x21   :  { %1218 = vmatpush3.bf16.msra.mxu1 %v1349_v31  ;;  %1272 = vmatprep.subr.bf16.mxu0 %v1403_v34 }
  0x22   :  { %1308 = vmatprep.subr.bf16.mxu1 %v1403_v34 }
  0x23   :  { %582 = vmatmul.mubr.bf16.vlgmr.msra.gmra.mxu0 %v1350_v32 }
  0x24   :  { %671 = vmatmul.mubr.bf16.vlgmr.msra.gmra.mxu1 %v1353_v35  ;;  %1273 = vmatpush3.bf16.msra.mxu0 %v1356_v37 }
  0x25   :  { %589 = vmatprep.mubr.bf16.mxu0 %v1357_v38  ;;  %1312 = vmatpush3.bf16.msra.mxu1 %v1356_v37 }
  0x26   :  { %678 = vmatprep.mubr.bf16.mxu1 %v1359_v39  ;;  %1274 = vmatprep.subr.bf16.mxu0 %v1403_v34 }
  0x27   :  { %1309 = vmatprep.subr.bf16.mxu1 %v1403_v34 }
  0x28   :  { %1275 = vmatpush3.bf16.msra.mxu0 %v1367_v43 }
  0x29   :  { %1313 = vmatpush3.bf16.msra.mxu1 %v1367_v43  ;;  %1276 = vmatprep.subr.bf16.mxu0 %v1403_v34 }
  0x2a   :  { %1310 = vmatprep.subr.bf16.mxu1 %v1403_v34 }
  0x2b   :  { %590 = vmatmul.mubr.bf16.gmra.mxu0 %v1361_v40 }
  0x2c   :  { %679 = vmatmul.mubr.bf16.gmra.mxu1 %v1362_v41  ;;  %597 = vmatprep.mubr.bf16.mxu0 %v1363_v42 }
  0x2d   :  { %686 = vmatprep.mubr.bf16.mxu1 %v1365_v44  ;;  %1277 = vmatpush3.bf16.msra.mxu0 %v1376_v45 }
  0x2e   :  { %1314 = vmatpush3.bf16.msra.mxu1 %v1376_v45  ;;  %1278 = vmatprep.subr.bf16.mxu0 %v1403_v34 }
  0x2f   :  { %1311 = vmatprep.subr.bf16.mxu1 %v1403_v34 }
  0x31   :  { %1279 = vmatpush3.bf16.msra.mxu0 %v1389_v50 }
  0x32   :  { %1315 = vmatpush3.bf16.msra.mxu1 %v1389_v50 }
  0x33   :  { %598 = vmatmul.mubr.bf16.gmra.mxu0 %v1368_v46 }
  0x34   :  { %687 = vmatmul.mubr.bf16.gmra.mxu1 %v1369_v47  ;;  %605 = vmatprep.mubr.bf16.mxu0 %v1370_v48 }
  0x35   :  { %694 = vmatprep.mubr.bf16.mxu1 %v1372_v49 }
  0x3b   :  { %606 = vmatmul.mubr.bf16.gmra.mxu0 %v1374_v51 }
  0x3c   :  { %695 = vmatmul.mubr.bf16.gmra.mxu1 %v1375_v52  ;;  %613 = vmatprep.mubr.bf16.mxu0 %v1377_v53 }
  0x3d   :  { %702 = vmatprep.mubr.bf16.mxu1 %v1379_v54 }
  0x43   :  { %614 = vmatmul.mubr.bf16.gmra.mxu0 %v1381_v55 }
  0x44   :  { %703 = vmatmul.mubr.bf16.gmra.mxu1 %v1382_v56  ;;  %621 = vmatprep.mubr.bf16.mxu0 %v1383_v57 }
  0x45   :  { %710 = vmatprep.mubr.bf16.mxu1 %v1385_v58 }
  0x4b   :  { %622 = vmatmul.mubr.bf16.gmra.mxu0 %v1387_v59  ;;  %v1714_v59 = vld [vmem:[%s1784_s2] ss:$0 sm:$0xff] }
  0x4c   :  { %711 = vmatmul.mubr.bf16.gmra.mxu1 %v1388_v60  ;;  %629 = vmatprep.mubr.bf16.mxu0 %v1390_v61 }
  0x4d   :  { %718 = vmatprep.mubr.bf16.mxu1 %v1392_v62 }
  0x53   :  { %630 = vmatmul.mubr.bf16.gmra.mxu0 %v1394_v63 }
  0x54   :  { %719 = vmatmul.mubr.bf16.gmra.mxu1 %v1395_v0  ;;  %1280 = vmatprep.mubr.msk.bf16.mxu0 %vm1404_vm0, %v1403_v34 }
  0x55   :  { %1296 = vmatprep.mubr.msk.bf16.mxu1 %vm1404_vm0, %v1403_v34 }
  0x5b   :  { %1281 = vmatmul.mubr.msk.bf16.vlgmr.msra.gmra.mxu0 %vm527_vm1, %v1396_v1 }
  0x5c   :  { %1297 = vmatmul.mubr.msk.bf16.vlgmr.msra.gmra.mxu1 %vm527_vm1, %v1397_v2  ;;  %1284 = vmatprep.mubr.msk.bf16.mxu0 %vm1404_vm0, %v1403_v34 }
  0x5d   :  { %1300 = vmatprep.mubr.msk.bf16.mxu1 %vm1404_vm0, %v1403_v34 }
  0x63   :  { %1285 = vmatmul.mubr.msk.bf16.gmra.mxu0 %vm527_vm1, %v1398_v3 }
  0x64   :  { %1301 = vmatmul.mubr.msk.bf16.gmra.mxu1 %vm527_vm1, %v1399_v4  ;;  %1288 = vmatprep.mubr.msk.bf16.mxu0 %vm1404_vm0, %v1403_v34 }
  0x65   :  { %1304 = vmatprep.mubr.msk.bf16.mxu1 %vm1404_vm0, %v1403_v34 }
  0x6b   :  { %1289 = vmatmul.mubr.msk.bf16.gmra.mxu0 %vm527_vm1, %v1400_v5 }
  0x6c   :  { %1305 = vmatmul.mubr.msk.bf16.gmra.mxu1 %vm527_vm1, %v1401_v6  ;;  %1292 = vmatprep.mubr.msk.bf16.mxu0 %vm1404_vm0, %v1403_v34 }
  0x73   :  { %1293 = vmatmul.mubr.msk.bf16.gmra.mxu0 %vm527_vm1, %v1402_v7 }
  0xe3   :  { %v1161_v8 = vpop.f32.mrf.mxu0 }
  0xe4   :  { %v1219_v9 = vpop.f32.mrf.mxu1 }
  0xe5   :  { %v1162_v10 = vpop.f32.mrf.mxu0 }
  0xe6   :  { %v1220_v11 = vpop.f32.mrf.mxu1  ;;  %v1163_v57 = vadd.f32 %v1162_v10, %v1161_v8 }
  0xe7   :  { %v1164_v12 = vpop.f32.mrf.mxu0  ;;  %v1221_v3 = vadd.f32 %v1220_v11, %v1219_v9 }
  0xe8   :  { %v1222_v13 = vpop.f32.mrf.mxu1  ;;  %v584_v2 = vadd.f32 %v1163_v57, %v1714_v59 }
  0xe9   :  { %v1165_v14 = vpop.f32.mrf.mxu0 }
  0xea   :  { %v1223_v15 = vpop.f32.mrf.mxu1  ;;  %v1166_v62 = vadd.f32 %v1165_v14, %v1164_v12 }
  0xeb   :  { %v1167_v16 = vpop.f32.mrf.mxu0  ;;  %v1224_v10 = vadd.f32 %v1223_v15, %v1222_v13 }
  0xec   :  { %v1667_v17 = vpop.f32.mrf.mxu1  ;;  %v587_v8 = vadd.f32 %v1166_v62, %v1714_v59 }
  0xed   :  { %v1168_v18 = vpop.f32.mrf.mxu0 }
  0xee   :  { %v1669_v19 = vpop.f32.mrf.mxu1 }
  0xef   :  { %v1671_v20 = vpop.f32.mrf.mxu0 }
  0xf0   :  { %v1673_v21 = vpop.f32.mrf.mxu1 }
  0xf1   :  { %v1171_v22 = vpop.f32.mrf.mxu0 }
  0xf2   :  { %v1675_v23 = vpop.f32.mrf.mxu1 }
  0xf3   :  { %v1677_v24 = vpop.f32.mrf.mxu0 }
  0xf4   :  { %v1679_v25 = vpop.f32.mrf.mxu1 }
  0xf5   :  { %v1681_v26 = vpop.f32.mrf.mxu0 }
  0xf6   :  { %v1683_v27 = vpop.f32.mrf.mxu1 }
  0xf7   :  { %v1685_v28 = vpop.f32.mrf.mxu0 }
  0xf8   :  { %v1687_v29 = vpop.f32.mrf.mxu1 }
  0xf9   :  { %v1689_v30 = vpop.f32.mrf.mxu0 }
  0xfa   :  { %v1691_v31 = vpop.f32.mrf.mxu1 }
  0xfb   :  { %v1693_v32 = vpop.f32.mrf.mxu0 }
  0xfc   :  { %v1695_v33 = vpop.f32.mrf.mxu1 }
  0xfd   :  { %1786 = vst [vmem:[#allocation3_spill] sm:$0xff] %v1695_v33  ;;  %v1697_v34 = vpop.f32.mrf.mxu0 }
  0xfe   :  { %v1699_v35 = vpop.f32.mrf.mxu1 }
  0xff   :  { %1787 = vst [vmem:[#allocation4_spill] sm:$0xff] %v1699_v35  ;;  %v1701_v36 = vpop.f32.mrf.mxu0 }
 0x100   :  { %v1703_v37 = vpop.f32.mrf.mxu1 }
 0x101   :  { %1788 = vst [vmem:[#allocation5_spill] sm:$0xff] %v1703_v37  ;;  %v1705_v38 = vpop.f32.mrf.mxu0  ;;  %v1172_v37 = vadd.f32 %v1171_v22, %v1671_v20  ;;  %v1230_v22 = vadd.f32 %v1675_v23, %v1673_v21  ;;  %v1178_v21 = vadd.f32 %v1689_v30, %v1685_v28 }
 0x102   :  { %v1707_v39 = vpop.f32.mrf.mxu1 }
 0x103   :  { %1789 = vst [vmem:[#allocation6_spill] sm:$0xff] %v1707_v39  ;;  %v1185_v40 = vpop.f32.mrf.mxu0  ;;  %v595_v20 = vadd.f32 %v1172_v37, %v1714_v59 }
 0x104   :  { %v1243_v41 = vpop.f32.mrf.mxu1 }
 0x105   :  { %v1186_v42 = vpop.f32.mrf.mxu0 }
 0x106   :  { %v1244_v43 = vpop.f32.mrf.mxu1  ;;  %v1187_v60 = vadd.f32 %v1186_v42, %v1185_v40  ;;  %v1169_v42 = vadd.f32 %v1168_v18, %v1167_v16 }
 0x107   :  { %v1188_v44 = vpop.f32.mrf.mxu0  ;;  %v1245_v6 = vadd.f32 %v1244_v43, %v1243_v41  ;;  %v676_v43 = vadd.f32 %v1224_v10, %v587_v8  ;;  %v1175_v8 = vadd.f32 %v1681_v26, %v1677_v24  ;;  %v1233_v26 = vadd.f32 %v1683_v27, %v1679_v25 }
 0x108   :  { %v1246_v45 = vpop.f32.mrf.mxu1  ;;  %v616_v5 = vadd.f32 %v1187_v60, %v1714_v59  ;;  %v592_v33 = vadd.f32 %v1169_v42, %v1714_v59 }
 0x109   :  { %v1189_v46 = vpop.f32.mrf.mxu0  ;;  %v600_v24 = vadd.f32 %v1175_v8, %v1714_v59 }
 0x10a   :  { %v1247_v47 = vpop.f32.mrf.mxu1  ;;  %v1190_v0 = vadd.f32 %v1189_v46, %v1188_v44  ;;  %v673_v44 = vadd.f32 %v1221_v3, %v584_v2  ;;  %v705_v9 = vadd.f32 %v1245_v6, %v616_v5 }
 0x10b   :  { %v1191_v48 = vpop.f32.mrf.mxu0  ;;  %v1248_v14 = vadd.f32 %v1247_v47, %v1246_v45  ;;  %v1227_v45 = vadd.f32 %v1669_v19, %v1667_v17 }
 0x10c   :  { %v1249_v49 = vpop.f32.mrf.mxu1  ;;  %v619_v12 = vadd.f32 %v1190_v0, %v1714_v59 }
 0x10d   :  { %v1192_v50 = vpop.f32.mrf.mxu0 }
 0x10e   :  { %v1250_v51 = vpop.f32.mrf.mxu1  ;;  %v1193_v57 = vadd.f32 %v1192_v50, %v1191_v48  ;;  %v708_v15 = vadd.f32 %v1248_v14, %v619_v12 }
 0x10f   :  { %v1194_v52 = vpop.f32.mrf.mxu0  ;;  %v1251_v48 = vadd.f32 %v1250_v51, %v1249_v49  ;;  %v681_v51 = vadd.f32 %v1227_v45, %v592_v33 }
 0x110   :  { %v1252_v53 = vpop.f32.mrf.mxu1  ;;  %v624_v47 = vadd.f32 %v1193_v57, %v1714_v59 }
 0x111   :  { %v1195_v54 = vpop.f32.mrf.mxu0 }
 0x112   :  { %v1253_v55 = vpop.f32.mrf.mxu1  ;;  %v1196_v35 = vadd.f32 %v1195_v54, %v1194_v52  ;;  %v713_v14 = vadd.f32 %v1251_v48, %v624_v47 }
 0x113   :  { %v1197_v56 = vpop.f32.mrf.mxu0  ;;  %v1254_v5 = vadd.f32 %v1253_v55, %v1252_v53  ;;  %v684_v53 = vadd.f32 %v1230_v22, %v595_v20 }
 0x114   :  { %v1709_v58 = vpop.f32.mrf.mxu1  ;;  %v627_v3 = vadd.f32 %v1196_v35, %v1714_v59 }
 0x115   :  { %v1198_v61 = vpop.f32.mrf.mxu0 }
 0x116   :  { %v1716_v63 = vpop.f32.mrf.mxu1  ;;  %v1199_v12 = vadd.f32 %v1198_v61, %v1197_v56 }
 0x117   :  { %v1200_v1 = vpop.f32.mrf.mxu0  ;;  %v1257_v28 = vadd.f32 %v1716_v63, %v1709_v58  ;;  %v1181_v58 = vadd.f32 %v1697_v34, %v1693_v32 }
 0x118   :  { %v1719_v4 = vpop.f32.mrf.mxu1  ;;  %v632_v61 = vadd.f32 %v1199_v12, %v1714_v59 }
 0x119   :  { %v1201_v7 = vpop.f32.mrf.mxu0 }
 0x11a   :  { %v1723_v39 = vpop.f32.mrf.mxu1  ;;  %v1202_v55 = vadd.f32 %v1201_v7, %v1200_v1  ;;  %v603_v1 = vadd.f32 %v1178_v21, %v1714_v59  ;;  %v1236_v7 = vadd.f32 %v1691_v31, %v1687_v29  ;;  %v721_v29 = vadd.f32 %v1257_v28, %v632_v61 }
 0x11b   :  { %v761_v40 = vpop.f32.mrf.mxu0  ;;  %v1260_v25 = vadd.f32 %v1723_v39, %v1719_v4 }
 0x11c   :  { %v793_v46 = vpop.f32.mrf.mxu1  ;;  %v762_v60 = vadd.f32 %v761_v40, %v673_v44  ;;  %v692_v48 = vadd.f32 %v1236_v7, %v603_v1 }
 0x11d   :  { %v1282_v11 = vpop.f32.mrf.mxu0  ;;  %v794_v62 = vadd.f32 %v793_v46, %v705_v9  ;;  %v716_v46 = vadd.f32 %v1254_v5, %v627_v3  ;;  %v1792_v5 = vld [vmem:[#allocation5_spill] sm:$0xff] }
 0x11e   :  { %v1298_v41 = vpop.f32.mrf.mxu1  ;;  %v816_v52 = vmax.f32 %v762_v60, 0.0 }
 0x11f   :  { %v764_v13 = vpop.f32.mrf.mxu0  ;;  %v824_v6 = vmax.f32 %v794_v62, 0.0  ;;  %v635_v41 = vadd.f32 %v1202_v55, %v1714_v59 }
 0x120   :  { %v765_v16 = vadd.f32 %v764_v13, %v676_v43  ;;  %v796_v18 = vpop.f32.mrf.mxu1  ;;  %v689_v13 = vadd.f32 %v1233_v26, %v600_v24 }
 0x121   :  { %v797_v50 = vadd.f32 %v796_v18, %v708_v15  ;;  %v1283_v0 = vpop.f32.mrf.mxu0  ;;  %v1184_v18 = vadd.f32 %v1705_v38, %v1701_v36  ;;  %v1790_v36 = vld [vmem:[#allocation3_spill] sm:$0xff]  ;;  %v1791_v38 = vld [vmem:[#allocation4_spill] sm:$0xff] }
 0x122   :  { %v817_v54 = vmax.f32 %v765_v16, 0.0  ;;  %v1299_v2 = vpop.f32.mrf.mxu1  ;;  %v608_v0 = vadd.f32 %v1181_v58, %v1714_v59  ;;  %v1239_v20 = vadd.f32 %v1791_v38, %v1790_v36 }
 0x123   :  { %v825_v17 = vmax.f32 %v797_v50, 0.0  ;;  %v769_v19 = vpop.f32.mrf.mxu0  ;;  %v724_v50 = vadd.f32 %v1260_v25, %v635_v41  ;;  %v611_v3 = vadd.f32 %v1184_v18, %v1714_v59 }
 0x124   :  { %v1107_v49 = vpack.c.bf16 %v817_v54, %v816_v52  ;;  %v801_v10 = vpop.f32.mrf.mxu1  ;;  %v770_v23 = vadd.f32 %v769_v19, %v681_v51 }
 0x125   :  { %v1127_v37 = vpack.c.bf16 %v825_v17, %v824_v6  ;;  %v1286_v40 = vpop.f32.mrf.mxu0  ;;  %v802_v42 = vadd.f32 %v801_v10, %v713_v14  ;;  %v1793_v6 = vld [vmem:[#allocation6_spill] sm:$0xff]  ;;  %v697_v14 = vadd.f32 %v1239_v20, %v608_v0 }
 0x126   :  { %1108 = vst [vmem:[#allocation2] sm:$0xff] %v1107_v49   ;;  %v1302_v35 = vpop.f32.mrf.mxu1  ;;  %v818_v9 = vmax.f32 %v770_v23, 0.0  ;;  %v1242_v17 = vadd.f32 %v1793_v6, %v1792_v5 }
 0x127   :  { %1142 = vst [vmem:[#allocation2 + $0x20] sm:$0xff] %v1127_v37   ;;  %v772_v44 = vpop.f32.mrf.mxu0  ;;  %v826_v27 = vmax.f32 %v802_v42, 0.0 }
 0x128   :  { %v773_v33 = vadd.f32 %v772_v44, %v684_v53  ;;  %v804_v56 = vpop.f32.mrf.mxu1  ;;  %v700_v53 = vadd.f32 %v1242_v17, %v611_v3 }
 0x129   :  { %v805_v30 = vadd.f32 %v804_v56, %v716_v46  ;;  %v1287_v57 = vpop.f32.mrf.mxu0 }
 0x12a   :  { %v819_v11 = vmax.f32 %v773_v33, 0.0  ;;  %v1303_v60 = vpop.f32.mrf.mxu1 }
 0x12b   :  { %v827_v43 = vmax.f32 %v805_v30, 0.0  ;;  %v777_v62 = vpop.f32.mrf.mxu0 }
 0x12c   :  { %v1112_v63 = vpack.c.bf16 %v819_v11, %v818_v9  ;;  %v809_v15 = vpop.f32.mrf.mxu1  ;;  %v778_v4 = vadd.f32 %v777_v62, %v689_v13 }
 0x12d   :  { %v918_v45 = vld [vmem:[#allocation2] sm:$0xff]   ;;  %v1132_v16 = vpack.c.bf16 %v827_v43, %v826_v27  ;;  %v1290_v31 = vpop.f32.mrf.mxu0  ;;  %v810_v32 = vadd.f32 %v809_v15, %v721_v29 }
 0x12e   :  { %919 = vst [vmem:[%s1785_s3] sm:$0xff] %v918_v45   ;;  %v934_v39 = vld [vmem:[#allocation2 + $0x20] sm:$0xff]   ;;  %1139 = vst [vmem:[#allocation2 + $0x8] sm:$0xff] %v1112_v63   ;;  %v1306_v47 = vpop.f32.mrf.mxu1  ;;  %v820_v19 = vmax.f32 %v778_v4, 0.0 }
 0x12f   :  { %935 = vst [vmem:[%s1785_s3 + $0x20] sm:$0xff] %v934_v39   ;;  %1143 = vst [vmem:[#allocation2 + $0x28] sm:$0xff] %v1132_v16   ;;  %v780_v34 = vpop.f32.mrf.mxu0  ;;  %v828_v51 = vmax.f32 %v810_v32, 0.0 }
 0x130   :  { %v781_v22 = vadd.f32 %v780_v34, %v692_v48  ;;  %v812_v52 = vpop.f32.mrf.mxu1 }
 0x131   :  { %v813_v54 = vadd.f32 %v812_v52, %v724_v50  ;;  %v1291_v2 = vpop.f32.mrf.mxu0 }
 0x132   :  { %v821_v8 = vmax.f32 %v781_v22, 0.0  ;;  %v1307_v49 = vpop.f32.mrf.mxu1 }
 0x133   :  { %v829_v10 = vmax.f32 %v813_v54, 0.0  ;;  %v785_v12 = vpop.f32.mrf.mxu0 }
 0x134   :  { %v1117_v37 = vpack.c.bf16 %v821_v8, %v820_v19  ;;  %v786_v59 = vadd.f32 %v785_v12, %v697_v14 }
 0x135   :  { %v922_v40 = vld [vmem:[#allocation2 + $0x8] sm:$0xff]   ;;  %v1137_v21 = vpack.c.bf16 %v829_v10, %v828_v51  ;;  %v1294_v23 = vpop.f32.mrf.mxu0 }
 0x136   :  { %923 = vst [vmem:[%s1785_s3 + $0x8] sm:$0xff] %v922_v40   ;;  %v938_v35 = vld [vmem:[#allocation2 + $0x28] sm:$0xff]   ;;  %1140 = vst [vmem:[#allocation2 + $0x10] sm:$0xff] %v1117_v37   ;;  %v822_v46 = vmax.f32 %v786_v59, 0.0 }
 0x137   :  { %939 = vst [vmem:[%s1785_s3 + $0x28] sm:$0xff] %v938_v35   ;;  %1144 = vst [vmem:[#allocation2 + $0x30] sm:$0xff] %v1137_v21   ;;  %v788_v55 = vpop.f32.mrf.mxu0 }
 0x138   :  { %v789_v42 = vadd.f32 %v788_v55, %v700_v53 }
 0x139   :  { %v1295_v44 = vpop.f32.mrf.mxu0 }
 0x13a   :  { %v823_v24 = vmax.f32 %v789_v42, 0.0 }
 0x13c   :  { %v1122_v26 = vpack.c.bf16 %v823_v24, %v822_v46 }
 0x13d   :  { %v926_v33 = vld [vmem:[#allocation2 + $0x10] sm:$0xff]  }
 0x13e   :  { %927 = vst [vmem:[%s1785_s3 + $0x10] sm:$0xff] %v926_v33   ;;  %v942_v56 = vld [vmem:[#allocation2 + $0x30] sm:$0xf]  ;;  %1141 = vst [vmem:[#allocation2 + $0x18] sm:$0xff] %v1122_v26  }
 0x13f   :  { %943 = vst [vmem:[%s1785_s3 + $0x30] sm:$0xf] %v942_v56 }
 0x145   :  { %v930_v61 = vld [vmem:[#allocation2 + $0x18] sm:$0xff]  }
 0x146   :  { %931 = vst [vmem:[%s1785_s3 + $0x18] sm:$0xff] %v930_v61  }

// kernel: cnn_forward.9
= control target key start
LH: loop header
LB: loop body
LE: loop exit
PB: predicated region body
PF: predicated region fallthrough
CT: control target
= control target key end

     0   :  { %8 = vsyncpa [#allocation3], 0  ;;  %v110_v32 = vlaneseq  ;;  %v610_v33 = vmov 1966171168   ;;  %s748_s0 = inlined_call_operand.vmem [shape: bf16[2,512], index: 0, kind: input, shape index: {}]   ;;  %s749_s1 = inlined_call_operand.vmem [shape: bf16[512,128], index: 1, kind: input, shape index: {}]   ;;  %s750_s2 = inlined_call_operand.vmem [shape: f32[1,128], index: 2, kind: input, shape index: {}]   ;;  %s751_s3 = inlined_call_operand.hbm [shape: f32[2,128], index: 3, kind: output, shape index: {}]  }
   0x1   :  { %v548_v0 = vld [vmem:[%s749_s1 + $0x78] sm:$0xff]   ;;  %v552_v4 = vld [vmem:[%s749_s1 + $0x70] sm:$0xff]   ;;  %v556_v8 = vld [vmem:[%s749_s1 + $0x68] sm:$0xff]   ;;  %v108_v34 = vunpack.c.l.s4 %v610_v33 }
   0x2   :  { %v549_v1 = vld [vmem:[%s749_s1 + $0xf8] sm:$0xff]   ;;  %500 = vmatprep.subr.bf16.mxu0 %v548_v0  ;;  %v553_v5 = vld [vmem:[%s749_s1 + $0xf0] sm:$0xff]   ;;  %v557_v9 = vld [vmem:[%s749_s1 + $0xe8] sm:$0xff]   ;;  %v111_v35 = vshrl.u32 %v110_v32, 7 }
   0x3   :  { %v550_v2 = vld [vmem:[%s749_s1 + $0x38] sm:$0xff]   ;;  %522 = vmatprep.subr.bf16.mxu1 %v549_v1  ;;  %v554_v6 = vld [vmem:[%s749_s1 + $0x30] sm:$0xff]   ;;  %v558_v10 = vld [vmem:[%s749_s1 + $0x28] sm:$0xff]   ;;  %v109_v40 = vunpack.c.0.s8 %v108_v34 }
   0x4   :  { %v551_v3 = vld [vmem:[%s749_s1 + $0xb8] sm:$0xff]   ;;  %501 = vmatpush3.bf16.msra.mxu0 %v550_v2  ;;  %v555_v7 = vld [vmem:[%s749_s1 + $0xb0] sm:$0xff]   ;;  %v559_v11 = vld [vmem:[%s749_s1 + $0xa8] sm:$0xff]  }
   0x5   :  { %523 = vmatpush3.bf16.msra.mxu1 %v551_v3  ;;  %502 = vmatprep.subr.bf16.mxu0 %v552_v4  ;;  %v560_v12 = vld [vmem:[%s749_s1 + $0x60] sm:$0xff]   ;;  %v564_v16 = vld [vmem:[%s749_s1 + $0x58] sm:$0xff]   ;;  %v568_v20 = vld [vmem:[%s749_s1 + $0x50] sm:$0xff]   ;;  %v112_v41 = vsub.s32 %v109_v40, %v111_v35 }
   0x6   :  { %524 = vmatprep.subr.bf16.mxu1 %v553_v5  ;;  %v561_v13 = vld [vmem:[%s749_s1 + $0xe0] sm:$0xff]   ;;  %v565_v17 = vld [vmem:[%s749_s1 + $0xd8] sm:$0xff]   ;;  %v569_v21 = vld [vmem:[%s749_s1 + $0xd0] sm:$0xff]  }
   0x7   :  { %v562_v14 = vld [vmem:[%s749_s1 + $0x20] sm:$0xff]   ;;  %v566_v18 = vld [vmem:[%s749_s1 + $0x18] sm:$0xff]   ;;  %v570_v22 = vld [vmem:[%s749_s1 + $0x10] sm:$0xff]  }
   0x8   :  { %503 = vmatpush3.bf16.msra.mxu0 %v554_v6  ;;  %v563_v15 = vld [vmem:[%s749_s1 + $0xa0] sm:$0xff]   ;;  %v567_v19 = vld [vmem:[%s749_s1 + $0x98] sm:$0xff]   ;;  %v571_v23 = vld [vmem:[%s749_s1 + $0x90] sm:$0xff]  }
   0x9   :  { %525 = vmatpush3.bf16.msra.mxu1 %v555_v7  ;;  %504 = vmatprep.subr.bf16.mxu0 %v556_v8  ;;  %v572_v24 = vld [vmem:[%s749_s1 + $0x48] sm:$0xff]   ;;  %v576_v28 = vld [vmem:[%s749_s1 + $0x40] sm:$0xff]   ;;  %v586_v38 = vld.sshfl [vmem:[%s748_s0 + $0x10] sm:$0xff pattern:$0x75316420] }
   0xa   :  { %526 = vmatprep.subr.bf16.mxu1 %v557_v9  ;;  %v573_v25 = vld [vmem:[%s749_s1 + $0xc8] sm:$0xff]   ;;  %v577_v29 = vld [vmem:[%s749_s1 + $0xc0] sm:$0xff]   ;;  %v587_v39 = vld.sshfl [vmem:[%s748_s0 + $0x18] sm:$0xff pattern:$0x75316420] }
   0xb   :  { %v574_v26 = vld [vmem:[%s749_s1 + $0x8] sm:$0xff]   ;;  %v578_v30 = vld [vmem:[%s749_s1] sm:$0xff]   ;;  %v138_v43 = vcombine.high %v586_v38, %v587_v39  ;;  %v137_v45 = vcombine.low %v586_v38, %v587_v39 }
   0xc   :  { %505 = vmatpush3.bf16.msra.mxu0 %v558_v10  ;;  %v575_v27 = vld [vmem:[%s749_s1 + $0x88] sm:$0xff]   ;;  %v579_v31 = vld [vmem:[%s749_s1 + $0x80] sm:$0xff]  }
   0xd   :  { %527 = vmatpush3.bf16.msra.mxu1 %v559_v11  ;;  %506 = vmatprep.subr.bf16.mxu0 %v560_v12  ;;  %v584_v36 = vld.sshfl [vmem:[%s748_s0] sm:$0xff pattern:$0x75316420]  ;;  %v585_v37 = vld.sshfl [vmem:[%s748_s0 + $0x8] sm:$0xff pattern:$0x75316420]  ;;  %v166_v47 = vrot.slane %v138_v43, %v112_v41  ;;  %v159_v49 = vrot.slane %v137_v45, %v112_v41 }
   0xe   :  { %528 = vmatprep.subr.bf16.mxu1 %v561_v13  ;;  %v136_v42 = vcombine.high %v584_v36, %v585_v37  ;;  %v135_v44 = vcombine.low %v584_v36, %v585_v37  ;;  %v467_v56 = vld [vmem:[%s750_s2] ss:$0 sm:$0xff] }
  0x10   :  { %507 = vmatpush3.bf16.msra.mxu0 %v562_v14  ;;  %v152_v46 = vrot.slane %v136_v42, %v112_v41  ;;  %v145_v48 = vrot.slane %v135_v44, %v112_v41 }
  0x11   :  { %529 = vmatpush3.bf16.msra.mxu1 %v563_v15  ;;  %508 = vmatprep.subr.bf16.mxu0 %v564_v16 }
  0x12   :  { %530 = vmatprep.subr.bf16.mxu1 %v565_v17  ;;  %v169_v50 = vcombine.low %v152_v46, %v166_v47  ;;  %v170_v51 = vcombine.high %v152_v46, %v166_v47  ;;  %v167_v52 = vcombine.low %v145_v48, %v159_v49  ;;  %v168_v53 = vcombine.high %v145_v48, %v159_v49 }
  0x14   :  { %509 = vmatpush3.bf16.msra.mxu0 %v566_v18  ;;  %399 = vmatprep.mubr.bf16.mxu0 %v169_v50 }
  0x15   :  { %531 = vmatpush3.bf16.msra.mxu1 %v567_v19  ;;  %510 = vmatprep.subr.bf16.mxu0 %v568_v20 }
  0x16   :  { %532 = vmatprep.subr.bf16.mxu1 %v569_v21  ;;  %440 = vmatprep.mubr.bf16.mxu1 %v170_v51 }
  0x18   :  { %511 = vmatpush3.bf16.msra.mxu0 %v570_v22 }
  0x19   :  { %533 = vmatpush3.bf16.msra.mxu1 %v571_v23  ;;  %512 = vmatprep.subr.bf16.mxu0 %v572_v24 }
  0x1a   :  { %534 = vmatprep.subr.bf16.mxu1 %v573_v25 }
  0x1c   :  { %513 = vmatpush3.bf16.msra.mxu0 %v574_v26 }
  0x1d   :  { %535 = vmatpush3.bf16.msra.mxu1 %v575_v27  ;;  %514 = vmatprep.subr.bf16.mxu0 %v576_v28 }
  0x1e   :  { %536 = vmatprep.subr.bf16.mxu1 %v577_v29 }
  0x20   :  { %515 = vmatpush3.bf16.msra.mxu0 %v578_v30 }
  0x21   :  { %537 = vmatpush3.bf16.msra.mxu1 %v579_v31 }
  0x23   :  { %400 = vmatmul.mubr.bf16.vlgmr.msra.gmra.mxu0 %v167_v52 }
  0x24   :  { %441 = vmatmul.mubr.bf16.vlgmr.msra.gmra.mxu1 %v168_v53 }
  0xe3   :  { %v516_v54 = vpop.f32.mrf.mxu0 }
  0xe4   :  { %v538_v55 = vpop.f32.mrf.mxu1 }
  0xe5   :  { %v517_v57 = vpop.f32.mrf.mxu0 }
  0xe6   :  { %v539_v58 = vpop.f32.mrf.mxu1  ;;  %v518_v59 = vadd.f32 %v517_v57, %v516_v54 }
  0xe7   :  { %v519_v60 = vpop.f32.mrf.mxu0  ;;  %v540_v63 = vadd.f32 %v539_v58, %v538_v55 }
  0xe8   :  { %v541_v61 = vpop.f32.mrf.mxu1  ;;  %v402_v62 = vadd.f32 %v518_v59, %v467_v56 }
  0xe9   :  { %v520_v0 = vpop.f32.mrf.mxu0 }
  0xea   :  { %v542_v1 = vpop.f32.mrf.mxu1  ;;  %v443_v2 = vadd.f32 %v540_v63, %v402_v62  ;;  %v521_v3 = vadd.f32 %v520_v0, %v519_v60 }
  0xeb   :  { %v543_v5 = vadd.f32 %v542_v1, %v541_v61 }
  0xec   :  { %449 = vst [vmem:[#allocation2] sm:$0xff] %v443_v2  ;;  %v405_v4 = vadd.f32 %v521_v3, %v467_v56 }
  0xee   :  { %v446_v6 = vadd.f32 %v543_v5, %v405_v4 }
  0xf0   :  { %450 = vst [vmem:[#allocation2 + $0x8] sm:$0xff] %v446_v6 }
  0xf1   :  { %455 = vsyncadd [#allocation3], 224  ;;  %s611_s30 = smov [#allocation2]  }
  0xf2   :  { %s456_s4 = sshll.u32 %s611_s30, 4  ;;  %s457_s4 = int_to_ptr.vmem [resolvable:$true] %s456_s4 }
  0xf3   :  { %s588_s2 = scalar_lea.vmem %s457_s4, 32  ;;  %s592_s5 = scalar_lea.vmem %s457_s4, 256 }
  0xf4   :  { %p589_p0 = scmp.ne.s32.totalorder %s457_s4, %s588_s2  ;;  %p593_p1 = scmp.lt.s32.totalorder %s457_s4, %s457_s4 }
  0xf5   :  { %p594_p2 = scmp.lt.s32.totalorder %s592_s5, %s588_s2 }
  0xf7   :  { %p595_p3 = por %p594_p2, %p593_p1 }
  0xf9   :  { %p596_p4 = pnand %p595_p3, %p589_p0 }
  0xfb   :  { %599 = shalt.err (!%p596_p4)
}
  0xfc   :  { %s612_s6 = smov 32   ;;  %s613_s7 = smov 2  }
  0xfd   :  { %462 = dma.vmem_to_hbm [thread:$0]  %s457_s4, 32, %s751_s3, [#allocation3], %s612_s6, %s612_s6, %s613_s7  }
  0xfe   :  { %608 = dma.done.wait [#allocation3], 256  }
  0xff   :  { %609 = vsyncadd [#allocation3], 4294967040 }
 0x100   :  { %466 = vsyncpa [#allocation3], 1 }

// kernel: cnn_forward.8
= control target key start
LH: loop header
LB: loop body
LE: loop exit
PB: predicated region body
PF: predicated region fallthrough
CT: control target
= control target key end

     0   :  { %v425_v39 = vlaneseq  ;;  %v4449_v40 = vmov 1966171168   ;;  %vm2686_vm0 = vcmask 261120   ;;  %s5830_s0 = inlined_call_operand.vmem [shape: bf16[2,1568], index: 0, kind: input, shape index: {}]   ;;  %s5831_s1 = inlined_call_operand.vmem [shape: bf16[1568,512], index: 1, kind: input, shape index: {}]   ;;  %s5832_s2 = inlined_call_operand.vmem [shape: f32[1,512], index: 2, kind: input, shape index: {}]   ;;  %s5833_s3 = inlined_call_operand.vmem [shape: bf16[2,512], index: 3, kind: output, shape index: {}]  }
   0x1   :  { %v3837_v0 = vld [vmem:[%s5831_s1 + $0xe4] ss:$16 sps:$4 sm:$0xff]   ;;  %v3841_v2 = vld [vmem:[%s5831_s1 + $0xe0] ss:$16 sps:$4 sm:$0xff]   ;;  %v470_v41 = vunpack.c.l.s4 %v4449_v40 }
   0x2   :  { %v3839_v1 = vld [vmem:[%s5831_s1 + $0x2e4] ss:$16 sps:$4 sm:$0xff]   ;;  %2690 = vmatprep.subr.bf16.mxu0 %v3837_v0  ;;  %v3842_v3 = vld [vmem:[%s5831_s1 + $0x2e0] ss:$16 sps:$4 sm:$0xff]   ;;  %v4603_v47 = vshrl.u32 %v425_v39, 7 }
   0x3   :  { %2733 = vmatprep.subr.bf16.mxu1 %v3839_v1  ;;  %v3843_v4 = vld [vmem:[%s5831_s1 + $0xc4] ss:$16 sps:$4 sm:$0xff]   ;;  %2691 = vmatpush1.bf16.msra.mxu0 %v3841_v2  ;;  %v3847_v6 = vld [vmem:[%s5831_s1 + $0xc0] ss:$16 sps:$4 sm:$0xff]   ;;  %v471_v48 = vunpack.c.0.s8 %v470_v41 }
   0x4   :  { %2734 = vmatpush1.bf16.msra.mxu1 %v3842_v3  ;;  %v3845_v5 = vld [vmem:[%s5831_s1 + $0x2c4] ss:$16 sps:$4 sm:$0xff]   ;;  %2692 = vmatprep.subr.bf16.mxu0 %v3843_v4  ;;  %v3848_v7 = vld [vmem:[%s5831_s1 + $0x2c0] ss:$16 sps:$4 sm:$0xff]  }
   0x5   :  { %2735 = vmatprep.subr.bf16.mxu1 %v3845_v5  ;;  %v3849_v8 = vld [vmem:[%s5831_s1 + $0xa4] ss:$16 sps:$4 sm:$0xff]   ;;  %v3853_v10 = vld [vmem:[%s5831_s1 + $0xa0] ss:$16 sps:$4 sm:$0xff]   ;;  %v4621_v54 = vsub.s32 %v471_v48, %v4603_v47 }
   0x6   :  { %v3851_v9 = vld [vmem:[%s5831_s1 + $0x2a4] ss:$16 sps:$4 sm:$0xff]   ;;  %v3854_v11 = vld [vmem:[%s5831_s1 + $0x2a0] ss:$16 sps:$4 sm:$0xff]  }
   0x7   :  { %2693 = vmatpush1.bf16.msra.mxu0 %v3847_v6  ;;  %v3855_v12 = vld [vmem:[%s5831_s1 + $0x84] ss:$16 sps:$4 sm:$0xff]   ;;  %v3859_v14 = vld [vmem:[%s5831_s1 + $0x80] ss:$16 sps:$4 sm:$0xff]  }
   0x8   :  { %2736 = vmatpush1.bf16.msra.mxu1 %v3848_v7  ;;  %2694 = vmatprep.subr.bf16.mxu0 %v3849_v8  ;;  %v3857_v13 = vld [vmem:[%s5831_s1 + $0x284] ss:$16 sps:$4 sm:$0xff]   ;;  %v3860_v15 = vld [vmem:[%s5831_s1 + $0x280] ss:$16 sps:$4 sm:$0xff]  }
   0x9   :  { %2737 = vmatprep.subr.bf16.mxu1 %v3851_v9  ;;  %v3861_v16 = vld [vmem:[%s5831_s1 + $0x64] ss:$16 sps:$4 sm:$0xff]   ;;  %v3865_v18 = vld [vmem:[%s5831_s1 + $0x60] ss:$16 sps:$4 sm:$0xff]  }
   0xa   :  { %v3863_v17 = vld [vmem:[%s5831_s1 + $0x264] ss:$16 sps:$4 sm:$0xff]   ;;  %v3866_v19 = vld [vmem:[%s5831_s1 + $0x260] ss:$16 sps:$4 sm:$0xff]  }
   0xb   :  { %2695 = vmatpush1.bf16.msra.mxu0 %v3853_v10  ;;  %v3867_v20 = vld [vmem:[%s5831_s1 + $0x44] ss:$16 sps:$4 sm:$0xff]   ;;  %v3871_v22 = vld [vmem:[%s5831_s1 + $0x40] ss:$16 sps:$4 sm:$0xff]  }
   0xc   :  { %2738 = vmatpush1.bf16.msra.mxu1 %v3854_v11  ;;  %2696 = vmatprep.subr.bf16.mxu0 %v3855_v12  ;;  %v3869_v21 = vld [vmem:[%s5831_s1 + $0x244] ss:$16 sps:$4 sm:$0xff]   ;;  %v3872_v23 = vld [vmem:[%s5831_s1 + $0x240] ss:$16 sps:$4 sm:$0xff]  }
   0xd   :  { %2739 = vmatprep.subr.bf16.mxu1 %v3857_v13  ;;  %v3873_v24 = vld [vmem:[%s5831_s1 + $0x24] ss:$16 sps:$4 sm:$0xff]   ;;  %v3877_v26 = vld [vmem:[%s5831_s1 + $0x20] ss:$16 sps:$4 sm:$0xff]  }
   0xe   :  { %v3875_v25 = vld [vmem:[%s5831_s1 + $0x224] ss:$16 sps:$4 sm:$0xff]   ;;  %v3878_v27 = vld [vmem:[%s5831_s1 + $0x220] ss:$16 sps:$4 sm:$0xff]  }
   0xf   :  { %2697 = vmatpush1.bf16.msra.mxu0 %v3859_v14  ;;  %v3879_v28 = vld [vmem:[%s5831_s1 + $0x4] ss:$16 sps:$4 sm:$0xff]   ;;  %v3883_v30 = vld [vmem:[%s5831_s1] ss:$16 sps:$4 sm:$0xff]  }
  0x10   :  { %2740 = vmatpush1.bf16.msra.mxu1 %v3860_v15  ;;  %2698 = vmatprep.subr.bf16.mxu0 %v3861_v16  ;;  %v3881_v29 = vld [vmem:[%s5831_s1 + $0x204] ss:$16 sps:$4 sm:$0xff]   ;;  %v3884_v31 = vld [vmem:[%s5831_s1 + $0x200] ss:$16 sps:$4 sm:$0xff]  }
  0x11   :  { %2741 = vmatprep.subr.bf16.mxu1 %v3863_v17  ;;  %v3885_v32 = vld [vmem:[%s5831_s1 + $0x1e4] ss:$16 sps:$4 sm:$0xff]   ;;  %v3889_v34 = vld [vmem:[%s5831_s1 + $0x1e0] ss:$16 sps:$4 sm:$0xff]  }
  0x12   :  { %v3887_v33 = vld [vmem:[%s5831_s1 + $0x3e4] ss:$16 sps:$4 sm:$0xff]   ;;  %v3890_v35 = vld [vmem:[%s5831_s1 + $0x3e0] ss:$16 sps:$4 sm:$0xff]  }
  0x13   :  { %2699 = vmatpush1.bf16.msra.mxu0 %v3865_v18  ;;  %v3891_v36 = vld [vmem:[%s5831_s1 + $0x1c4] ss:$16 sps:$4 sm:$0xff]   ;;  %v3895_v38 = vld [vmem:[%s5831_s1 + $0x1c0] ss:$16 sps:$4 sm:$0xff]  }
  0x14   :  { %2742 = vmatpush1.bf16.msra.mxu1 %v3866_v19  ;;  %2700 = vmatprep.subr.bf16.mxu0 %v3867_v20  ;;  %v3893_v37 = vld [vmem:[%s5831_s1 + $0x3c4] ss:$16 sps:$4 sm:$0xff]   ;;  %v3896_v42 = vld [vmem:[%s5831_s1 + $0x3c0] ss:$16 sps:$4 sm:$0xff]  }
  0x15   :  { %2743 = vmatprep.subr.bf16.mxu1 %v3869_v21  ;;  %v3897_v43 = vld [vmem:[%s5831_s1 + $0x1a4] ss:$16 sps:$4 sm:$0xff]   ;;  %v3901_v45 = vld [vmem:[%s5831_s1 + $0x1a0] ss:$16 sps:$4 sm:$0xff]  }
  0x16   :  { %v3899_v44 = vld [vmem:[%s5831_s1 + $0x3a4] ss:$16 sps:$4 sm:$0xff]   ;;  %v3902_v46 = vld [vmem:[%s5831_s1 + $0x3a0] ss:$16 sps:$4 sm:$0xff]  }
  0x17   :  { %2701 = vmatpush1.bf16.msra.mxu0 %v3871_v22  ;;  %v3903_v49 = vld [vmem:[%s5831_s1 + $0x184] ss:$16 sps:$4 sm:$0xff]   ;;  %v3907_v51 = vld [vmem:[%s5831_s1 + $0x180] ss:$16 sps:$4 sm:$0xff]  }
  0x18   :  { %2744 = vmatpush1.bf16.msra.mxu1 %v3872_v23  ;;  %2702 = vmatprep.subr.bf16.mxu0 %v3873_v24  ;;  %v3905_v50 = vld [vmem:[%s5831_s1 + $0x384] ss:$16 sps:$4 sm:$0xff]   ;;  %v3908_v52 = vld [vmem:[%s5831_s1 + $0x380] ss:$16 sps:$4 sm:$0xff]  }
  0x19   :  { %2745 = vmatprep.subr.bf16.mxu1 %v3875_v25  ;;  %v3909_v53 = vld [vmem:[%s5831_s1 + $0x164] ss:$16 sps:$4 sm:$0xff]   ;;  %v3933_v56 = vld [vmem:[%s5830_s0] ss:$13 sps:$4 sm:$0xff]  }
  0x1a   :  { %v3911_v55 = vld [vmem:[%s5831_s1 + $0x364] ss:$16 sps:$4 sm:$0xff]   ;;  %v3913_v57 = vld [vmem:[%s5831_s1 + $0x160] ss:$16 sps:$4 sm:$0xff]   ;;  %v475_v0 = vrot.slane %v3933_v56, %v4621_v54 }
  0x1b   :  { %2703 = vmatpush1.bf16.msra.mxu0 %v3877_v26  ;;  %v3914_v58 = vld [vmem:[%s5831_s1 + $0x360] ss:$16 sps:$4 sm:$0xff]   ;;  %v3936_v59 = vld [vmem:[%s5830_s0 + $0x1a] ss:$13 sps:$4 sm:$0xff]  }
  0x1c   :  { %2746 = vmatpush1.bf16.msra.mxu1 %v3878_v27  ;;  %2704 = vmatprep.subr.bf16.mxu0 %v3879_v28  ;;  %v3939_v60 = vld [vmem:[%s5830_s0 + $0x34] ss:$13 sps:$4 sm:$0xff]   ;;  %v3942_v63 = vld [vmem:[%s5830_s0 + $0x4e] ss:$13 sps:$4 sm:$0xff]   ;;  %v489_v2 = vrot.slane %v3936_v59, %v4621_v54 }
  0x1d   :  { %2747 = vmatprep.subr.bf16.mxu1 %v3881_v29  ;;  %v3915_v61 = vld [vmem:[%s5831_s1 + $0x144] ss:$16 sps:$4 sm:$0xff]   ;;  %v503_v3 = vrot.slane %v3939_v60, %v4621_v54  ;;  %v3938_v4 = vld [vmem:[%s5830_s0 + $0x1e] ss:$13 sps:$4 sm:$0xff]   ;;  %v517_v5 = vrot.slane %v3942_v63, %v4621_v54 }
  0x1e   :  { %v3917_v62 = vld [vmem:[%s5831_s1 + $0x344] ss:$16 sps:$4 sm:$0xff]   ;;  %v526_v8 = vcombine.high %v475_v0, %v489_v2  ;;  %v3919_v9 = vld [vmem:[%s5831_s1 + $0x140] ss:$16 sps:$4 sm:$0xff]   ;;  %v4684_v17 = vrot.slane %v3938_v4, %v4621_v54  ;;  %v525_v24 = vcombine.low %v475_v0, %v489_v2 }
  0x1f   :  { %2705 = vmatpush1.bf16.msra.mxu0 %v3883_v30  ;;  %v3935_v1 = vld [vmem:[%s5830_s0 + $0x4] ss:$13 sps:$4 sm:$0xff]   ;;  %v530_v11 = vcombine.high %v503_v3, %v517_v5  ;;  %v529_v25 = vcombine.low %v503_v3, %v517_v5 }
  0x20   :  { %2748 = vmatpush1.bf16.msra.mxu1 %v3884_v31  ;;  %2706 = vmatprep.subr.bf16.mxu0 %v3885_v32  ;;  %v3941_v6 = vld [vmem:[%s5830_s0 + $0x38] ss:$13 sps:$4 sm:$0xff]   ;;  %v3944_v7 = vld [vmem:[%s5830_s0 + $0x52] ss:$13 sps:$4 sm:$0xff]   ;;  %v553_v13 = vrot.slane %v526_v8, %v4621_v54  ;;  %v4681_v16 = vrot.slane %v3935_v1, %v4621_v54  ;;  %v539_v32 = vrot.slane %v525_v24, %v4621_v54 }
  0x21   :  { %2749 = vmatprep.subr.bf16.mxu1 %v3887_v33  ;;  %v3920_v10 = vld [vmem:[%s5831_s1 + $0x340] ss:$16 sps:$4 sm:$0xff]   ;;  %v3921_v12 = vld [vmem:[%s5831_s1 + $0x124] ss:$16 sps:$4 sm:$0xff]   ;;  %v581_v15 = vrot.slane %v530_v11, %v4621_v54  ;;  %v4687_v18 = vrot.slane %v3941_v6, %v4621_v54  ;;  %v4690_v19 = vrot.slane %v3944_v7, %v4621_v54  ;;  %v567_v33 = vrot.slane %v529_v25, %v4621_v54 }
  0x22   :  { %v3923_v14 = vld [vmem:[%s5831_s1 + $0x324] ss:$16 sps:$4 sm:$0xff]   ;;  %v3925_v20 = vld [vmem:[%s5831_s1 + $0x120] ss:$16 sps:$4 sm:$0xff]   ;;  %v528_v28 = vcombine.high %v4681_v16, %v4684_v17 }
  0x23   :  { %2707 = vmatpush2.bf16.msra.mxu0 %v3889_v34  ;;  %v3926_v21 = vld [vmem:[%s5831_s1 + $0x320] ss:$16 sps:$4 sm:$0xff]   ;;  %v4698_v22 = vcombine.low %v553_v13, %v581_v15  ;;  %v4700_v23 = vcombine.high %v553_v13, %v581_v15  ;;  %v3927_v26 = vld [vmem:[%s5831_s1 + $0x104] ss:$16 sps:$4 sm:$0xff]   ;;  %v532_v29 = vcombine.high %v4687_v18, %v4690_v19  ;;  %v4732_v39 = vcombine.high %v539_v32, %v567_v33 }
  0x24   :  { %2750 = vmatpush2.bf16.msra.mxu1 %v3890_v35  ;;  %2708 = vmatprep.subr.bf16.mxu0 %v3891_v36  ;;  %v3929_v27 = vld [vmem:[%s5831_s1 + $0x304] ss:$16 sps:$4 sm:$0xff]   ;;  %v3931_v30 = vld [vmem:[%s5831_s1 + $0x100] ss:$16 sps:$4 sm:$0xff]   ;;  %v560_v36 = vrot.slane %v528_v28, %v4621_v54 }
  0x25   :  { %2751 = vmatprep.subr.bf16.mxu1 %v3893_v37  ;;  %2722 = vmatprep.mubr.bf16.mxu0 %v4698_v22  ;;  %v3932_v31 = vld [vmem:[%s5831_s1 + $0x300] ss:$16 sps:$4 sm:$0xff]   ;;  %v3947_v34 = vld [vmem:[%s5831_s1 + $0x4e4] ss:$16 sps:$4 sm:$0xff]   ;;  %v588_v37 = vrot.slane %v532_v29, %v4621_v54 }
  0x26   :  { %2765 = vmatprep.mubr.bf16.mxu1 %v4700_v23  ;;  %v3950_v35 = vld [vmem:[%s5831_s1 + $0x6e4] ss:$16 sps:$4 sm:$0xff]   ;;  %v3945_v40 = vld [vmem:[%s5831_s1 + $0x4e0] ss:$16 sps:$4 sm:$0xff]  }
  0x27   :  { %2709 = vmatpush2.bf16.msra.mxu0 %v3895_v38  ;;  %v4730_v38 = vcombine.low %v539_v32, %v567_v33  ;;  %v3948_v41 = vld [vmem:[%s5831_s1 + $0x6e0] ss:$16 sps:$4 sm:$0xff]   ;;  %v3974_v59 = vld [vmem:[%s5831_s1 + $0x664] ss:$16 sps:$4 sm:$0xff]  }
  0x28   :  { %2752 = vmatpush2.bf16.msra.mxu1 %v3896_v42  ;;  %2710 = vmatprep.subr.bf16.mxu0 %v3897_v43  ;;  %v3953_v42 = vld [vmem:[%s5831_s1 + $0x4c4] ss:$16 sps:$4 sm:$0xff]   ;;  %v3954_v48 = vld [vmem:[%s5831_s1 + $0x6c0] ss:$16 sps:$4 sm:$0xff]  }
  0x29   :  { %2753 = vmatprep.subr.bf16.mxu1 %v3899_v44  ;;  %v3956_v43 = vld [vmem:[%s5831_s1 + $0x6c4] ss:$16 sps:$4 sm:$0xff]   ;;  %v4746_v44 = vcombine.low %v560_v36, %v588_v37  ;;  %v3963_v56 = vld [vmem:[%s5831_s1 + $0x480] ss:$16 sps:$4 sm:$0xff]  }
  0x2a   :  { %v3969_v60 = vld [vmem:[%s5831_s1 + $0x460] ss:$16 sps:$4 sm:$0xff]   ;;  %v3980_v63 = vld [vmem:[%s5831_s1 + $0x644] ss:$16 sps:$4 sm:$0xff]  }
  0x2b   :  { %2711 = vmatpush2.bf16.msra.mxu0 %v3901_v45  ;;  %v4748_v45 = vcombine.high %v560_v36, %v588_v37  ;;  %v3975_v0 = vld [vmem:[%s5831_s1 + $0x440] ss:$16 sps:$4 sm:$0xff]   ;;  %v3983_v2 = vld [vmem:[%s5831_s1 + $0x424] ss:$16 sps:$4 sm:$0xff]  }
  0x2c   :  { %2754 = vmatpush2.bf16.msra.mxu1 %v3902_v46  ;;  %2712 = vmatprep.subr.bf16.mxu0 %v3903_v49  ;;  %v3951_v46 = vld [vmem:[%s5831_s1 + $0x4c0] ss:$16 sps:$4 sm:$0xff]   ;;  %v3959_v49 = vld [vmem:[%s5831_s1 + $0x4a4] ss:$16 sps:$4 sm:$0xff]  }
  0x2d   :  { %2755 = vmatprep.subr.bf16.mxu1 %v3905_v50  ;;  %v3962_v50 = vld [vmem:[%s5831_s1 + $0x6a4] ss:$16 sps:$4 sm:$0xff]   ;;  %v3978_v1 = vld [vmem:[%s5831_s1 + $0x640] ss:$16 sps:$4 sm:$0xff]  }
  0x2e   :  { %v3986_v3 = vld [vmem:[%s5831_s1 + $0x624] ss:$16 sps:$4 sm:$0xff]   ;;  %v3981_v4 = vld [vmem:[%s5831_s1 + $0x420] ss:$16 sps:$4 sm:$0xff]  }
  0x2f   :  { %2713 = vmatpush2.bf16.msra.mxu0 %v3907_v51  ;;  %v3957_v51 = vld [vmem:[%s5831_s1 + $0x4a0] ss:$16 sps:$4 sm:$0xff]   ;;  %v3989_v6 = vld [vmem:[%s5831_s1 + $0x404] ss:$16 sps:$4 sm:$0xff]  }
  0x30   :  { %2756 = vmatpush2.bf16.msra.mxu1 %v3908_v52  ;;  %2714 = vmatprep.subr.bf16.mxu0 %v3909_v53  ;;  %v3960_v52 = vld [vmem:[%s5831_s1 + $0x6a0] ss:$16 sps:$4 sm:$0xff]   ;;  %v3965_v53 = vld [vmem:[%s5831_s1 + $0x484] ss:$16 sps:$4 sm:$0xff]  }
  0x31   :  { %2757 = vmatprep.subr.bf16.mxu1 %v3911_v55  ;;  %v3968_v55 = vld [vmem:[%s5831_s1 + $0x684] ss:$16 sps:$4 sm:$0xff]   ;;  %v3984_v5 = vld [vmem:[%s5831_s1 + $0x620] ss:$16 sps:$4 sm:$0xff]  }
  0x32   :  { %v3992_v7 = vld [vmem:[%s5831_s1 + $0x604] ss:$16 sps:$4 sm:$0xff]   ;;  %v3987_v8 = vld [vmem:[%s5831_s1 + $0x400] ss:$16 sps:$4 sm:$0xff]  }
  0x33   :  { %2715 = vmatpush2.bf16.msra.mxu0 %v3913_v57  ;;  %v3966_v57 = vld [vmem:[%s5831_s1 + $0x680] ss:$16 sps:$4 sm:$0xff]   ;;  %v3998_v11 = vld [vmem:[%s5831_s1 + $0x7e4] ss:$16 sps:$4 sm:$0xff]  }
  0x34   :  { %2758 = vmatpush2.bf16.msra.mxu1 %v3914_v58  ;;  %2716 = vmatprep.subr.bf16.mxu0 %v3915_v61  ;;  %v3971_v58 = vld [vmem:[%s5831_s1 + $0x464] ss:$16 sps:$4 sm:$0xff]   ;;  %v3972_v61 = vld [vmem:[%s5831_s1 + $0x660] ss:$16 sps:$4 sm:$0xff]  }
  0x35   :  { %2759 = vmatprep.subr.bf16.mxu1 %v3917_v62  ;;  %v3977_v62 = vld [vmem:[%s5831_s1 + $0x444] ss:$16 sps:$4 sm:$0xff]   ;;  %v3996_v13 = vld [vmem:[%s5831_s1 + $0x7e0] ss:$16 sps:$4 sm:$0xff]  }
  0x36   :  { %v4004_v15 = vld [vmem:[%s5831_s1 + $0x7c4] ss:$16 sps:$4 sm:$0xff]  }
  0x37   :  { %2717 = vmatpush2.bf16.msra.mxu0 %v3919_v9  ;;  %v3990_v9 = vld [vmem:[%s5831_s1 + $0x600] ss:$16 sps:$4 sm:$0xff]   ;;  %v4007_v24 = vld [vmem:[%s5831_s1 + $0x5a4] ss:$16 sps:$4 sm:$0xff]  }
  0x38   :  { %2760 = vmatpush2.bf16.msra.mxu1 %v3920_v10  ;;  %2718 = vmatprep.subr.bf16.mxu0 %v3921_v12  ;;  %v3995_v10 = vld [vmem:[%s5831_s1 + $0x5e4] ss:$16 sps:$4 sm:$0xff]   ;;  %v3993_v12 = vld [vmem:[%s5831_s1 + $0x5e0] ss:$16 sps:$4 sm:$0xff]  }
  0x39   :  { %2761 = vmatprep.subr.bf16.mxu1 %v3923_v14  ;;  %v4001_v14 = vld [vmem:[%s5831_s1 + $0x5c4] ss:$16 sps:$4 sm:$0xff]  }
  0x3a   :  { %v4010_v25 = vld [vmem:[%s5831_s1 + $0x7a4] ss:$16 sps:$4 sm:$0xff]  }
  0x3b   :  { %2719 = vmatpush2.bf16.msra.mxu0 %v3925_v20  ;;  %v3999_v20 = vld [vmem:[%s5831_s1 + $0x5c0] ss:$16 sps:$4 sm:$0xff]   ;;  %v4013_v28 = vld [vmem:[%s5831_s1 + $0x584] ss:$16 sps:$4 sm:$0xff]  }
  0x3c   :  { %2762 = vmatpush2.bf16.msra.mxu1 %v3926_v21  ;;  %2720 = vmatprep.subr.bf16.mxu0 %v3927_v26  ;;  %v4002_v21 = vld [vmem:[%s5831_s1 + $0x7c0] ss:$16 sps:$4 sm:$0xff]   ;;  %v4016_v29 = vld [vmem:[%s5831_s1 + $0x784] ss:$16 sps:$4 sm:$0xff]  }
  0x3d   :  { %2763 = vmatprep.subr.bf16.mxu1 %v3929_v27  ;;  %v4005_v26 = vld [vmem:[%s5831_s1 + $0x5a0] ss:$16 sps:$4 sm:$0xff]   ;;  %v4019_v32 = vld [vmem:[%s5831_s1 + $0x564] ss:$16 sps:$4 sm:$0xff]  }
  0x3e   :  { %v4008_v27 = vld [vmem:[%s5831_s1 + $0x7a0] ss:$16 sps:$4 sm:$0xff]   ;;  %v4022_v33 = vld [vmem:[%s5831_s1 + $0x764] ss:$16 sps:$4 sm:$0xff]  }
  0x3f   :  { %2721 = vmatpush2.bf16.msra.mxu0 %v3931_v30  ;;  %v4011_v30 = vld [vmem:[%s5831_s1 + $0x580] ss:$16 sps:$4 sm:$0xff]   ;;  %v4025_v36 = vld [vmem:[%s5831_s1 + $0x544] ss:$16 sps:$4 sm:$0xff]  }
  0x40   :  { %2764 = vmatpush2.bf16.msra.mxu1 %v3932_v31  ;;  %2776 = vmatprep.subr.bf16.mxu0 %v3947_v34  ;;  %v4014_v31 = vld [vmem:[%s5831_s1 + $0x780] ss:$16 sps:$4 sm:$0xff]   ;;  %v4028_v37 = vld [vmem:[%s5831_s1 + $0x744] ss:$16 sps:$4 sm:$0xff]  }
  0x41   :  { %2819 = vmatprep.subr.bf16.mxu1 %v3950_v35  ;;  %v4017_v34 = vld [vmem:[%s5831_s1 + $0x560] ss:$16 sps:$4 sm:$0xff]  }
  0x42   :  { %2723 = vmatmul.mubr.bf16.vlgmr.msra.gmra.mxu0 %v4730_v38  ;;  %v4020_v35 = vld [vmem:[%s5831_s1 + $0x760] ss:$16 sps:$4 sm:$0xff]  }
  0x43   :  { %2766 = vmatmul.mubr.bf16.vlgmr.msra.gmra.mxu1 %v4732_v39  ;;  %2777 = vmatpush1.bf16.msra.mxu0 %v3945_v40  ;;  %v4023_v40 = vld [vmem:[%s5831_s1 + $0x540] ss:$16 sps:$4 sm:$0xff]  }
  0x44   :  { %2820 = vmatpush1.bf16.msra.mxu1 %v3948_v41  ;;  %2778 = vmatprep.subr.bf16.mxu0 %v3953_v42  ;;  %v4026_v41 = vld [vmem:[%s5831_s1 + $0x740] ss:$16 sps:$4 sm:$0xff]   ;;  %v4031_v42 = vld [vmem:[%s5831_s1 + $0x524] ss:$16 sps:$4 sm:$0xff]  }
  0x45   :  { %2821 = vmatprep.subr.bf16.mxu1 %v3956_v43  ;;  %2808 = vmatprep.mubr.bf16.mxu0 %v4746_v44  ;;  %v4034_v43 = vld [vmem:[%s5831_s1 + $0x724] ss:$16 sps:$4 sm:$0xff]  }
  0x46   :  { %2851 = vmatprep.mubr.bf16.mxu1 %v4748_v45 }
  0x47   :  { %2779 = vmatpush1.bf16.msra.mxu0 %v3951_v46  ;;  %v4029_v46 = vld [vmem:[%s5831_s1 + $0x520] ss:$16 sps:$4 sm:$0xff]  }
  0x48   :  { %2822 = vmatpush1.bf16.msra.mxu1 %v3954_v48  ;;  %2780 = vmatprep.subr.bf16.mxu0 %v3959_v49  ;;  %v4032_v48 = vld [vmem:[%s5831_s1 + $0x720] ss:$16 sps:$4 sm:$0xff]   ;;  %v527_v49 = vcombine.low %v4681_v16, %v4684_v17 }
  0x49   :  { %2823 = vmatprep.subr.bf16.mxu1 %v3962_v50  ;;  %v531_v50 = vcombine.low %v4687_v18, %v4690_v19  ;;  %v4038_v16 = vld [vmem:[%s5831_s1 + $0x700] ss:$16 sps:$4 sm:$0xff]   ;;  %v4043_v19 = vld [vmem:[%s5831_s1 + $0x8e4] ss:$16 sps:$4 sm:$0xff]  }
  0x4a   :  { %v546_v17 = vrot.slane %v527_v49, %v4621_v54  ;;  %v4091_v49 = vld [vmem:[%s5831_s1 + $0x9e4] ss:$16 sps:$4 sm:$0xff]  }
  0x4b   :  { %2781 = vmatpush1.bf16.msra.mxu0 %v3957_v51  ;;  %v4037_v51 = vld [vmem:[%s5831_s1 + $0x504] ss:$16 sps:$4 sm:$0xff]   ;;  %v574_v18 = vrot.slane %v531_v50, %v4621_v54 }
  0x4c   :  { %2824 = vmatpush1.bf16.msra.mxu1 %v3960_v52  ;;  %2782 = vmatprep.subr.bf16.mxu0 %v3965_v53  ;;  %v4040_v52 = vld [vmem:[%s5831_s1 + $0x704] ss:$16 sps:$4 sm:$0xff]   ;;  %v4035_v53 = vld [vmem:[%s5831_s1 + $0x500] ss:$16 sps:$4 sm:$0xff]  }
  0x4d   :  { %2825 = vmatprep.subr.bf16.mxu1 %v3968_v55  ;;  %v4046_v55 = vld [vmem:[%s5831_s1 + $0xae4] ss:$16 sps:$4 sm:$0xff]  }
  0x4e   :  { %v4094_v50 = vld [vmem:[%s5831_s1 + $0xbe4] ss:$16 sps:$4 sm:$0xff]  }
  0x4f   :  { %2783 = vmatpush1.bf16.msra.mxu0 %v3963_v56  ;;  %v4940_v56 = vcombine.low %v546_v17, %v574_v18 }
  0x50   :  { %2826 = vmatpush1.bf16.msra.mxu1 %v3966_v57  ;;  %2784 = vmatprep.subr.bf16.mxu0 %v3971_v58  ;;  %v4942_v57 = vcombine.high %v546_v17, %v574_v18  ;;  %v4041_v58 = vld [vmem:[%s5831_s1 + $0x8e0] ss:$16 sps:$4 sm:$0xff]  }
  0x51   :  { %2827 = vmatprep.subr.bf16.mxu1 %v3974_v59  ;;  %v4044_v59 = vld [vmem:[%s5831_s1 + $0xae0] ss:$16 sps:$4 sm:$0xff]  }
  0x52   :  { %v4095_v17 = vld [vmem:[%s5831_s1 + $0x9c0] ss:$16 sps:$4 sm:$0xff]  }
  0x53   :  { %2785 = vmatpush1.bf16.msra.mxu0 %v3969_v60  ;;  %v4049_v60 = vld [vmem:[%s5831_s1 + $0x8c4] ss:$16 sps:$4 sm:$0xff]   ;;  %v4098_v18 = vld [vmem:[%s5831_s1 + $0xbc0] ss:$16 sps:$4 sm:$0xff]  }
  0x54   :  { %2828 = vmatpush1.bf16.msra.mxu1 %v3972_v61  ;;  %2786 = vmatprep.subr.bf16.mxu0 %v3977_v62  ;;  %v4052_v61 = vld [vmem:[%s5831_s1 + $0xac4] ss:$16 sps:$4 sm:$0xff]   ;;  %v4047_v62 = vld [vmem:[%s5831_s1 + $0x8c0] ss:$16 sps:$4 sm:$0xff]  }
  0x55   :  { %2829 = vmatprep.subr.bf16.mxu1 %v3980_v63  ;;  %v4050_v63 = vld [vmem:[%s5831_s1 + $0xac0] ss:$16 sps:$4 sm:$0xff]  }
  0x57   :  { %2787 = vmatpush1.bf16.msra.mxu0 %v3975_v0  ;;  %v4055_v0 = vld [vmem:[%s5831_s1 + $0x8a4] ss:$16 sps:$4 sm:$0xff]  }
  0x58   :  { %2830 = vmatpush1.bf16.msra.mxu1 %v3978_v1  ;;  %2788 = vmatprep.subr.bf16.mxu0 %v3983_v2  ;;  %v4058_v1 = vld [vmem:[%s5831_s1 + $0xaa4] ss:$16 sps:$4 sm:$0xff]   ;;  %v4053_v2 = vld [vmem:[%s5831_s1 + $0x8a0] ss:$16 sps:$4 sm:$0xff]  }
  0x59   :  { %2831 = vmatprep.subr.bf16.mxu1 %v3986_v3  ;;  %v4056_v3 = vld [vmem:[%s5831_s1 + $0xaa0] ss:$16 sps:$4 sm:$0xff]  }
  0x5b   :  { %2789 = vmatpush1.bf16.msra.mxu0 %v3981_v4  ;;  %v4061_v4 = vld [vmem:[%s5831_s1 + $0x884] ss:$16 sps:$4 sm:$0xff]  }
  0x5c   :  { %2832 = vmatpush1.bf16.msra.mxu1 %v3984_v5  ;;  %2790 = vmatprep.subr.bf16.mxu0 %v3989_v6  ;;  %v4137_v5 = vld [vmem:[%s5830_s0 + $0x8] ss:$13 sps:$4 sm:$0xff]  }
  0x5d   :  { %2833 = vmatprep.subr.bf16.mxu1 %v3992_v7  ;;  %v4064_v6 = vld [vmem:[%s5831_s1 + $0xa84] ss:$16 sps:$4 sm:$0xff]  }
  0x5e   :  { %v4140_v7 = vld [vmem:[%s5830_s0 + $0x22] ss:$13 sps:$4 sm:$0xff]  }
  0x5f   :  { %2791 = vmatpush1.bf16.msra.mxu0 %v3987_v8  ;;  %v4143_v8 = vld [vmem:[%s5830_s0 + $0x3c] ss:$13 sps:$4 sm:$0xff]  }
  0x60   :  { %2834 = vmatpush1.bf16.msra.mxu1 %v3990_v9  ;;  %2792 = vmatprep.subr.bf16.mxu0 %v3995_v10  ;;  %v4992_v9 = vrot.slane %v4137_v5, %v4621_v54  ;;  %v4146_v10 = vld [vmem:[%s5830_s0 + $0x56] ss:$13 sps:$4 sm:$0xff]  }
  0x61   :  { %2835 = vmatprep.subr.bf16.mxu1 %v3998_v11  ;;  %v4998_v11 = vrot.slane %v4140_v7, %v4621_v54  ;;  %v4124_v5 = vld [vmem:[%s5831_s1 + $0xb44] ss:$16 sps:$4 sm:$0xff]   ;;  %v4122_v7 = vld [vmem:[%s5831_s1 + $0xb40] ss:$16 sps:$4 sm:$0xff]  }
  0x63   :  { %2793 = vmatpush2.bf16.msra.mxu0 %v3993_v12  ;;  %v4059_v12 = vld [vmem:[%s5831_s1 + $0x880] ss:$16 sps:$4 sm:$0xff]  }
  0x64   :  { %2836 = vmatpush2.bf16.msra.mxu1 %v3996_v13  ;;  %2794 = vmatprep.subr.bf16.mxu0 %v4001_v14  ;;  %v4062_v13 = vld [vmem:[%s5831_s1 + $0xa80] ss:$16 sps:$4 sm:$0xff]   ;;  %v4067_v14 = vld [vmem:[%s5831_s1 + $0x864] ss:$16 sps:$4 sm:$0xff]  }
  0x65   :  { %2837 = vmatprep.subr.bf16.mxu1 %v4004_v15  ;;  %v5010_v15 = vrot.slane %v4143_v8, %v4621_v54  ;;  %v4127_v8 = vld [vmem:[%s5831_s1 + $0x924] ss:$16 sps:$4 sm:$0xff]  }
  0x67   :  { %2795 = vmatpush2.bf16.msra.mxu0 %v3999_v20  ;;  %v4070_v20 = vld [vmem:[%s5831_s1 + $0xa64] ss:$16 sps:$4 sm:$0xff]  }
  0x68   :  { %2838 = vmatpush2.bf16.msra.mxu1 %v4002_v21  ;;  %2796 = vmatprep.subr.bf16.mxu0 %v4007_v24  ;;  %v5016_v21 = vrot.slane %v4146_v10, %v4621_v54  ;;  %v662_v24 = vcombine.high %v4992_v9, %v4998_v11  ;;  %v4139_v10 = vld [vmem:[%s5830_s0 + $0xc] ss:$13 sps:$4 sm:$0x11]  }
  0x69   :  { %2839 = vmatprep.subr.bf16.mxu1 %v4010_v25  ;;  %v4065_v25 = vld [vmem:[%s5831_s1 + $0x860] ss:$16 sps:$4 sm:$0xff]  }
  0x6b   :  { %2797 = vmatpush2.bf16.msra.mxu0 %v4005_v26  ;;  %v4068_v26 = vld [vmem:[%s5831_s1 + $0xa60] ss:$16 sps:$4 sm:$0xff]  }
  0x6c   :  { %2840 = vmatpush2.bf16.msra.mxu1 %v4008_v27  ;;  %2798 = vmatprep.subr.bf16.mxu0 %v4013_v28  ;;  %v665_v27 = vcombine.high %v5010_v15, %v5016_v21  ;;  %v687_v28 = vrot.slane %v662_v24, %v4621_v54  ;;  %v4148_v24 = vld [vmem:[%s5830_s0 + $0x5a] ss:$13 sps:$4 sm:$0x11]  }
  0x6d   :  { %2841 = vmatprep.subr.bf16.mxu1 %v4016_v29  ;;  %v4073_v29 = vld [vmem:[%s5831_s1 + $0x844] ss:$16 sps:$4 sm:$0xff]  }
  0x6f   :  { %2799 = vmatpush2.bf16.msra.mxu0 %v4011_v30  ;;  %v4076_v30 = vld [vmem:[%s5831_s1 + $0xa44] ss:$16 sps:$4 sm:$0xff]  }
  0x70   :  { %2842 = vmatpush2.bf16.msra.mxu1 %v4014_v31  ;;  %2800 = vmatprep.subr.bf16.mxu0 %v4019_v32  ;;  %v708_v31 = vrot.slane %v665_v27, %v4621_v54  ;;  %v4071_v32 = vld [vmem:[%s5831_s1 + $0x840] ss:$16 sps:$4 sm:$0xff]  }
  0x71   :  { %2843 = vmatprep.subr.bf16.mxu1 %v4022_v33  ;;  %v4074_v33 = vld [vmem:[%s5831_s1 + $0xa40] ss:$16 sps:$4 sm:$0xff]  }
  0x72   :  { %v4128_v27 = vld [vmem:[%s5831_s1 + $0xb20] ss:$16 sps:$4 sm:$0xff]  }
  0x73   :  { %2801 = vmatpush2.bf16.msra.mxu0 %v4017_v34  ;;  %v5042_v34 = vcombine.low %v687_v28, %v708_v31 }
  0x74   :  { %2844 = vmatpush2.bf16.msra.mxu1 %v4020_v35  ;;  %2802 = vmatprep.subr.bf16.mxu0 %v4025_v36  ;;  %v5044_v35 = vcombine.high %v687_v28, %v708_v31  ;;  %v4079_v36 = vld [vmem:[%s5831_s1 + $0x824] ss:$16 sps:$4 sm:$0xff]  }
  0x75   :  { %2845 = vmatprep.subr.bf16.mxu1 %v4028_v37  ;;  %v4082_v37 = vld [vmem:[%s5831_s1 + $0xa24] ss:$16 sps:$4 sm:$0xff]  }
  0x76   :  { %v4133_v28 = vld [vmem:[%s5831_s1 + $0x904] ss:$16 sps:$4 sm:$0xff]  }
  0x77   :  { %2803 = vmatpush2.bf16.msra.mxu0 %v4023_v40  ;;  %v4077_v40 = vld [vmem:[%s5831_s1 + $0x820] ss:$16 sps:$4 sm:$0xff]  }
  0x78   :  { %2846 = vmatpush2.bf16.msra.mxu1 %v4026_v41  ;;  %2804 = vmatprep.subr.bf16.mxu0 %v4031_v42  ;;  %v4080_v41 = vld [vmem:[%s5831_s1 + $0xa20] ss:$16 sps:$4 sm:$0xff]   ;;  %v4085_v42 = vld [vmem:[%s5831_s1 + $0x804] ss:$16 sps:$4 sm:$0xff]  }
  0x79   :  { %2847 = vmatprep.subr.bf16.mxu1 %v4034_v43  ;;  %v4088_v43 = vld [vmem:[%s5831_s1 + $0xa04] ss:$16 sps:$4 sm:$0xff]  }
  0x7b   :  { %2805 = vmatpush2.bf16.msra.mxu0 %v4029_v46  ;;  %v4083_v46 = vld [vmem:[%s5831_s1 + $0x800] ss:$16 sps:$4 sm:$0xff]  }
  0x7c   :  { %2848 = vmatpush2.bf16.msra.mxu1 %v4032_v48  ;;  %2806 = vmatprep.subr.bf16.mxu0 %v4037_v51  ;;  %v4086_v48 = vld [vmem:[%s5831_s1 + $0xa00] ss:$16 sps:$4 sm:$0xff]  }
  0x7d   :  { %2849 = vmatprep.subr.bf16.mxu1 %v4040_v52  ;;  %v4089_v51 = vld [vmem:[%s5831_s1 + $0x9e0] ss:$16 sps:$4 sm:$0xff]  }
  0x7e   :  { %v4092_v52 = vld [vmem:[%s5831_s1 + $0xbe0] ss:$16 sps:$4 sm:$0xff]  }
  0x7f   :  { %2807 = vmatpush2.bf16.msra.mxu0 %v4035_v53  ;;  %v4097_v53 = vld [vmem:[%s5831_s1 + $0x9c4] ss:$16 sps:$4 sm:$0xff]  }
  0x80   :  { %2850 = vmatpush2.bf16.msra.mxu1 %v4038_v16  ;;  %2862 = vmatprep.subr.bf16.mxu0 %v4043_v19  ;;  %v4100_v16 = vld [vmem:[%s5831_s1 + $0xbc4] ss:$16 sps:$4 sm:$0xff]  }
  0x81   :  { %2905 = vmatprep.subr.bf16.mxu1 %v4046_v55  ;;  %v4103_v19 = vld [vmem:[%s5831_s1 + $0x9a4] ss:$16 sps:$4 sm:$0xff]  }
  0x82   :  { %2809 = vmatmul.mubr.bf16.vlgmr.msra.gmra.mxu0 %v4940_v56  ;;  %v4106_v55 = vld [vmem:[%s5831_s1 + $0xba4] ss:$16 sps:$4 sm:$0xff]  }
  0x83   :  { %2852 = vmatmul.mubr.bf16.vlgmr.msra.gmra.mxu1 %v4942_v57  ;;  %2863 = vmatpush1.bf16.msra.mxu0 %v4041_v58  ;;  %v4101_v58 = vld [vmem:[%s5831_s1 + $0x9a0] ss:$16 sps:$4 sm:$0xff]  }
  0x84   :  { %2906 = vmatpush1.bf16.msra.mxu1 %v4044_v59  ;;  %2864 = vmatprep.subr.bf16.mxu0 %v4049_v60  ;;  %v4104_v59 = vld [vmem:[%s5831_s1 + $0xba0] ss:$16 sps:$4 sm:$0xff]   ;;  %v4109_v60 = vld [vmem:[%s5831_s1 + $0x984] ss:$16 sps:$4 sm:$0xff]  }
  0x85   :  { %2907 = vmatprep.subr.bf16.mxu1 %v4052_v61  ;;  %2894 = vmatprep.mubr.bf16.mxu0 %v5042_v34  ;;  %v4112_v61 = vld [vmem:[%s5831_s1 + $0xb84] ss:$16 sps:$4 sm:$0xff]  }
  0x86   :  { %2937 = vmatprep.mubr.bf16.mxu1 %v5044_v35 }
  0x87   :  { %2865 = vmatpush1.bf16.msra.mxu0 %v4047_v62  ;;  %v4107_v62 = vld [vmem:[%s5831_s1 + $0x980] ss:$16 sps:$4 sm:$0xff]  }
  0x88   :  { %2908 = vmatpush1.bf16.msra.mxu1 %v4050_v63  ;;  %2866 = vmatprep.subr.bf16.mxu0 %v4055_v0  ;;  %v4110_v63 = vld [vmem:[%s5831_s1 + $0xb80] ss:$16 sps:$4 sm:$0xff]   ;;  %v4115_v0 = vld [vmem:[%s5831_s1 + $0x964] ss:$16 sps:$4 sm:$0xff]  }
  0x89   :  { %2909 = vmatprep.subr.bf16.mxu1 %v4058_v1  ;;  %v4118_v1 = vld [vmem:[%s5831_s1 + $0xb64] ss:$16 sps:$4 sm:$0xff]  }
  0x8b   :  { %2867 = vmatpush1.bf16.msra.mxu0 %v4053_v2  ;;  %v4113_v2 = vld [vmem:[%s5831_s1 + $0x960] ss:$16 sps:$4 sm:$0xff]  }
  0x8c   :  { %2910 = vmatpush1.bf16.msra.mxu1 %v4056_v3  ;;  %2868 = vmatprep.subr.bf16.mxu0 %v4061_v4  ;;  %v4116_v3 = vld [vmem:[%s5831_s1 + $0xb60] ss:$16 sps:$4 sm:$0xff]   ;;  %v4121_v4 = vld [vmem:[%s5831_s1 + $0x944] ss:$16 sps:$4 sm:$0xff]  }
  0x8d   :  { %2911 = vmatprep.subr.bf16.mxu1 %v4064_v6  ;;  %v4119_v6 = vld [vmem:[%s5831_s1 + $0x940] ss:$16 sps:$4 sm:$0xff]  }
  0x8f   :  { %2869 = vmatpush1.bf16.msra.mxu0 %v4059_v12  ;;  %v4130_v12 = vld [vmem:[%s5831_s1 + $0xb24] ss:$16 sps:$4 sm:$0xff]  }
  0x90   :  { %2912 = vmatpush1.bf16.msra.mxu1 %v4062_v13  ;;  %2870 = vmatprep.subr.bf16.mxu0 %v4067_v14  ;;  %v4142_v13 = vld [vmem:[%s5830_s0 + $0x26] ss:$13 sps:$4 sm:$0x11]  }
  0x91   :  { %2913 = vmatprep.subr.bf16.mxu1 %v4070_v20  ;;  %v4125_v14 = vld [vmem:[%s5831_s1 + $0x920] ss:$16 sps:$4 sm:$0xff]  }
  0x92   :  { %v4145_v20 = vld [vmem:[%s5830_s0 + $0x40] ss:$13 sps:$4 sm:$0x11]  }
  0x93   :  { %2871 = vmatpush1.bf16.msra.mxu0 %v4065_v25  ;;  %v661_v25 = vcombine.low %v4992_v9, %v4998_v11  ;;  %v618_v9 = vrot.slane %v4139_v10, %v4621_v54  ;;  %v632_v11 = vrot.slane %v4142_v13, %v4621_v54  ;;  %v4188_v10 = vld [vmem:[%s5831_s1 + $0x268] ss:$16 sps:$4 sm:$0xff]   ;;  %v4196_v13 = vld [vmem:[%s5831_s1 + $0x24c] ss:$16 sps:$4 sm:$0xff]  }
  0x94   :  { %2914 = vmatpush1.bf16.msra.mxu1 %v4068_v26  ;;  %2872 = vmatprep.subr.bf16.mxu0 %v4073_v29  ;;  %v664_v26 = vcombine.low %v5010_v15, %v5016_v21  ;;  %v4136_v29 = vld [vmem:[%s5831_s1 + $0xb04] ss:$16 sps:$4 sm:$0xff]   ;;  %v4131_v15 = vld [vmem:[%s5831_s1 + $0x900] ss:$16 sps:$4 sm:$0xff]   ;;  %v646_v21 = vrot.slane %v4145_v20, %v4621_v54  ;;  %v4194_v20 = vld [vmem:[%s5831_s1 + $0x248] ss:$16 sps:$4 sm:$0xff]  }
  0x95   :  { %2915 = vmatprep.subr.bf16.mxu1 %v4076_v30  ;;  %v660_v30 = vrot.slane %v4148_v24, %v4621_v54  ;;  %v673_v31 = vrot.slane %v661_v25, %v4621_v54  ;;  %v4199_v24 = vld [vmem:[%s5831_s1 + $0x1ec] ss:$16 sps:$4 sm:$0xff]  }
  0x96   :  { %v4202_v25 = vld [vmem:[%s5831_s1 + $0x22c] ss:$16 sps:$4 sm:$0xff]  }
  0x97   :  { %2873 = vmatpush1.bf16.msra.mxu0 %v4071_v32  ;;  %v694_v32 = vrot.slane %v664_v26, %v4621_v54  ;;  %v4197_v26 = vld [vmem:[%s5831_s1 + $0x1e8] ss:$16 sps:$4 sm:$0xff]  }
  0x98   :  { %2916 = vmatpush1.bf16.msra.mxu1 %v4074_v33  ;;  %2874 = vmatprep.subr.bf16.mxu0 %v4079_v36  ;;  %v4134_v33 = vld [vmem:[%s5831_s1 + $0xb00] ss:$16 sps:$4 sm:$0xff]   ;;  %v4151_v36 = vld [vmem:[%s5831_s1 + $0xc24] ss:$16 sps:$4 sm:$0xff]  }
  0x99   :  { %2917 = vmatprep.subr.bf16.mxu1 %v4082_v37  ;;  %v4154_v37 = vld [vmem:[%s5831_s1 + $0xec] ss:$16 sps:$4 sm:$0xff]  }
  0x9b   :  { %2875 = vmatpush1.bf16.msra.mxu0 %v4077_v40  ;;  %v5196_v40 = vcombine.low %v673_v31, %v694_v32 }
  0x9c   :  { %2918 = vmatpush1.bf16.msra.mxu1 %v4080_v41  ;;  %2876 = vmatprep.subr.bf16.mxu0 %v4085_v42  ;;  %v5198_v41 = vcombine.high %v673_v31, %v694_v32  ;;  %v4149_v42 = vld [vmem:[%s5831_s1 + $0xc20] ss:$16 sps:$4 sm:$0xff]   ;;  %v4212_v31 = vld [vmem:[%s5831_s1 + $0x3e8] ss:$16 sps:$4 sm:$0xff]   ;;  %v4217_v32 = vld [vmem:[%s5831_s1 + $0x18c] ss:$16 sps:$4 sm:$0xff]  }
  0x9d   :  { %2919 = vmatprep.subr.bf16.mxu1 %v4088_v43  ;;  %v663_v43 = vcombine.low %v618_v9, %v632_v11  ;;  %v4203_v9 = vld [vmem:[%s5831_s1 + $0x1c8] ss:$16 sps:$4 sm:$0xff]  }
  0x9e   :  { %v4206_v11 = vld [vmem:[%s5831_s1 + $0x208] ss:$16 sps:$4 sm:$0xff]  }
  0x9f   :  { %2877 = vmatpush1.bf16.msra.mxu0 %v4083_v46  ;;  %v666_v46 = vcombine.low %v646_v21, %v660_v30  ;;  %v4214_v21 = vld [vmem:[%s5831_s1 + $0x3ec] ss:$16 sps:$4 sm:$0xff]   ;;  %v4209_v30 = vld [vmem:[%s5831_s1 + $0x1a8] ss:$16 sps:$4 sm:$0xff]  }
  0xa0   :  { %2920 = vmatpush1.bf16.msra.mxu1 %v4086_v48  ;;  %2878 = vmatprep.subr.bf16.mxu0 %v4091_v49  ;;  %v4152_v48 = vld [vmem:[%s5831_s1 + $0xe8] ss:$16 sps:$4 sm:$0xff]   ;;  %v4157_v49 = vld [vmem:[%s5831_s1 + $0xc04] ss:$16 sps:$4 sm:$0xff]  }
  0xa1   :  { %2921 = vmatprep.subr.bf16.mxu1 %v4094_v50  ;;  %v4160_v50 = vld [vmem:[%s5831_s1 + $0xcc] ss:$16 sps:$4 sm:$0xff]  }
  0xa3   :  { %2879 = vmatpush2.bf16.msra.mxu0 %v4089_v51  ;;  %v4155_v51 = vld [vmem:[%s5831_s1 + $0xc00] ss:$16 sps:$4 sm:$0xff]  }
  0xa4   :  { %2922 = vmatpush2.bf16.msra.mxu1 %v4092_v52  ;;  %2880 = vmatprep.subr.bf16.mxu0 %v4097_v53  ;;  %v680_v52 = vrot.slane %v663_v43, %v4621_v54  ;;  %v701_v53 = vrot.slane %v666_v46, %v4621_v54  ;;  %v4226_v43 = vld [vmem:[%s5831_s1 + $0x3ac] ss:$16 sps:$4 sm:$0xff]   ;;  %v4221_v46 = vld [vmem:[%s5831_s1 + $0x168] ss:$16 sps:$4 sm:$0xff]  }
  0xa5   :  { %2923 = vmatprep.subr.bf16.mxu1 %v4100_v16  ;;  %v4158_v16 = vld [vmem:[%s5831_s1 + $0xc8] ss:$16 sps:$4 sm:$0xff]  }
  0xa7   :  { %2881 = vmatpush2.bf16.msra.mxu0 %v4095_v17  ;;  %v4163_v17 = vld [vmem:[%s5831_s1 + $0xac] ss:$16 sps:$4 sm:$0xff]  }
  0xa8   :  { %2924 = vmatpush2.bf16.msra.mxu1 %v4098_v18  ;;  %2882 = vmatprep.subr.bf16.mxu0 %v4103_v19  ;;  %v4166_v18 = vld [vmem:[%s5831_s1 + $0x2ec] ss:$16 sps:$4 sm:$0xff]   ;;  %v4450_v19 = vmov 0  }
  0xa9   :  { %2925 = vmatprep.subr.bf16.mxu1 %v4106_v55  ;;  %v5230_v55 = vcombine.low %v680_v52, %v701_v53  ;;  %v4230_v52 = vld [vmem:[%s5831_s1 + $0x388] ss:$16 sps:$4 sm:$0xff]   ;;  %v4235_v53 = vld [vmem:[%s5831_s1 + $0x12c] ss:$16 sps:$4 sm:$0xff]  }
  0xab   :  { %2883 = vmatpush2.bf16.msra.mxu0 %v4101_v58  ;;  %v4161_v58 = vld [vmem:[%s5831_s1 + $0xa8] ss:$16 sps:$4 sm:$0xff]  }
  0xac   :  { %2926 = vmatpush2.bf16.msra.mxu1 %v4104_v59  ;;  %2884 = vmatprep.subr.bf16.mxu0 %v4109_v60  ;;  %v4164_v59 = vld [vmem:[%s5831_s1 + $0x2e8] ss:$16 sps:$4 sm:$0xff]   ;;  %v4169_v60 = vld [vmem:[%s5831_s1 + $0x8c] ss:$16 sps:$4 sm:$0xff]  }
  0xad   :  { %2927 = vmatprep.subr.bf16.mxu1 %v4112_v61  ;;  %v4167_v61 = vld [vmem:[%s5831_s1 + $0x88] ss:$16 sps:$4 sm:$0xff]  }
  0xaf   :  { %2885 = vmatpush2.bf16.msra.mxu0 %v4107_v62  ;;  %v4170_v62 = vld [vmem:[%s5831_s1 + $0x2c8] ss:$16 sps:$4 sm:$0xff]  }
  0xb0   :  { %2928 = vmatpush2.bf16.msra.mxu1 %v4110_v63  ;;  %2886 = vmatprep.subr.bf16.mxu0 %v4115_v0  ;;  %v4175_v63 = vld [vmem:[%s5831_s1 + $0x6c] ss:$16 sps:$4 sm:$0xff]  }
  0xb1   :  { %2929 = vmatprep.subr.bf16.mxu1 %v4118_v1  ;;  %v4178_v0 = vld [vmem:[%s5831_s1 + $0x2ac] ss:$16 sps:$4 sm:$0xff]   ;;  %v4173_v1 = vld [vmem:[%s5831_s1 + $0x68] ss:$16 sps:$4 sm:$0xff]  }
  0xb3   :  { %2887 = vmatpush2.bf16.msra.mxu0 %v4113_v2  ;;  %v4176_v2 = vld [vmem:[%s5831_s1 + $0x2a8] ss:$16 sps:$4 sm:$0xff]  }
  0xb4   :  { %2930 = vmatpush2.bf16.msra.mxu1 %v4116_v3  ;;  %2888 = vmatprep.subr.bf16.mxu0 %v4121_v4  ;;  %v4181_v3 = vld [vmem:[%s5831_s1 + $0x4c] ss:$16 sps:$4 sm:$0xff]   ;;  %v4179_v4 = vld [vmem:[%s5831_s1 + $0x48] ss:$16 sps:$4 sm:$0xff]  }
  0xb5   :  { %2931 = vmatprep.subr.bf16.mxu1 %v4124_v5  ;;  %v4182_v5 = vld [vmem:[%s5831_s1 + $0x288] ss:$16 sps:$4 sm:$0xff]  }
  0xb7   :  { %2889 = vmatpush2.bf16.msra.mxu0 %v4119_v6  ;;  %v4187_v6 = vld [vmem:[%s5831_s1 + $0x2c] ss:$16 sps:$4 sm:$0xff]  }
  0xb8   :  { %2932 = vmatpush2.bf16.msra.mxu1 %v4122_v7  ;;  %2890 = vmatprep.subr.bf16.mxu0 %v4127_v8  ;;  %v4190_v7 = vld [vmem:[%s5831_s1 + $0x26c] ss:$16 sps:$4 sm:$0xff]   ;;  %v4185_v8 = vld [vmem:[%s5831_s1 + $0x28] ss:$16 sps:$4 sm:$0xff]  }
  0xb9   :  { %2933 = vmatprep.subr.bf16.mxu1 %v4130_v12  ;;  %v4193_v12 = vld [vmem:[%s5831_s1 + $0xc] ss:$16 sps:$4 sm:$0xff]  }
  0xbb   :  { %2891 = vmatpush2.bf16.msra.mxu0 %v4125_v14  ;;  %v4191_v14 = vld [vmem:[%s5831_s1 + $0x8] ss:$16 sps:$4 sm:$0xff]  }
  0xbc   :  { %2934 = vmatpush2.bf16.msra.mxu1 %v4128_v27  ;;  %2892 = vmatprep.subr.bf16.mxu0 %v4133_v28  ;;  %v4200_v27 = vld [vmem:[%s5831_s1 + $0x228] ss:$16 sps:$4 sm:$0xff]   ;;  %v4205_v28 = vld [vmem:[%s5831_s1 + $0x1cc] ss:$16 sps:$4 sm:$0xff]  }
  0xbd   :  { %2935 = vmatprep.subr.bf16.mxu1 %v4136_v29  ;;  %v4208_v29 = vld [vmem:[%s5831_s1 + $0x20c] ss:$16 sps:$4 sm:$0xff]  }
  0xbf   :  { %2893 = vmatpush2.bf16.msra.mxu0 %v4131_v15  ;;  %v4211_v15 = vld [vmem:[%s5831_s1 + $0x1ac] ss:$16 sps:$4 sm:$0xff]  }
  0xc0   :  { %2936 = vmatpush2.bf16.msra.mxu1 %v4134_v33  ;;  %2960 = vmatprep.subr.bf16.mxu0 %v4151_v36  ;;  %v4220_v33 = vld [vmem:[%s5831_s1 + $0x3cc] ss:$16 sps:$4 sm:$0xff]   ;;  %v4215_v36 = vld [vmem:[%s5831_s1 + $0x188] ss:$16 sps:$4 sm:$0xff]  }
  0xc1   :  { %2991 = vmatprep.subr.bf16.mxu1 %v4154_v37  ;;  %v4218_v37 = vld [vmem:[%s5831_s1 + $0x3c8] ss:$16 sps:$4 sm:$0xff]  }
  0xc2   :  { %2895 = vmatmul.mubr.bf16.vlgmr.msra.gmra.mxu0 %v5196_v40 }
  0xc3   :  { %2938 = vmatmul.mubr.bf16.vlgmr.msra.gmra.mxu1 %v5198_v41  ;;  %2961 = vmatpush1.bf16.msra.mxu0 %v4149_v42  ;;  %v4223_v42 = vld [vmem:[%s5831_s1 + $0x16c] ss:$16 sps:$4 sm:$0xff]  }
  0xc4   :  { %2992 = vmatpush1.bf16.msra.mxu1 %v4152_v48  ;;  %2962 = vmatprep.subr.bf16.mxu0 %v4157_v49  ;;  %v4224_v48 = vld [vmem:[%s5831_s1 + $0x3a8] ss:$16 sps:$4 sm:$0xff]   ;;  %v4229_v49 = vld [vmem:[%s5831_s1 + $0x14c] ss:$16 sps:$4 sm:$0xff]  }
  0xc5   :  { %2993 = vmatprep.subr.bf16.mxu1 %v4160_v50  ;;  %2980 = vmatprep.mubr.bf16.mxu0 %v4450_v19  ;;  %v4232_v50 = vld [vmem:[%s5831_s1 + $0x38c] ss:$16 sps:$4 sm:$0xff]  }
  0xc6   :  { %3023 = vmatprep.mubr.bf16.mxu1 %v4698_v22  ;;  %v4172_v22 = vld [vmem:[%s5831_s1 + $0x2cc] ss:$16 sps:$4 sm:$0xff]  }
  0xc7   :  { %2963 = vmatpush1.bf16.msra.mxu0 %v4155_v51  ;;  %v4227_v51 = vld [vmem:[%s5831_s1 + $0x148] ss:$16 sps:$4 sm:$0xff]  }
  0xc8   :  { %2994 = vmatpush1.bf16.msra.mxu1 %v4158_v16  ;;  %3034 = vmatprep.subr.bf16.mxu0 %v4166_v18  ;;  %v4238_v16 = vld [vmem:[%s5831_s1 + $0x36c] ss:$16 sps:$4 sm:$0xff]   ;;  %v4236_v18 = vld [vmem:[%s5831_s1 + $0x368] ss:$16 sps:$4 sm:$0xff]  }
  0xc9   :  { %2995 = vmatprep.subr.bf16.mxu1 %v4163_v17  ;;  %v4233_v17 = vld [vmem:[%s5831_s1 + $0x128] ss:$16 sps:$4 sm:$0xff]  }
  0xca   :  { %3825 = vmatmul.mubr.msk.bf16.vlgmr.msra.gmra.mxu0 %vm2686_vm0, %v5230_v55 }
  0xcb   :  { %3035 = vmatpush1.bf16.msra.mxu0 %v4164_v59  ;;  %3066 = vmatprep.mubr.bf16.mxu0 %v4700_v23  ;;  %v4184_v23 = vld [vmem:[%s5831_s1 + $0x28c] ss:$16 sps:$4 sm:$0xff]  }
  0xcc   :  { %2996 = vmatpush1.bf16.msra.mxu1 %v4161_v58  ;;  %3036 = vmatprep.subr.bf16.mxu0 %v4172_v22  ;;  %v4241_v58 = vld [vmem:[%s5831_s1 + $0x10c] ss:$16 sps:$4 sm:$0xff]   ;;  %v4242_v22 = vld [vmem:[%s5831_s1 + $0x348] ss:$16 sps:$4 sm:$0xff]  }
  0xcd   :  { %2997 = vmatprep.subr.bf16.mxu1 %v4169_v60  ;;  %v4244_v59 = vld [vmem:[%s5831_s1 + $0x34c] ss:$16 sps:$4 sm:$0xff]   ;;  %v4239_v60 = vld [vmem:[%s5831_s1 + $0x108] ss:$16 sps:$4 sm:$0xff]  }
  0xcf   :  { %3037 = vmatpush1.bf16.msra.mxu0 %v4170_v62  ;;  %v4250_v62 = vld [vmem:[%s5831_s1 + $0x4ec] ss:$16 sps:$4 sm:$0xff]  }
  0xd0   :  { %2998 = vmatpush1.bf16.msra.mxu1 %v4167_v61  ;;  %3038 = vmatprep.subr.bf16.mxu0 %v4178_v0  ;;  %v4247_v61 = vld [vmem:[%s5831_s1 + $0x32c] ss:$16 sps:$4 sm:$0xff]   ;;  %v4248_v0 = vld [vmem:[%s5831_s1 + $0x4e8] ss:$16 sps:$4 sm:$0xff]  }
  0xd1   :  { %2999 = vmatprep.subr.bf16.mxu1 %v4175_v63  ;;  %v4245_v63 = vld [vmem:[%s5831_s1 + $0x328] ss:$16 sps:$4 sm:$0xff]  }
  0xd3   :  { %3039 = vmatpush1.bf16.msra.mxu0 %v4176_v2  ;;  %v4256_v2 = vld [vmem:[%s5831_s1 + $0x4cc] ss:$16 sps:$4 sm:$0xff]  }
  0xd4   :  { %3000 = vmatpush1.bf16.msra.mxu1 %v4173_v1  ;;  %3040 = vmatprep.subr.bf16.mxu0 %v4184_v23  ;;  %v4253_v1 = vld [vmem:[%s5831_s1 + $0x30c] ss:$16 sps:$4 sm:$0xff]   ;;  %v4254_v23 = vld [vmem:[%s5831_s1 + $0x4c8] ss:$16 sps:$4 sm:$0xff]  }
  0xd5   :  { %3001 = vmatprep.subr.bf16.mxu1 %v4181_v3  ;;  %v4251_v3 = vld [vmem:[%s5831_s1 + $0x308] ss:$16 sps:$4 sm:$0xff]  }
  0xd7   :  { %3041 = vmatpush1.bf16.msra.mxu0 %v4182_v5  ;;  %v4257_v5 = vld [vmem:[%s5831_s1 + $0x4a8] ss:$16 sps:$4 sm:$0xff]  }
  0xd8   :  { %3002 = vmatpush1.bf16.msra.mxu1 %v4179_v4  ;;  %3042 = vmatprep.subr.bf16.mxu0 %v4190_v7  ;;  %v4259_v4 = vld [vmem:[%s5831_s1 + $0x4ac] ss:$16 sps:$4 sm:$0xff]  }
  0xd9   :  { %3003 = vmatprep.subr.bf16.mxu1 %v4187_v6  ;;  %v4260_v6 = vld [vmem:[%s5831_s1 + $0x6e8] ss:$16 sps:$4 sm:$0xff]   ;;  %v4265_v7 = vld [vmem:[%s5831_s1 + $0x48c] ss:$16 sps:$4 sm:$0xff]  }
  0xdb   :  { %3043 = vmatpush1.bf16.msra.mxu0 %v4188_v10  ;;  %v4266_v10 = vld [vmem:[%s5831_s1 + $0x6c8] ss:$16 sps:$4 sm:$0xff]  }
  0xdc   :  { %3004 = vmatpush1.bf16.msra.mxu1 %v4185_v8  ;;  %3044 = vmatprep.subr.bf16.mxu0 %v4196_v13  ;;  %v4263_v8 = vld [vmem:[%s5831_s1 + $0x488] ss:$16 sps:$4 sm:$0xff]  }
  0xdd   :  { %3005 = vmatprep.subr.bf16.mxu1 %v4193_v12  ;;  %v4271_v12 = vld [vmem:[%s5831_s1 + $0x46c] ss:$16 sps:$4 sm:$0xff]   ;;  %v4269_v13 = vld [vmem:[%s5831_s1 + $0x468] ss:$16 sps:$4 sm:$0xff]  }
  0xdf   :  { %3045 = vmatpush1.bf16.msra.mxu0 %v4194_v20  ;;  %v4277_v20 = vld [vmem:[%s5831_s1 + $0x44c] ss:$16 sps:$4 sm:$0xff]  }
  0xe0   :  { %3006 = vmatpush1.bf16.msra.mxu1 %v4191_v14  ;;  %3046 = vmatprep.subr.bf16.mxu0 %v4202_v25  ;;  %v4272_v14 = vld [vmem:[%s5831_s1 + $0x6a8] ss:$16 sps:$4 sm:$0xff]  }
  0xe1   :  { %3007 = vmatprep.subr.bf16.mxu1 %v4199_v24  ;;  %v4275_v24 = vld [vmem:[%s5831_s1 + $0x448] ss:$16 sps:$4 sm:$0xff]  }
  0xe2   :  { %v4278_v25 = vld [vmem:[%s5831_s1 + $0x688] ss:$16 sps:$4 sm:$0xff]  }
  0xe3   :  { %3047 = vmatpush1.bf16.msra.mxu0 %v4200_v27  ;;  %v4286_v27 = vld [vmem:[%s5831_s1 + $0x66c] ss:$16 sps:$4 sm:$0xff]  }
  0xe4   :  { %3008 = vmatpush2.bf16.msra.mxu1 %v4197_v26  ;;  %3048 = vmatprep.subr.bf16.mxu0 %v4208_v29  ;;  %v4283_v26 = vld [vmem:[%s5831_s1 + $0x42c] ss:$16 sps:$4 sm:$0xff]   ;;  %v4284_v29 = vld [vmem:[%s5831_s1 + $0x668] ss:$16 sps:$4 sm:$0xff]  }
  0xe5   :  { %3009 = vmatprep.subr.bf16.mxu1 %v4205_v28  ;;  %v4281_v28 = vld [vmem:[%s5831_s1 + $0x428] ss:$16 sps:$4 sm:$0xff]  }
  0xe7   :  { %3049 = vmatpush1.bf16.msra.mxu0 %v4206_v11  ;;  %v4292_v11 = vld [vmem:[%s5831_s1 + $0x64c] ss:$16 sps:$4 sm:$0xff]  }
  0xe8   :  { %3010 = vmatpush2.bf16.msra.mxu1 %v4203_v9  ;;  %3050 = vmatprep.subr.bf16.mxu0 %v4214_v21  ;;  %v4289_v9 = vld [vmem:[%s5831_s1 + $0x40c] ss:$16 sps:$4 sm:$0xff]   ;;  %v4290_v21 = vld [vmem:[%s5831_s1 + $0x648] ss:$16 sps:$4 sm:$0xff]  }
  0xe9   :  { %3011 = vmatprep.subr.bf16.mxu1 %v4211_v15  ;;  %v4287_v15 = vld [vmem:[%s5831_s1 + $0x408] ss:$16 sps:$4 sm:$0xff]  }
  0xeb   :  { %3051 = vmatpush2.bf16.msra.mxu0 %v4212_v31  ;;  %v4298_v31 = vld [vmem:[%s5831_s1 + $0x62c] ss:$16 sps:$4 sm:$0xff]  }
  0xec   :  { %3012 = vmatpush2.bf16.msra.mxu1 %v4209_v30  ;;  %3052 = vmatprep.subr.bf16.mxu0 %v4220_v33  ;;  %v4295_v30 = vld [vmem:[%s5831_s1 + $0x5ec] ss:$16 sps:$4 sm:$0xff]   ;;  %v4296_v33 = vld [vmem:[%s5831_s1 + $0x628] ss:$16 sps:$4 sm:$0xff]  }
  0xed   :  { %3013 = vmatprep.subr.bf16.mxu1 %v4217_v32  ;;  %v4293_v32 = vld [vmem:[%s5831_s1 + $0x5e8] ss:$16 sps:$4 sm:$0xff]  }
  0xef   :  { %3053 = vmatpush2.bf16.msra.mxu0 %v4218_v37  ;;  %v4304_v37 = vld [vmem:[%s5831_s1 + $0x60c] ss:$16 sps:$4 sm:$0xff]  }
  0xf0   :  { %3014 = vmatpush2.bf16.msra.mxu1 %v4215_v36  ;;  %3054 = vmatprep.subr.bf16.mxu0 %v4226_v43  ;;  %v4301_v36 = vld [vmem:[%s5831_s1 + $0x5cc] ss:$16 sps:$4 sm:$0xff]   ;;  %v4302_v43 = vld [vmem:[%s5831_s1 + $0x608] ss:$16 sps:$4 sm:$0xff]  }
  0xf1   :  { %3015 = vmatprep.subr.bf16.mxu1 %v4223_v42  ;;  %v4299_v42 = vld [vmem:[%s5831_s1 + $0x5c8] ss:$16 sps:$4 sm:$0xff]  }
  0xf3   :  { %3055 = vmatpush2.bf16.msra.mxu0 %v4224_v48  ;;  %v4310_v48 = vld [vmem:[%s5831_s1 + $0x7ec] ss:$16 sps:$4 sm:$0xff]  }
  0xf4   :  { %3016 = vmatpush2.bf16.msra.mxu1 %v4221_v46  ;;  %3056 = vmatprep.subr.bf16.mxu0 %v4232_v50  ;;  %v4307_v46 = vld [vmem:[%s5831_s1 + $0x5ac] ss:$16 sps:$4 sm:$0xff]   ;;  %v4308_v50 = vld [vmem:[%s5831_s1 + $0x7e8] ss:$16 sps:$4 sm:$0xff]  }
  0xf5   :  { %3017 = vmatprep.subr.bf16.mxu1 %v4229_v49  ;;  %v4305_v49 = vld [vmem:[%s5831_s1 + $0x5a8] ss:$16 sps:$4 sm:$0xff]  }
  0xf7   :  { %3057 = vmatpush2.bf16.msra.mxu0 %v4230_v52  ;;  %v4316_v52 = vld [vmem:[%s5831_s1 + $0x7cc] ss:$16 sps:$4 sm:$0xff]  }
  0xf8   :  { %3018 = vmatpush2.bf16.msra.mxu1 %v4227_v51  ;;  %3058 = vmatprep.subr.bf16.mxu0 %v4238_v16  ;;  %v4313_v51 = vld [vmem:[%s5831_s1 + $0x58c] ss:$16 sps:$4 sm:$0xff]   ;;  %v4314_v16 = vld [vmem:[%s5831_s1 + $0x7c8] ss:$16 sps:$4 sm:$0xff]  }
  0xf9   :  { %3019 = vmatprep.subr.bf16.mxu1 %v4235_v53  ;;  %v4311_v53 = vld [vmem:[%s5831_s1 + $0x588] ss:$16 sps:$4 sm:$0xff]  }
  0xfb   :  { %3059 = vmatpush2.bf16.msra.mxu0 %v4236_v18  ;;  %v4322_v18 = vld [vmem:[%s5831_s1 + $0x7ac] ss:$16 sps:$4 sm:$0xff]  }
  0xfc   :  { %3020 = vmatpush2.bf16.msra.mxu1 %v4233_v17  ;;  %3060 = vmatprep.subr.bf16.mxu0 %v4244_v59  ;;  %v4319_v17 = vld [vmem:[%s5831_s1 + $0x56c] ss:$16 sps:$4 sm:$0xff]   ;;  %v4320_v59 = vld [vmem:[%s5831_s1 + $0x7a8] ss:$16 sps:$4 sm:$0xff]  }
  0xfd   :  { %3021 = vmatprep.subr.bf16.mxu1 %v4241_v58  ;;  %v4317_v58 = vld [vmem:[%s5831_s1 + $0x568] ss:$16 sps:$4 sm:$0xff]  }
  0xff   :  { %3061 = vmatpush2.bf16.msra.mxu0 %v4242_v22  ;;  %v4328_v22 = vld [vmem:[%s5831_s1 + $0x78c] ss:$16 sps:$4 sm:$0xff]  }
 0x100   :  { %3022 = vmatpush2.bf16.msra.mxu1 %v4239_v60  ;;  %3062 = vmatprep.subr.bf16.mxu0 %v4247_v61  ;;  %v4325_v60 = vld [vmem:[%s5831_s1 + $0x54c] ss:$16 sps:$4 sm:$0xff]   ;;  %v4323_v61 = vld [vmem:[%s5831_s1 + $0x548] ss:$16 sps:$4 sm:$0xff]  }
 0x101   :  { %3077 = vmatprep.subr.bf16.mxu1 %v4250_v62  ;;  %v4326_v62 = vld [vmem:[%s5831_s1 + $0x788] ss:$16 sps:$4 sm:$0xff]  }
 0x103   :  { %3024 = vmatmul.mubr.bf16.vlgmr.msra.gmra.mxu1 %v4730_v38  ;;  %3063 = vmatpush2.bf16.msra.mxu0 %v4245_v63  ;;  %v4262_v38 = vld [vmem:[%s5831_s1 + $0x6ec] ss:$16 sps:$4 sm:$0xff]  }
 0x104   :  { %3078 = vmatpush1.bf16.msra.mxu1 %v4248_v0  ;;  %3064 = vmatprep.subr.bf16.mxu0 %v4253_v1  ;;  %v4331_v63 = vld [vmem:[%s5831_s1 + $0x52c] ss:$16 sps:$4 sm:$0xff]   ;;  %v4329_v1 = vld [vmem:[%s5831_s1 + $0x528] ss:$16 sps:$4 sm:$0xff]  }
 0x105   :  { %3079 = vmatprep.subr.bf16.mxu1 %v4256_v2  ;;  %3109 = vmatprep.mubr.bf16.mxu1 %v4746_v44  ;;  %v4268_v44 = vld [vmem:[%s5831_s1 + $0x6cc] ss:$16 sps:$4 sm:$0xff]   ;;  %v4332_v2 = vld [vmem:[%s5831_s1 + $0x768] ss:$16 sps:$4 sm:$0xff]  }
 0x106   :  { %v4334_v0 = vld [vmem:[%s5831_s1 + $0x76c] ss:$16 sps:$4 sm:$0xff]  }
 0x107   :  { %3065 = vmatpush2.bf16.msra.mxu0 %v4251_v3  ;;  %v4337_v3 = vld [vmem:[%s5831_s1 + $0x50c] ss:$16 sps:$4 sm:$0xff]  }
 0x108   :  { %3080 = vmatpush1.bf16.msra.mxu1 %v4254_v23  ;;  %3120 = vmatprep.subr.bf16.mxu0 %v4262_v38  ;;  %v4340_v23 = vld [vmem:[%s5831_s1 + $0x74c] ss:$16 sps:$4 sm:$0xff]   ;;  %v4338_v38 = vld [vmem:[%s5831_s1 + $0x748] ss:$16 sps:$4 sm:$0xff]  }
 0x109   :  { %3081 = vmatprep.subr.bf16.mxu1 %v4259_v4  ;;  %v4335_v4 = vld [vmem:[%s5831_s1 + $0x508] ss:$16 sps:$4 sm:$0xff]  }
 0x10a   :  { %3067 = vmatmul.mubr.bf16.vlgmr.msra.gmra.mxu0 %v4732_v39  ;;  %v4274_v39 = vld [vmem:[%s5831_s1 + $0x6ac] ss:$16 sps:$4 sm:$0xff]  }
 0x10b   :  { %3121 = vmatpush1.bf16.msra.mxu0 %v4260_v6  ;;  %3152 = vmatprep.mubr.bf16.mxu0 %v4748_v45  ;;  %v4280_v45 = vld [vmem:[%s5831_s1 + $0x68c] ss:$16 sps:$4 sm:$0xff]  }
 0x10c   :  { %3082 = vmatpush1.bf16.msra.mxu1 %v4257_v5  ;;  %3122 = vmatprep.subr.bf16.mxu0 %v4268_v44  ;;  %v4343_v5 = vld [vmem:[%s5831_s1 + $0x72c] ss:$16 sps:$4 sm:$0xff]   ;;  %v4344_v44 = vld [vmem:[%s5831_s1 + $0x8e8] ss:$16 sps:$4 sm:$0xff]  }
 0x10d   :  { %3083 = vmatprep.subr.bf16.mxu1 %v4265_v7  ;;  %v4346_v6 = vld [vmem:[%s5831_s1 + $0x8ec] ss:$16 sps:$4 sm:$0xff]   ;;  %v4341_v7 = vld [vmem:[%s5831_s1 + $0x728] ss:$16 sps:$4 sm:$0xff]  }
 0x10f   :  { %3123 = vmatpush1.bf16.msra.mxu0 %v4266_v10  ;;  %v4352_v10 = vld [vmem:[%s5831_s1 + $0x8cc] ss:$16 sps:$4 sm:$0xff]  }
 0x110   :  { %3084 = vmatpush1.bf16.msra.mxu1 %v4263_v8  ;;  %3124 = vmatprep.subr.bf16.mxu0 %v4274_v39  ;;  %v4349_v8 = vld [vmem:[%s5831_s1 + $0x70c] ss:$16 sps:$4 sm:$0xff]   ;;  %v4350_v39 = vld [vmem:[%s5831_s1 + $0x8c8] ss:$16 sps:$4 sm:$0xff]  }
 0x111   :  { %3085 = vmatprep.subr.bf16.mxu1 %v4271_v12  ;;  %v4347_v12 = vld [vmem:[%s5831_s1 + $0x708] ss:$16 sps:$4 sm:$0xff]  }
 0x113   :  { %3125 = vmatpush1.bf16.msra.mxu0 %v4272_v14  ;;  %v4353_v14 = vld [vmem:[%s5831_s1 + $0x8a8] ss:$16 sps:$4 sm:$0xff]  }
 0x114   :  { %3086 = vmatpush1.bf16.msra.mxu1 %v4269_v13  ;;  %3126 = vmatprep.subr.bf16.mxu0 %v4280_v45  ;;  %v4355_v13 = vld [vmem:[%s5831_s1 + $0x8ac] ss:$16 sps:$4 sm:$0xff]  }
 0x115   :  { %3087 = vmatprep.subr.bf16.mxu1 %v4277_v20  ;;  %v4356_v20 = vld [vmem:[%s5831_s1 + $0xae8] ss:$16 sps:$4 sm:$0xff]   ;;  %v4361_v45 = vld [vmem:[%s5831_s1 + $0x88c] ss:$16 sps:$4 sm:$0xff]  }
 0x117   :  { %3127 = vmatpush1.bf16.msra.mxu0 %v4278_v25  ;;  %v4362_v25 = vld [vmem:[%s5831_s1 + $0xac8] ss:$16 sps:$4 sm:$0xff]  }
 0x118   :  { %3088 = vmatpush1.bf16.msra.mxu1 %v4275_v24  ;;  %3128 = vmatprep.subr.bf16.mxu0 %v4286_v27  ;;  %v4359_v24 = vld [vmem:[%s5831_s1 + $0x888] ss:$16 sps:$4 sm:$0xff]  }
 0x119   :  { %3089 = vmatprep.subr.bf16.mxu1 %v4283_v26  ;;  %v4367_v26 = vld [vmem:[%s5831_s1 + $0x86c] ss:$16 sps:$4 sm:$0xff]   ;;  %v4365_v27 = vld [vmem:[%s5831_s1 + $0x868] ss:$16 sps:$4 sm:$0xff]  }
 0x11b   :  { %3129 = vmatpush1.bf16.msra.mxu0 %v4284_v29  ;;  %v4373_v29 = vld [vmem:[%s5831_s1 + $0x84c] ss:$16 sps:$4 sm:$0xff]  }
 0x11c   :  { %3090 = vmatpush1.bf16.msra.mxu1 %v4281_v28  ;;  %3130 = vmatprep.subr.bf16.mxu0 %v4292_v11  ;;  %v4368_v28 = vld [vmem:[%s5831_s1 + $0xaa8] ss:$16 sps:$4 sm:$0xff]  }
 0x11d   :  { %3091 = vmatprep.subr.bf16.mxu1 %v4289_v9  ;;  %v4371_v9 = vld [vmem:[%s5831_s1 + $0x848] ss:$16 sps:$4 sm:$0xff]  }
 0x11e   :  { %v4374_v11 = vld [vmem:[%s5831_s1 + $0xa88] ss:$16 sps:$4 sm:$0xff]  }
 0x11f   :  { %3131 = vmatpush1.bf16.msra.mxu0 %v4290_v21  ;;  %v4382_v21 = vld [vmem:[%s5831_s1 + $0xa6c] ss:$16 sps:$4 sm:$0xff]  }
 0x120   :  { %3092 = vmatpush1.bf16.msra.mxu1 %v4287_v15  ;;  %3132 = vmatprep.subr.bf16.mxu0 %v4298_v31  ;;  %v4379_v15 = vld [vmem:[%s5831_s1 + $0x82c] ss:$16 sps:$4 sm:$0xff]   ;;  %v4380_v31 = vld [vmem:[%s5831_s1 + $0xa68] ss:$16 sps:$4 sm:$0xff]  }
 0x121   :  { %3093 = vmatprep.subr.bf16.mxu1 %v4295_v30  ;;  %v4377_v30 = vld [vmem:[%s5831_s1 + $0x828] ss:$16 sps:$4 sm:$0xff]  }
 0x123   :  { %3133 = vmatpush1.bf16.msra.mxu0 %v4296_v33  ;;  %v4388_v33 = vld [vmem:[%s5831_s1 + $0xa4c] ss:$16 sps:$4 sm:$0xff]  }
 0x124   :  { %3094 = vmatpush2.bf16.msra.mxu1 %v4293_v32  ;;  %3134 = vmatprep.subr.bf16.mxu0 %v4304_v37  ;;  %v4385_v32 = vld [vmem:[%s5831_s1 + $0x80c] ss:$16 sps:$4 sm:$0xff]   ;;  %v4386_v37 = vld [vmem:[%s5831_s1 + $0xa48] ss:$16 sps:$4 sm:$0xff]  }
 0x125   :  { %3095 = vmatprep.subr.bf16.mxu1 %v4301_v36  ;;  %v4383_v36 = vld [vmem:[%s5831_s1 + $0x808] ss:$16 sps:$4 sm:$0xff]  }
 0x127   :  { %3135 = vmatpush1.bf16.msra.mxu0 %v4302_v43  ;;  %v4394_v43 = vld [vmem:[%s5831_s1 + $0xa2c] ss:$16 sps:$4 sm:$0xff]  }
 0x128   :  { %3096 = vmatpush2.bf16.msra.mxu1 %v4299_v42  ;;  %3136 = vmatprep.subr.bf16.mxu0 %v4310_v48  ;;  %v4391_v42 = vld [vmem:[%s5831_s1 + $0x9ec] ss:$16 sps:$4 sm:$0xff]   ;;  %v4392_v48 = vld [vmem:[%s5831_s1 + $0xa28] ss:$16 sps:$4 sm:$0xff]  }
 0x129   :  { %3097 = vmatprep.subr.bf16.mxu1 %v4307_v46  ;;  %v4389_v46 = vld [vmem:[%s5831_s1 + $0x9e8] ss:$16 sps:$4 sm:$0xff]  }
 0x12b   :  { %3137 = vmatpush2.bf16.msra.mxu0 %v4308_v50  ;;  %v4400_v50 = vld [vmem:[%s5831_s1 + $0xa0c] ss:$16 sps:$4 sm:$0xff]  }
 0x12c   :  { %3098 = vmatpush2.bf16.msra.mxu1 %v4305_v49  ;;  %3138 = vmatprep.subr.bf16.mxu0 %v4316_v52  ;;  %v4397_v49 = vld [vmem:[%s5831_s1 + $0x9cc] ss:$16 sps:$4 sm:$0xff]   ;;  %v4398_v52 = vld [vmem:[%s5831_s1 + $0xa08] ss:$16 sps:$4 sm:$0xff]  }
 0x12d   :  { %3099 = vmatprep.subr.bf16.mxu1 %v4313_v51  ;;  %v4395_v51 = vld [vmem:[%s5831_s1 + $0x9c8] ss:$16 sps:$4 sm:$0xff]  }
 0x12f   :  { %3139 = vmatpush2.bf16.msra.mxu0 %v4314_v16  ;;  %v4406_v16 = vld [vmem:[%s5831_s1 + $0xbec] ss:$16 sps:$4 sm:$0xff]  }
 0x130   :  { %3100 = vmatpush2.bf16.msra.mxu1 %v4311_v53  ;;  %3140 = vmatprep.subr.bf16.mxu0 %v4322_v18  ;;  %v4403_v53 = vld [vmem:[%s5831_s1 + $0x9ac] ss:$16 sps:$4 sm:$0xff]   ;;  %v4404_v18 = vld [vmem:[%s5831_s1 + $0xbe8] ss:$16 sps:$4 sm:$0xff]  }
 0x131   :  { %3101 = vmatprep.subr.bf16.mxu1 %v4319_v17  ;;  %v4401_v17 = vld [vmem:[%s5831_s1 + $0x9a8] ss:$16 sps:$4 sm:$0xff]  }
 0x133   :  { %3141 = vmatpush2.bf16.msra.mxu0 %v4320_v59  ;;  %v4412_v59 = vld [vmem:[%s5831_s1 + $0xbcc] ss:$16 sps:$4 sm:$0xff]  }
 0x134   :  { %3102 = vmatpush2.bf16.msra.mxu1 %v4317_v58  ;;  %3142 = vmatprep.subr.bf16.mxu0 %v4328_v22  ;;  %v4409_v58 = vld [vmem:[%s5831_s1 + $0x98c] ss:$16 sps:$4 sm:$0xff]   ;;  %v4410_v22 = vld [vmem:[%s5831_s1 + $0xbc8] ss:$16 sps:$4 sm:$0xff]  }
 0x135   :  { %3103 = vmatprep.subr.bf16.mxu1 %v4325_v60  ;;  %v4407_v60 = vld [vmem:[%s5831_s1 + $0x988] ss:$16 sps:$4 sm:$0xff]  }
 0x137   :  { %3143 = vmatpush2.bf16.msra.mxu0 %v4326_v62  ;;  %v4418_v62 = vld [vmem:[%s5831_s1 + $0xbac] ss:$16 sps:$4 sm:$0xff]  }
 0x138   :  { %3104 = vmatpush2.bf16.msra.mxu1 %v4323_v61  ;;  %3144 = vmatprep.subr.bf16.mxu0 %v4334_v0  ;;  %v4415_v61 = vld [vmem:[%s5831_s1 + $0x96c] ss:$16 sps:$4 sm:$0xff]   ;;  %v4416_v0 = vld [vmem:[%s5831_s1 + $0xba8] ss:$16 sps:$4 sm:$0xff]  }
 0x139   :  { %3105 = vmatprep.subr.bf16.mxu1 %v4331_v63  ;;  %v4413_v63 = vld [vmem:[%s5831_s1 + $0x968] ss:$16 sps:$4 sm:$0xff]  }
 0x13b   :  { %3145 = vmatpush2.bf16.msra.mxu0 %v4332_v2  ;;  %v4424_v2 = vld [vmem:[%s5831_s1 + $0xb8c] ss:$16 sps:$4 sm:$0xff]  }
 0x13c   :  { %3106 = vmatpush2.bf16.msra.mxu1 %v4329_v1  ;;  %3146 = vmatprep.subr.bf16.mxu0 %v4340_v23  ;;  %v4421_v1 = vld [vmem:[%s5831_s1 + $0x94c] ss:$16 sps:$4 sm:$0xff]   ;;  %v4422_v23 = vld [vmem:[%s5831_s1 + $0xb88] ss:$16 sps:$4 sm:$0xff]  }
 0x13d   :  { %3107 = vmatprep.subr.bf16.mxu1 %v4337_v3  ;;  %v4419_v3 = vld [vmem:[%s5831_s1 + $0x948] ss:$16 sps:$4 sm:$0xff]  }
 0x13f   :  { %3147 = vmatpush2.bf16.msra.mxu0 %v4338_v38  ;;  %v4430_v38 = vld [vmem:[%s5831_s1 + $0xb6c] ss:$16 sps:$4 sm:$0xff]  }
 0x140   :  { %3108 = vmatpush2.bf16.msra.mxu1 %v4335_v4  ;;  %3148 = vmatprep.subr.bf16.mxu0 %v4343_v5  ;;  %v4427_v4 = vld [vmem:[%s5831_s1 + $0x92c] ss:$16 sps:$4 sm:$0xff]   ;;  %v4425_v5 = vld [vmem:[%s5831_s1 + $0x928] ss:$16 sps:$4 sm:$0xff]  }
 0x141   :  { %3163 = vmatprep.subr.bf16.mxu1 %v4346_v6  ;;  %v4428_v6 = vld [vmem:[%s5831_s1 + $0xb68] ss:$16 sps:$4 sm:$0xff]  }
 0x143   :  { %3110 = vmatmul.mubr.bf16.vlgmr.msra.gmra.mxu1 %v4940_v56  ;;  %3149 = vmatpush2.bf16.msra.mxu0 %v4341_v7  ;;  %v4358_v56 = vld [vmem:[%s5831_s1 + $0xaec] ss:$16 sps:$4 sm:$0xff]  }
 0x144   :  { %3164 = vmatpush1.bf16.msra.mxu1 %v4344_v44  ;;  %3150 = vmatprep.subr.bf16.mxu0 %v4349_v8  ;;  %v4433_v7 = vld [vmem:[%s5831_s1 + $0x90c] ss:$16 sps:$4 sm:$0xff]   ;;  %v4431_v8 = vld [vmem:[%s5831_s1 + $0x908] ss:$16 sps:$4 sm:$0xff]  }
 0x145   :  { %3165 = vmatprep.subr.bf16.mxu1 %v4352_v10  ;;  %3195 = vmatprep.mubr.bf16.mxu1 %v5042_v34  ;;  %v4364_v34 = vld [vmem:[%s5831_s1 + $0xacc] ss:$16 sps:$4 sm:$0xff]   ;;  %v4434_v10 = vld [vmem:[%s5831_s1 + $0xb48] ss:$16 sps:$4 sm:$0xff]  }
 0x146   :  { %v4436_v44 = vld [vmem:[%s5831_s1 + $0xb4c] ss:$16 sps:$4 sm:$0xff]  }
 0x147   :  { %3151 = vmatpush2.bf16.msra.mxu0 %v4347_v12  ;;  %v4439_v12 = vld [vmem:[%s5831_s1 + $0xb2c] ss:$16 sps:$4 sm:$0xff]  }
 0x148   :  { %3166 = vmatpush1.bf16.msra.mxu1 %v4350_v39  ;;  %3206 = vmatprep.subr.bf16.mxu0 %v4358_v56  ;;  %v4442_v39 = vld [vmem:[%s5831_s1 + $0xc2c] ss:$16 sps:$4 sm:$0xff]   ;;  %v4440_v56 = vld [vmem:[%s5831_s1 + $0xc28] ss:$16 sps:$4 sm:$0xff]  }
 0x149   :  { %3167 = vmatprep.subr.bf16.mxu1 %v4355_v13  ;;  %v4437_v13 = vld [vmem:[%s5831_s1 + $0xb28] ss:$16 sps:$4 sm:$0xff]  }
 0x14a   :  { %3153 = vmatmul.mubr.bf16.vlgmr.msra.gmra.mxu0 %v4942_v57  ;;  %v4370_v57 = vld [vmem:[%s5831_s1 + $0xaac] ss:$16 sps:$4 sm:$0xff]  }
 0x14b   :  { %3207 = vmatpush1.bf16.msra.mxu0 %v4356_v20  ;;  %3238 = vmatprep.mubr.bf16.mxu0 %v5044_v35  ;;  %v4376_v35 = vld [vmem:[%s5831_s1 + $0xa8c] ss:$16 sps:$4 sm:$0xff]  }
 0x14c   :  { %3168 = vmatpush1.bf16.msra.mxu1 %v4353_v14  ;;  %3208 = vmatprep.subr.bf16.mxu0 %v4364_v34  ;;  %v4445_v14 = vld [vmem:[%s5831_s1 + $0xb0c] ss:$16 sps:$4 sm:$0xff]   ;;  %v4446_v34 = vld [vmem:[%s5831_s1 + $0xc08] ss:$16 sps:$4 sm:$0xff]  }
 0x14d   :  { %3169 = vmatprep.subr.bf16.mxu1 %v4361_v45  ;;  %v4448_v20 = vld [vmem:[%s5831_s1 + $0xc0c] ss:$16 sps:$4 sm:$0xff]   ;;  %v4443_v45 = vld [vmem:[%s5831_s1 + $0xb08] ss:$16 sps:$4 sm:$0xff]  }
 0x14f   :  { %3209 = vmatpush1.bf16.msra.mxu0 %v4362_v25  ;;  %v2767_v25 = vpop.f32.mrf.mxu1 }
 0x150   :  { %3170 = vmatpush1.bf16.msra.mxu1 %v4359_v24  ;;  %3210 = vmatprep.subr.bf16.mxu0 %v4370_v57 }
 0x151   :  { %3171 = vmatprep.subr.bf16.mxu1 %v4367_v26  ;;  %v2769_v57 = vpop.f32.mrf.mxu1 }
 0x153   :  { %3211 = vmatpush1.bf16.msra.mxu0 %v4368_v28 }
 0x154   :  { %3172 = vmatpush1.bf16.msra.mxu1 %v4365_v27  ;;  %3212 = vmatprep.subr.bf16.mxu0 %v4376_v35 }
 0x155   :  { %3173 = vmatprep.subr.bf16.mxu1 %v4373_v29  ;;  %v2771_v29 = vpop.f32.mrf.mxu1 }
 0x157   :  { %3213 = vmatpush1.bf16.msra.mxu0 %v4374_v11 }
 0x158   :  { %3174 = vmatpush1.bf16.msra.mxu1 %v4371_v9  ;;  %3214 = vmatprep.subr.bf16.mxu0 %v4382_v21  ;;  %v2773_v9 = vpop.f32.mrf.mxu1 }
 0x159   :  { %3175 = vmatprep.subr.bf16.mxu1 %v4379_v15 }
 0x15a   :  { %v2853_v11 = vpop.f32.mrf.mxu1 }
 0x15b   :  { %3215 = vmatpush1.bf16.msra.mxu0 %v4380_v31 }
 0x15c   :  { %3176 = vmatpush1.bf16.msra.mxu1 %v4377_v30  ;;  %3216 = vmatprep.subr.bf16.mxu0 %v4388_v33 }
 0x15d   :  { %3177 = vmatprep.subr.bf16.mxu1 %v4385_v32 }
 0x15f   :  { %3217 = vmatpush1.bf16.msra.mxu0 %v4386_v37 }
 0x160   :  { %3178 = vmatpush1.bf16.msra.mxu1 %v4383_v36  ;;  %3218 = vmatprep.subr.bf16.mxu0 %v4394_v43 }
 0x161   :  { %3179 = vmatprep.subr.bf16.mxu1 %v4391_v42 }
 0x163   :  { %3219 = vmatpush1.bf16.msra.mxu0 %v4392_v48 }
 0x164   :  { %3180 = vmatpush2.bf16.msra.mxu1 %v4389_v46  ;;  %3220 = vmatprep.subr.bf16.mxu0 %v4400_v50 }
 0x165   :  { %3181 = vmatprep.subr.bf16.mxu1 %v4397_v49 }
 0x167   :  { %3221 = vmatpush1.bf16.msra.mxu0 %v4398_v52 }
 0x168   :  { %3182 = vmatpush2.bf16.msra.mxu1 %v4395_v51  ;;  %3222 = vmatprep.subr.bf16.mxu0 %v4406_v16 }
 0x169   :  { %3183 = vmatprep.subr.bf16.mxu1 %v4403_v53  ;;  %v431_v53 = vsub.s32 1, %v4603_v47 }
 0x16b   :  { %3223 = vmatpush2.bf16.msra.mxu0 %v4404_v18  ;;  %v423_v18 = vld [vmem:[%s5832_s2] sm:$0xf] }
 0x16c   :  { %3184 = vmatpush2.bf16.msra.mxu1 %v4401_v17  ;;  %3224 = vmatprep.subr.bf16.mxu0 %v4412_v59  ;;  %v432_v59 = vrot.slane %v423_v18, %v431_v53 }
 0x16d   :  { %3185 = vmatprep.subr.bf16.mxu1 %v4409_v58  ;;  %v427_v58 = vsub.s32 0, %v4603_v47 }
 0x16f   :  { %3225 = vmatpush2.bf16.msra.mxu0 %v4410_v22 }
 0x170   :  { %3186 = vmatpush2.bf16.msra.mxu1 %v4407_v60  ;;  %3226 = vmatprep.subr.bf16.mxu0 %v4418_v62 }
 0x171   :  { %3187 = vmatprep.subr.bf16.mxu1 %v4415_v61  ;;  %v428_v61 = vrot.slane %v423_v18, %v427_v58 }
 0x173   :  { %3227 = vmatpush2.bf16.msra.mxu0 %v4416_v0 }
 0x174   :  { %3188 = vmatpush2.bf16.msra.mxu1 %v4413_v63  ;;  %3228 = vmatprep.subr.bf16.mxu0 %v4424_v2 }
 0x175   :  { %3189 = vmatprep.subr.bf16.mxu1 %v4421_v1 }
 0x177   :  { %3229 = vmatpush2.bf16.msra.mxu0 %v4422_v23 }
 0x178   :  { %3190 = vmatpush2.bf16.msra.mxu1 %v4419_v3  ;;  %3230 = vmatprep.subr.bf16.mxu0 %v4430_v38  ;;  %v435_v3 = vsub.s32 2, %v4603_v47  ;;  %v439_v38 = vsub.s32 3, %v4603_v47 }
 0x179   :  { %3191 = vmatprep.subr.bf16.mxu1 %v4427_v4 }
 0x17b   :  { %3231 = vmatpush2.bf16.msra.mxu0 %v4428_v6 }
 0x17c   :  { %3192 = vmatpush2.bf16.msra.mxu1 %v4425_v5  ;;  %3232 = vmatprep.subr.bf16.mxu0 %v4436_v44 }
 0x17d   :  { %3193 = vmatprep.subr.bf16.mxu1 %v4433_v7 }
 0x17f   :  { %3233 = vmatpush2.bf16.msra.mxu0 %v4434_v10 }
 0x180   :  { %3194 = vmatpush2.bf16.msra.mxu1 %v4431_v8  ;;  %3234 = vmatprep.subr.bf16.mxu0 %v4439_v12  ;;  %v436_v8 = vrot.slane %v423_v18, %v435_v3  ;;  %v440_v12 = vrot.slane %v423_v18, %v439_v38 }
 0x181   :  { %3261 = vmatprep.subr.bf16.mxu1 %v4442_v39 }
 0x183   :  { %3196 = vmatmul.mubr.bf16.vlgmr.msra.gmra.mxu1 %v5196_v40  ;;  %3235 = vmatpush2.bf16.msra.mxu0 %v4437_v13  ;;  %v2724_v40 = vpop.f32.mrf.mxu0 }
 0x184   :  { %3262 = vmatpush1.bf16.msra.mxu1 %v4440_v56  ;;  %3236 = vmatprep.subr.bf16.mxu0 %v4445_v14  ;;  %v2725_v1 = vadd.f32 %v2724_v40, %v428_v61 }
 0x185   :  { %3263 = vmatprep.subr.bf16.mxu1 %v4448_v20  ;;  %3281 = vmatprep.mubr.bf16.mxu1 %v4450_v19  ;;  %v2726_v24 = vpop.f32.mrf.mxu0  ;;  %v2855_v19 = vpop.f32.mrf.mxu1 }
 0x186   :  { %v2727_v63 = vadd.f32 %v2726_v24, %v432_v59  ;;  %v2768_v5 = vadd.f32 %v2767_v25, %v2725_v1 }
 0x187   :  { %3237 = vmatpush2.bf16.msra.mxu0 %v4443_v45  ;;  %v2728_v26 = vpop.f32.mrf.mxu0  ;;  %v2857_v31 = vpop.f32.mrf.mxu1 }
 0x188   :  { %3264 = vmatpush1.bf16.msra.mxu1 %v4446_v34  ;;  %v2770_v23 = vadd.f32 %v2769_v57, %v2727_v63 }
 0x189   :  { %v2730_v27 = vpop.f32.mrf.mxu0  ;;  %v2859_v32 = vpop.f32.mrf.mxu1 }
 0x18a   :  { %3239 = vmatmul.mubr.bf16.vlgmr.msra.gmra.mxu0 %v5198_v41 }
 0x18b   :  { %3826 = vmatmul.mubr.msk.bf16.vlgmr.msra.gmra.mxu1 %vm2686_vm0, %v5230_v55  ;;  %v2810_v28 = vpop.f32.mrf.mxu0  ;;  %v2939_v33 = vpop.f32.mrf.mxu1 }
 0x18c   :  { %v2811_v10 = vadd.f32 %v2810_v28, %v2768_v5 }
 0x18d   :  { %v2812_v35 = vpop.f32.mrf.mxu0  ;;  %v2941_v36 = vpop.f32.mrf.mxu1 }
 0x18e   :  { %v2813_v6 = vadd.f32 %v2812_v35, %v2770_v23  ;;  %v2854_v20 = vadd.f32 %v2853_v11, %v2811_v10 }
 0x18f   :  { %v2814_v15 = vpop.f32.mrf.mxu0  ;;  %v2943_v42 = vpop.f32.mrf.mxu1 }
 0x190   :  { %v2856_v39 = vadd.f32 %v2855_v19, %v2813_v6 }
 0x191   :  { %v2816_v21 = vpop.f32.mrf.mxu0  ;;  %v2945_v46 = vpop.f32.mrf.mxu1 }
 0x193   :  { %v2896_v30 = vpop.f32.mrf.mxu0 }
 0x194   :  { %v2897_v26 = vadd.f32 %v2896_v30, %v2854_v20 }
 0x195   :  { %v2898_v41 = vpop.f32.mrf.mxu0 }
 0x196   :  { %v2899_v45 = vadd.f32 %v2898_v41, %v2856_v39  ;;  %v2940_v28 = vadd.f32 %v2939_v33, %v2897_v26 }
 0x197   :  { %v2900_v55 = vpop.f32.mrf.mxu0 }
 0x198   :  { %v2942_v29 = vadd.f32 %v2941_v36, %v2899_v45 }
 0x199   :  { %v2902_v37 = vpop.f32.mrf.mxu0 }
 0x19b   :  { %v2982_v43 = vpop.f32.mrf.mxu0 }
 0x19c   :  { %v2983_v11 = vadd.f32 %v2982_v43, %v2940_v28 }
 0x19d   :  { %v2984_v48 = vpop.f32.mrf.mxu0 }
 0x19e   :  { %v2985_v21 = vadd.f32 %v2984_v48, %v2942_v29  ;;  %v3292_v36 = vmax.f32 %v2983_v11, 0.0 }
 0x19f   :  { %v2986_v50 = vpop.f32.mrf.mxu0 }
 0x1a0   :  { %v3293_v30 = vmax.f32 %v2985_v21, 0.0 }
 0x1a1   :  { %v2988_v52 = vpop.f32.mrf.mxu0 }
 0x1a2   :  { %v3827_v33 = vpack.c.bf16 %v3293_v30, %v3292_v36 }
 0x1a4   :  { %v3318_v43 = vrot.slane %v3827_v33, %v4621_v54 }
 0x1c3   :  { %v3025_v49 = vpop.f32.mrf.mxu1 }
 0x1c4   :  { %v3026_v14 = vadd.f32 %v3025_v49, %v436_v8 }
 0x1c5   :  { %v3027_v51 = vpop.f32.mrf.mxu1 }
 0x1c6   :  { %v3028_v40 = vadd.f32 %v3027_v51, %v440_v12 }
 0x1c7   :  { %v3029_v16 = vpop.f32.mrf.mxu1 }
 0x1c9   :  { %v3031_v60 = vpop.f32.mrf.mxu1 }
 0x1ca   :  { %v3068_v17 = vpop.f32.mrf.mxu0 }
 0x1cb   :  { %v3069_v24 = vadd.f32 %v3068_v17, %v3026_v14 }
 0x1cc   :  { %v3070_v22 = vpop.f32.mrf.mxu0 }
 0x1cd   :  { %v3071_v47 = vadd.f32 %v3070_v22, %v3028_v40 }
 0x1ce   :  { %v3072_v0 = vpop.f32.mrf.mxu0 }
 0x1d0   :  { %v3074_v4 = vpop.f32.mrf.mxu0 }
 0x203   :  { %v3111_v62 = vpop.f32.mrf.mxu1 }
 0x204   :  { %v3112_v25 = vadd.f32 %v3111_v62, %v3069_v24 }
 0x205   :  { %v3113_v2 = vpop.f32.mrf.mxu1 }
 0x206   :  { %v3114_v9 = vadd.f32 %v3113_v2, %v3071_v47 }
 0x207   :  { %v3115_v7 = vpop.f32.mrf.mxu1 }
 0x209   :  { %v3117_v13 = vpop.f32.mrf.mxu1 }
 0x20a   :  { %v3154_v44 = vpop.f32.mrf.mxu0 }
 0x20b   :  { %v3155_v15 = vadd.f32 %v3154_v44, %v3112_v25 }
 0x20c   :  { %v3156_v56 = vpop.f32.mrf.mxu0 }
 0x20d   :  { %v3157_v32 = vadd.f32 %v3156_v56, %v3114_v9 }
 0x20e   :  { %v3158_v57 = vpop.f32.mrf.mxu0 }
 0x210   :  { %v3160_v19 = vpop.f32.mrf.mxu0 }
 0x243   :  { %v3197_v34 = vpop.f32.mrf.mxu1 }
 0x244   :  { %v3198_v55 = vadd.f32 %v3197_v34, %v3155_v15 }
 0x245   :  { %v3199_v27 = vpop.f32.mrf.mxu1 }
 0x246   :  { %v3200_v42 = vadd.f32 %v3199_v27, %v3157_v32 }
 0x247   :  { %v3201_v35 = vpop.f32.mrf.mxu1 }
 0x249   :  { %v3203_v31 = vpop.f32.mrf.mxu1 }
 0x24a   :  { %v3240_v41 = vpop.f32.mrf.mxu0 }
 0x24b   :  { %v3283_v37 = vpop.f32.mrf.mxu1  ;;  %v3241_v46 = vadd.f32 %v3240_v41, %v3198_v55 }
 0x24c   :  { %v3242_v49 = vpop.f32.mrf.mxu0 }
 0x24d   :  { %v3285_v50 = vpop.f32.mrf.mxu1  ;;  %v3284_v51 = vadd.f32 %v3283_v37, %v3241_v46  ;;  %v3243_v52 = vadd.f32 %v3242_v49, %v3200_v42 }
 0x24e   :  { %v3244_v53 = vpop.f32.mrf.mxu0 }
 0x24f   :  { %v3287_v16 = vpop.f32.mrf.mxu1  ;;  %v3286_v17 = vadd.f32 %v3285_v50, %v3243_v52  ;;  %v3294_v18 = vmax.f32 %v3284_v51, 0.0 }
 0x250   :  { %v3246_v48 = vpop.f32.mrf.mxu0 }
 0x251   :  { %v3295_v58 = vmax.f32 %v3286_v17, 0.0  ;;  %v3289_v59 = vpop.f32.mrf.mxu1 }
 0x253   :  { %v3829_v60 = vpack.c.bf16 %v3295_v58, %v3294_v18 }
 0x255   :  { %v3332_v22 = vrot.slane %v3829_v60, %v4621_v54 }
 0x257   :  { %v3340_v61 = vcombine.low %v3318_v43, %v3332_v22 }
 0x259   :  { %3831 = vst.sshfl [vmem:[#allocation2] sm:$0x55 pattern:$0x73625140] %v3340_v61 }
 0x260   :  { %v3410_v62 = vld [vmem:[#allocation2] sm:$0xf] }
 0x261   :  { %3411 = vst [vmem:[%s5833_s3] sm:$0xf] %v3410_v62 }

</bundles_post_ra>
